<compile_context>
chip_gen: v5e
topology: v5e:2x2
jax: 0.10.0
libtpu: 0.0.40
codegen_flags: <defaults>
</compile_context>

<pallas_src>
import math
import numpy as np
import jax
import jax.numpy as jnp
from jax import lax
from jax.experimental import pallas as pl
from jax.experimental.pallas import tpu as pltpu

DENSITY_SCALE = 1.1            # NeRFRenderer.__init__ default
BG = 1.0                       # cfg.train.bg
BETA = 20.0                    # dist_loss beta from run()
LOG_EPS = math.log(1e-15)      # log of the 1e-15 transmittance floor

# TODO(synk): KNN, get_barycentric region selection (argwhere), sample_pdf
# (searchsorted), torch.sort-based coarse/fine merge and the abstract
# density()/color() networks need data-dependent gather + dynamic shapes;
# they are not reproduced in-kernel.


def _composite_kernel(z_ref, sigma_ref, dist_ref, rgb_ref, rp_ref, out_ref):
    z = z_ref[...]                      # (TN, S) f32
    sigma = sigma_ref[...]              # (TN, S) f32
    tn, S = z.shape

    nears = rp_ref[:, 0:1]              # (TN, 1)
    inv_range = rp_ref[:, 1:2]          # precomputed 1/(far-near)
    sdist = rp_ref[:, 2:3]              # per-ray sample_dist

    lane = lax.broadcasted_iota(jnp.int32, z.shape, 1)

    # deltas[i] = z[i+1] - z[i]; roll by S-1 (== roll by -1) is an XLU lane
    # rotate — no matmul, no (S,S) operand.  The wrapped last lane is
    # overwritten with the per-ray sample_dist.
    z_next = pltpu.roll(z, shift=S - 1, axis=1)
    deltas = jnp.where(lane == S - 1, sdist, z_next - z)

    # optical depth, alpha, log-transmittance increment.
    # log(1 - alpha + 1e-15) == max(-x, log 1e-15) except where transmittance
    # is already ~1e-15 (off by <= log 2 there, negligible on outputs); this
    # drops one EUP transcendental per element and avoids 1-exp cancellation.
    x = deltas * DENSITY_SCALE * sigma
    alphas = 1.0 - jnp.exp(-x)
    log_t = jnp.maximum(-x, LOG_EPS)

    # Exclusive cumulative sum of logs via strict-upper-triangular matmul on
    # the otherwise-idle MXU.  The mask is generated in-kernel (two iotas +
    # compare) instead of being an (S,S) HBM operand.  HIGHEST precision keeps
    # the full-f32 multi-pass MXU path: log_t reaches |34.5|, so bf16 passes
    # would be a multi-percent multiplicative error on transmittance.
    row_i = lax.broadcasted_iota(jnp.int32, (S, S), 0)
    col_i = lax.broadcasted_iota(jnp.int32, (S, S), 1)
    mmat = (row_i < col_i).astype(jnp.float32)
    trans = jnp.exp(jnp.dot(log_t, mmat,
                            precision=lax.Precision.HIGHEST,
                            preferred_element_type=jnp.float32))
    # TODO(synk, v5e): weights = trans - roll(trans) (last lane patched with
    # exp(row-sum)) would drop one exp/element if v5e's single EUP ever binds.
    weights = alphas * trans                                   # (TN, S)
    wsum = jnp.sum(weights, axis=-1, keepdims=True)            # (TN, 1)

    ori_z = jnp.clip((z - nears) * inv_range, 0.0, 1.0)
    depth = jnp.sum(weights * ori_z, axis=-1, keepdims=True)

    rgb = rgb_ref[...].astype(jnp.float32)                     # (3, TN, S)
    bgterm = (1.0 - wsum) * BG
    ir = jnp.sum(weights * rgb[0], axis=-1, keepdims=True) + bgterm
    ig = jnp.sum(weights * rgb[1], axis=-1, keepdims=True) + bgterm
    ib = jnp.sum(weights * rgb[2], axis=-1, keepdims=True) + bgterm

    hard = jnp.sum(-weights * jnp.log(weights + 1e-7),
                   axis=-1, keepdims=True)
    distp = jnp.sum((jnp.exp(BETA * jnp.maximum(dist_ref[...], 0.0)) - 1.0)
                    * sigma, axis=-1, keepdims=True)

    # Assemble the 8-lane packed row with broadcasts + selects and issue ONE
    # full-tile store per grid step (columns: depth, r, g, b, wsum, hard,
    # dist, pad).
    lane8 = lax.broadcasted_iota(jnp.int32, (tn, 8), 1)
    packed = jnp.zeros((tn, 8), jnp.float32)
    for idx, val in enumerate((depth, ir, ig, ib, wsum, hard, distp)):
        packed = jnp.where(lane8 == idx, val, packed)
    out_ref[...] = packed


def _tpu_vmem_bytes():
    try:
        return int(pltpu.get_tpu_info().vmem_capacity_bytes)
    except Exception:
        return 64 * 1024 * 1024          # conservative (v7x per-TC) fallback


def _pick_tn(n_rays, n_samples, vmem_budget_bytes, multi_core):
    """Largest ray tile whose double-buffered IO + live f32 temporaries fit
    the budget.  On 2-TC chips (v7x) keep >=2 (preferably even) grid steps so
    the 'parallel' ray axis load-balances across TensorCores; on 1-TC chips
    (v5e/v6e) take the single largest tile — extra steps are pure ~0.35us
    overhead there.  Sweep per chip for peak."""
    def fits(tn):
        io = (3 * tn * n_samples * 4         # z, sigma, dist (f32)
              + 3 * tn * n_samples * 2       # rgb planes (bf16)
              + 2 * tn * 8 * 4)              # packed ray params + output
        temps = 14 * tn * n_samples * 4      # f32 intermediates (rgb cast, trans, ...)
        return 2 * io + temps + n_samples * n_samples * 4 <= vmem_budget_bytes

    cand = [t for t in (8, 16, 32, 64, 128, 256, 512, 1024, 2048, 4096)
            if n_rays % t == 0 and fits(t)]
    if not cand:
        return 8
    if multi_core:
        even = [t for t in cand if (n_rays // t) >= 2 and (n_rays // t) % 2 == 0]
        ge2 = [t for t in cand if (n_rays // t) >= 2]
        if even:
            return max(even)
        if ge2:
            return max(ge2)
    return max(cand)


def composite_pallas(z_vals, sigma, dist, rgb_planes, nears, fars,
                     sample_dist, tn=None):
    """z_vals/sigma/dist: (N,S) f32.  rgb_planes: (3,N,S), bf16 recommended.
    nears/fars/sample_dist: (N,1) f32."""
    N, S = z_vals.shape
    assert N % 8 == 0

    vmem_cap = _tpu_vmem_bytes()
    multi_core = vmem_cap <= 80 * 1024 * 1024   # v7x: 64 MiB/TC, 2 TCs/chip
    if tn is None:
        tn = _pick_tn(N, S, vmem_budget_bytes=vmem_cap // 2,
                      multi_core=multi_core)
    assert N % tn == 0 and tn % 8 == 0

    # near / 1/(far-near) / sample_dist packed into one lane-padded (N, 8)
    # f32 operand: one small DMA per step, no in-kernel reciprocal.
    sdist = jnp.broadcast_to(jnp.asarray(sample_dist, jnp.float32), (N, 1))
    ray_params = jnp.concatenate(
        [nears.astype(jnp.float32),
         1.0 / (fars - nears).astype(jnp.float32),
         sdist,
         jnp.zeros((N, 5), jnp.float32)], axis=-1)

    row = pl.BlockSpec((tn, S), lambda i: (i, 0))
    rgb_spec = pl.BlockSpec((3, tn, S), lambda i: (0, i, 0))
    rp_spec = pl.BlockSpec((tn, 8), lambda i: (i, 0))
    out_spec = pl.BlockSpec((tn, 8), lambda i: (i, 0))

    rgb_bytes = rgb_planes.size * rgb_planes.dtype.itemsize
    cost = pl.CostEstimate(
        flops=2 * N * S * S + 12 * N * S,
        transcendentals=4 * N * S,
        bytes_accessed=3 * N * S * 4 + rgb_bytes + 2 * N * 8 * 4)

    packed = pl.pallas_call(
        _composite_kernel,
        grid=(N // tn,),
        in_specs=[row, row, row, rgb_spec, rp_spec],
        out_specs=out_spec,
        out_shape=jax.ShapeDtypeStruct((N, 8), jnp.float32),
        compiler_params=pltpu.CompilerParams(
            dimension_semantics=("parallel",),
            vmem_limit_bytes=int(vmem_cap * 0.75)),
        cost_estimate=cost,
    )(z_vals, sigma, dist, rgb_planes, ray_params)

    depth = packed[:, 0]
    image = packed[:, 1:4]
    wsum = packed[:, 4]
    hard_loss = jnp.sum(packed[:, 5]) / (N * S)
    dist_loss = jnp.sum(packed[:, 6]) / (N * S)
    return {
        "depth": depth,
        "image": image,
        "weights_sum": wsum,
        "dist_loss": dist_loss,
        "hard_loss": hard_loss,
    }


def composite_ref(z_vals, sigma, dist, rgbs, nears, fars, sample_dist):
    """Plain-JAX mirror of the PyTorch compositing math (for verification)."""
    deltas = z_vals[:, 1:] - z_vals[:, :-1]
    deltas = jnp.concatenate(
        [deltas, sample_dist * jnp.ones_like(deltas[:, :1])], axis=-1)
    alphas = 1.0 - jnp.exp(-deltas * DENSITY_SCALE * sigma)
    alphas_shifted = jnp.concatenate(
        [jnp.ones_like(alphas[:, :1]), 1.0 - alphas + 1e-15], axis=-1)
    weights = alphas * jnp.cumprod(alphas_shifted, axis=-1)[:, :-1]
    wsum = weights.sum(axis=-1)
    ori_z = jnp.clip((z_vals - nears) / (fars - nears), 0.0, 1.0)
    depth = jnp.sum(weights * ori_z, axis=-1)
    image = jnp.sum(weights[..., None] * rgbs, axis=-2) \
        + (1.0 - wsum)[:, None] * BG
    hard_loss = jnp.mean(-weights * jnp.log(weights + 1e-7))
    dist_loss = jnp.mean((jnp.exp(BETA * jax.nn.relu(dist)) - 1.0) * sigma)
    return {"depth": depth, "image": image, "weights_sum": wsum,
            "dist_loss": dist_loss, "hard_loss": hard_loss}


if __name__ == "__main__":
    key = jax.random.PRNGKey(0)
    N, S = 256, 128                    # rays, samples per ray
    near, far = 0.5, 2.5

    k0, k1, k2, k3, k4 = jax.random.split(key, 5)
    rays_o = jax.random.normal(k0, (N, 3), jnp.float32) * 0.1
    rays_d = jax.random.normal(k1, (N, 3), jnp.float32)
    rays_d = rays_d / jnp.linalg.norm(rays_d, axis=-1, keepdims=True)

    nears = jnp.full((N, 1), near, jnp.float32)
    fars = jnp.full((N, 1), far, jnp.float32)
    sample_dist = (fars - nears) / S
    z_vals = nears + (fars - nears) * jnp.linspace(0.0, 1.0, S)[None, :]

    # pts along rays (glue; fed to the synthetic density/color surrogates)
    pts = rays_o[:, None, :] + rays_d[:, None, :] * z_vals[..., None]

    # synthetic stand-ins for the abstract density()/color() networks and the
    # signed-distance field from IntrinsicCoord().  RGB is stored as a single
    # (3, N, S) bf16 array (halves its HBM traffic; both kernel and reference
    # consume the same bf16 values).  z_vals / sigma / dist stay f32.
    sigma = jax.nn.relu(jax.random.normal(k2, (N, S), jnp.float32)) * 5.0 \
        + 0.1 * jnp.sum(pts, axis=-1) ** 2
    rgb_planes = jax.nn.sigmoid(
        jax.random.normal(k3, (3, N, S), jnp.float32)).astype(jnp.bfloat16)
    dist = 0.2 * jax.random.uniform(k4, (N, S), jnp.float32, -1.0, 1.0)

    out = composite_pallas(z_vals, sigma, dist, rgb_planes, nears, fars,
                           sample_dist)
    out = jax.tree_util.tree_map(jax.block_until_ready, out)

    rgbs = jnp.moveaxis(rgb_planes.astype(jnp.float32), 0, -1)   # (N, S, 3)
    ref = composite_ref(z_vals, sigma, dist, rgbs, nears, fars, sample_dist)
    for k in ("depth", "image", "weights_sum", "dist_loss", "hard_loss"):
        np.testing.assert_allclose(np.asarray(out[k]), np.asarray(ref[k]),
                                   rtol=2e-3, atol=2e-3)

    print("KERNEL_OK")
</pallas_src>

<mosaic_0001>
module attributes {stable_mosaic.version = 11 : i64} {
  func.func @_composite_kernel(%arg0: i32, %arg1: memref<128x128xf32, #tpu.memory_space<vmem>>, %arg2: memref<128x128xf32, #tpu.memory_space<vmem>>, %arg3: memref<128x128xf32, #tpu.memory_space<vmem>>, %arg4: memref<3x128x128xbf16, #tpu.memory_space<vmem>>, %arg5: memref<128x8xf32, #tpu.memory_space<vmem>>, %arg6: memref<128x8xf32, #tpu.memory_space<vmem>>) attributes {dimension_semantics = [#tpu.dimension_semantics<parallel>], iteration_bounds = array<i64: 2>, scalar_prefetch = 0 : i64, scratch_operands = 0 : i64, tpu.core_type = #tpu.core_type<tc>, window_params = [{transform_indices = @transform_0, window_bounds = array<i64: 128, 128>}, {transform_indices = @transform_1, window_bounds = array<i64: 128, 128>}, {transform_indices = @transform_2, window_bounds = array<i64: 128, 128>}, {transform_indices = @transform_3, window_bounds = array<i64: 3, 128, 128>}, {transform_indices = @transform_4, window_bounds = array<i64: 128, 8>}, {transform_indices = @transform_5, window_bounds = array<i64: 128, 8>}]} {
    %c0 = arith.constant 0 : index
    %c0_0 = arith.constant 0 : index
    %0 = vector.load %arg1[%c0, %c0_0] : memref<128x128xf32, #tpu.memory_space<vmem>>, vector<128x128xf32>
    %c0_1 = arith.constant 0 : index
    %c0_2 = arith.constant 0 : index
    %1 = vector.load %arg2[%c0_1, %c0_2] : memref<128x128xf32, #tpu.memory_space<vmem>>, vector<128x128xf32>
    %c0_3 = arith.constant 0 : index
    %c0_4 = arith.constant 0 : index
    %2 = vector.load %arg5[%c0_3, %c0_4] : memref<128x8xf32, #tpu.memory_space<vmem>>, vector<128x1xf32>
    %c0_5 = arith.constant 0 : index
    %c1 = arith.constant 1 : index
    %3 = vector.load %arg5[%c0_5, %c1] : memref<128x8xf32, #tpu.memory_space<vmem>>, vector<128x1xf32>
    %c0_6 = arith.constant 0 : index
    %c2 = arith.constant 2 : index
    %4 = vector.load %arg5[%c0_6, %c2] : memref<128x8xf32, #tpu.memory_space<vmem>>, vector<128x1xf32>
    %5 = tpu.iota {dimensions = array<i32: 1>} : vector<128x128xi32>
    %c127_i32 = arith.constant 127 : i32
    %6 = tpu.dynamic_rotate %0 by %c127_i32 dim 1 : vector<128x128xf32>, i32 -> vector<128x128xf32>
    %c127_i32_7 = arith.constant 127 : i32
    %7 = vector.broadcast %c127_i32_7 : i32 to vector<128x128xi32>
    %8 = arith.cmpi eq, %5, %7 : vector<128x128xi32>
    %9 = arith.subf %6, %0 : vector<128x128xf32>
    %10 = vector.shape_cast %4 : vector<128x1xf32> to vector<128x1xf32>
    %11 = vector.broadcast %10 : vector<128x1xf32> to vector<128x128xf32>
    %12 = arith.select %8, %11, %9 : vector<128x128xi1>, vector<128x128xf32>
    %cst = arith.constant 1.100000e+00 : f32
    %13 = vector.broadcast %cst : f32 to vector<128x128xf32>
    %14 = arith.mulf %12, %13 : vector<128x128xf32>
    %15 = arith.mulf %14, %1 : vector<128x128xf32>
    %cst_8 = arith.constant 0.000000e+00 : f32
    %16 = vector.broadcast %cst_8 : f32 to vector<128x128xf32>
    %17 = arith.subf %16, %15 : vector<128x128xf32>
    %18 = math.exp %17 : vector<128x128xf32>
    %cst_9 = arith.constant 1.000000e+00 : f32
    %19 = vector.broadcast %cst_9 : f32 to vector<128x128xf32>
    %20 = arith.subf %19, %18 : vector<128x128xf32>
    %cst_10 = arith.constant 0.000000e+00 : f32
    %21 = vector.broadcast %cst_10 : f32 to vector<128x128xf32>
    %22 = arith.subf %21, %15 : vector<128x128xf32>
    %cst_11 = arith.constant -34.5387764 : f32
    %23 = vector.broadcast %cst_11 : f32 to vector<128x128xf32>
    %24 = arith.maximumf %22, %23 : vector<128x128xf32>
    %25 = tpu.iota {dimensions = array<i32: 0>} : vector<128x128xi32>
    %26 = tpu.iota {dimensions = array<i32: 1>} : vector<128x128xi32>
    %27 = arith.cmpi slt, %25, %26 : vector<128x128xi32>
    %28 = arith.extui %27 : vector<128x128xi1> to vector<128x128xi32>
    %29 = arith.sitofp %28 : vector<128x128xi32> to vector<128x128xf32>
    %cst_12 = arith.constant dense<0.000000e+00> : vector<128x128xf32>
    %30 = tpu.matmul %24, %29, %cst_12 {dimension_numbers = #tpu.dot_dimension_numbers<[1], [0], [0], [1], [0, 0, 1, 1], [], []>, precision = #tpu.contract_precision<fp32>} : vector<128x128xf32>, vector<128x128xf32>, vector<128x128xf32> -> vector<128x128xf32>
    %31 = math.exp %30 : vector<128x128xf32>
    %32 = arith.mulf %20, %31 : vector<128x128xf32>
    %cst_13 = arith.constant dense<0.000000e+00> : vector<128xf32>
    %33 = vector.multi_reduction <add>, %32, %cst_13 [1] : vector<128x128xf32> to vector<128xf32>
    %34 = vector.shape_cast %33 : vector<128xf32> to vector<128x1xf32>
    %35 = vector.broadcast %2 : vector<128x1xf32> to vector<128x128xf32>
    %36 = arith.subf %0, %35 : vector<128x128xf32>
    %37 = vector.broadcast %3 : vector<128x1xf32> to vector<128x128xf32>
    %38 = arith.mulf %36, %37 : vector<128x128xf32>
    %cst_14 = arith.constant 0.000000e+00 : f32
    %cst_15 = arith.constant 1.000000e+00 : f32
    %39 = vector.broadcast %cst_14 : f32 to vector<128x128xf32>
    %40 = arith.maximumf %39, %38 : vector<128x128xf32>
    %41 = vector.broadcast %cst_15 : f32 to vector<128x128xf32>
    %42 = arith.minimumf %41, %40 : vector<128x128xf32>
    %43 = arith.mulf %32, %42 : vector<128x128xf32>
    %cst_16 = arith.constant dense<0.000000e+00> : vector<128xf32>
    %44 = vector.multi_reduction <add>, %43, %cst_16 [1] : vector<128x128xf32> to vector<128xf32>
    %45 = vector.shape_cast %44 : vector<128xf32> to vector<128x1xf32>
    %c0_17 = arith.constant 0 : index
    %c0_18 = arith.constant 0 : index
    %c0_19 = arith.constant 0 : index
    %46 = vector.load %arg4[%c0_17, %c0_18, %c0_19] : memref<3x128x128xbf16, #tpu.memory_space<vmem>>, vector<3x128x128xbf16>
    %47 = arith.extf %46 : vector<3x128x128xbf16> to vector<3x128x128xf32>
    %cst_20 = arith.constant 1.000000e+00 : f32
    %48 = vector.broadcast %cst_20 : f32 to vector<128x1xf32>
    %49 = arith.subf %48, %34 : vector<128x1xf32>
    %cst_21 = arith.constant 1.000000e+00 : f32
    %50 = vector.broadcast %cst_21 : f32 to vector<128x1xf32>
    %51 = arith.mulf %49, %50 : vector<128x1xf32>
    %52 = vector.extract_strided_slice %47 {offsets = [0, 0, 0], sizes = [1, 128, 128], strides = [1, 1, 1]} : vector<3x128x128xf32> to vector<1x128x128xf32>
    %53 = vector.shape_cast %52 : vector<1x128x128xf32> to vector<128x128xf32>
    %54 = arith.mulf %32, %53 : vector<128x128xf32>
    %cst_22 = arith.constant dense<0.000000e+00> : vector<128xf32>
    %55 = vector.multi_reduction <add>, %54, %cst_22 [1] : vector<128x128xf32> to vector<128xf32>
    %56 = vector.shape_cast %55 : vector<128xf32> to vector<128x1xf32>
    %57 = arith.addf %56, %51 : vector<128x1xf32>
    %58 = vector.extract_strided_slice %47 {offsets = [1, 0, 0], sizes = [1, 128, 128], strides = [1, 1, 1]} : vector<3x128x128xf32> to vector<1x128x128xf32>
    %59 = vector.shape_cast %58 : vector<1x128x128xf32> to vector<128x128xf32>
    %60 = arith.mulf %32, %59 : vector<128x128xf32>
    %cst_23 = arith.constant dense<0.000000e+00> : vector<128xf32>
    %61 = vector.multi_reduction <add>, %60, %cst_23 [1] : vector<128x128xf32> to vector<128xf32>
    %62 = vector.shape_cast %61 : vector<128xf32> to vector<128x1xf32>
    %63 = arith.addf %62, %51 : vector<128x1xf32>
    %64 = vector.extract_strided_slice %47 {offsets = [2, 0, 0], sizes = [1, 128, 128], strides = [1, 1, 1]} : vector<3x128x128xf32> to vector<1x128x128xf32>
    %65 = vector.shape_cast %64 : vector<1x128x128xf32> to vector<128x128xf32>
    %66 = arith.mulf %32, %65 : vector<128x128xf32>
    %cst_24 = arith.constant dense<0.000000e+00> : vector<128xf32>
    %67 = vector.multi_reduction <add>, %66, %cst_24 [1] : vector<128x128xf32> to vector<128xf32>
    %68 = vector.shape_cast %67 : vector<128xf32> to vector<128x1xf32>
    %69 = arith.addf %68, %51 : vector<128x1xf32>
    %cst_25 = arith.constant 0.000000e+00 : f32
    %70 = vector.broadcast %cst_25 : f32 to vector<128x128xf32>
    %71 = arith.subf %70, %32 : vector<128x128xf32>
    %cst_26 = arith.constant 1.000000e-07 : f32
    %72 = vector.broadcast %cst_26 : f32 to vector<128x128xf32>
    %73 = arith.addf %32, %72 : vector<128x128xf32>
    %74 = math.log %73 : vector<128x128xf32>
    %75 = arith.mulf %71, %74 : vector<128x128xf32>
    %cst_27 = arith.constant dense<0.000000e+00> : vector<128xf32>
    %76 = vector.multi_reduction <add>, %75, %cst_27 [1] : vector<128x128xf32> to vector<128xf32>
    %77 = vector.shape_cast %76 : vector<128xf32> to vector<128x1xf32>
    %c0_28 = arith.constant 0 : index
    %c0_29 = arith.constant 0 : index
    %78 = vector.load %arg3[%c0_28, %c0_29] : memref<128x128xf32, #tpu.memory_space<vmem>>, vector<128x128xf32>
    %cst_30 = arith.constant 0.000000e+00 : f32
    %79 = vector.broadcast %cst_30 : f32 to vector<128x128xf32>
    %80 = arith.maximumf %78, %79 : vector<128x128xf32>
    %cst_31 = arith.constant 2.000000e+01 : f32
    %81 = vector.broadcast %cst_31 : f32 to vector<128x128xf32>
    %82 = arith.mulf %81, %80 : vector<128x128xf32>
    %83 = math.exp %82 : vector<128x128xf32>
    %cst_32 = arith.constant 1.000000e+00 : f32
    %84 = vector.broadcast %cst_32 : f32 to vector<128x128xf32>
    %85 = arith.subf %83, %84 : vector<128x128xf32>
    %86 = arith.mulf %85, %1 : vector<128x128xf32>
    %cst_33 = arith.constant dense<0.000000e+00> : vector<128xf32>
    %87 = vector.multi_reduction <add>, %86, %cst_33 [1] : vector<128x128xf32> to vector<128xf32>
    %88 = vector.shape_cast %87 : vector<128xf32> to vector<128x1xf32>
    %89 = tpu.iota {dimensions = array<i32: 1>} : vector<128x8xi32>
    %cst_34 = arith.constant 0.000000e+00 : f32
    %90 = vector.broadcast %cst_34 : f32 to vector<128x8xf32>
    %c0_i32 = arith.constant 0 : i32
    %91 = vector.broadcast %c0_i32 : i32 to vector<128x8xi32>
    %92 = arith.cmpi eq, %89, %91 : vector<128x8xi32>
    %93 = vector.shape_cast %45 : vector<128x1xf32> to vector<128x1xf32>
    %94 = vector.broadcast %93 : vector<128x1xf32> to vector<128x8xf32>
    %95 = arith.select %92, %94, %90 : vector<128x8xi1>, vector<128x8xf32>
    %c1_i32 = arith.constant 1 : i32
    %96 = vector.broadcast %c1_i32 : i32 to vector<128x8xi32>
    %97 = arith.cmpi eq, %89, %96 : vector<128x8xi32>
    %98 = vector.shape_cast %57 : vector<128x1xf32> to vector<128x1xf32>
    %99 = vector.broadcast %98 : vector<128x1xf32> to vector<128x8xf32>
    %100 = arith.select %97, %99, %95 : vector<128x8xi1>, vector<128x8xf32>
    %c2_i32 = arith.constant 2 : i32
    %101 = vector.broadcast %c2_i32 : i32 to vector<128x8xi32>
    %102 = arith.cmpi eq, %89, %101 : vector<128x8xi32>
    %103 = vector.shape_cast %63 : vector<128x1xf32> to vector<128x1xf32>
    %104 = vector.broadcast %103 : vector<128x1xf32> to vector<128x8xf32>
    %105 = arith.select %102, %104, %100 : vector<128x8xi1>, vector<128x8xf32>
    %c3_i32 = arith.constant 3 : i32
    %106 = vector.broadcast %c3_i32 : i32 to vector<128x8xi32>
    %107 = arith.cmpi eq, %89, %106 : vector<128x8xi32>
    %108 = vector.shape_cast %69 : vector<128x1xf32> to vector<128x1xf32>
    %109 = vector.broadcast %108 : vector<128x1xf32> to vector<128x8xf32>
    %110 = arith.select %107, %109, %105 : vector<128x8xi1>, vector<128x8xf32>
    %c4_i32 = arith.constant 4 : i32
    %111 = vector.broadcast %c4_i32 : i32 to vector<128x8xi32>
    %112 = arith.cmpi eq, %89, %111 : vector<128x8xi32>
    %113 = vector.shape_cast %34 : vector<128x1xf32> to vector<128x1xf32>
    %114 = vector.broadcast %113 : vector<128x1xf32> to vector<128x8xf32>
    %115 = arith.select %112, %114, %110 : vector<128x8xi1>, vector<128x8xf32>
    %c5_i32 = arith.constant 5 : i32
    %116 = vector.broadcast %c5_i32 : i32 to vector<128x8xi32>
    %117 = arith.cmpi eq, %89, %116 : vector<128x8xi32>
    %118 = vector.shape_cast %77 : vector<128x1xf32> to vector<128x1xf32>
    %119 = vector.broadcast %118 : vector<128x1xf32> to vector<128x8xf32>
    %120 = arith.select %117, %119, %115 : vector<128x8xi1>, vector<128x8xf32>
    %c6_i32 = arith.constant 6 : i32
    %121 = vector.broadcast %c6_i32 : i32 to vector<128x8xi32>
    %122 = arith.cmpi eq, %89, %121 : vector<128x8xi32>
    %123 = vector.shape_cast %88 : vector<128x1xf32> to vector<128x1xf32>
    %124 = vector.broadcast %123 : vector<128x1xf32> to vector<128x8xf32>
    %125 = arith.select %122, %124, %120 : vector<128x8xi1>, vector<128x8xf32>
    %c0_35 = arith.constant 0 : index
    %c0_36 = arith.constant 0 : index
    %126 = vector.load %arg6[%c0_35, %c0_36] : memref<128x8xf32, #tpu.memory_space<vmem>>, vector<128x8xf32>
    tpu.vector_store %arg6[%c0_35, %c0_36], %125 {strides = array<i32>} : memref<128x8xf32, #tpu.memory_space<vmem>>, vector<128x8xf32>,
    return
  }
  func.func @transform_0(%arg0: i32) -> (i32, i32) {
    %c0_i32 = arith.constant 0 : i32
    %c0_i32_0 = arith.constant 0 : i32
    return %arg0, %c0_i32 : i32, i32
  }
  func.func @transform_1(%arg0: i32) -> (i32, i32) {
    %c0_i32 = arith.constant 0 : i32
    %c0_i32_0 = arith.constant 0 : i32
    return %arg0, %c0_i32 : i32, i32
  }
  func.func @transform_2(%arg0: i32) -> (i32, i32) {
    %c0_i32 = arith.constant 0 : i32
    %c0_i32_0 = arith.constant 0 : i32
    return %arg0, %c0_i32 : i32, i32
  }
  func.func @transform_3(%arg0: i32) -> (i32, i32, i32) {
    %c0_i32 = arith.constant 0 : i32
    %c0_i32_0 = arith.constant 0 : i32
    %c0_i32_1 = arith.constant 0 : i32
    return %c0_i32, %arg0, %c0_i32_0 : i32, i32, i32
  }
  func.func @transform_4(%arg0: i32) -> (i32, i32) {
    %c0_i32 = arith.constant 0 : i32
    %c0_i32_0 = arith.constant 0 : i32
    return %arg0, %c0_i32 : i32, i32
  }
  func.func @transform_5(%arg0: i32) -> (i32, i32) {
    %c0_i32 = arith.constant 0 : i32
    %c0_i32_0 = arith.constant 0 : i32
    return %arg0, %c0_i32 : i32, i32
  }
}

</mosaic_0001>

<bundles_post_ra>
// kernel: tpu_custom_call.1
= control target key start
LH: loop header
LB: loop body
LE: loop exit
PB: predicated region body
PF: predicated region fallthrough
CT: control target
= control target key end

     0   :  { %10 = vsyncpa [#allocation3], 0  ;;  %s5452_s0 = inlined_call_operand.vmem [shape: f32[256,128], index: 0, kind: input, shape index: {}]   ;;  %s5453_s1 = inlined_call_operand.hbm [shape: f32[256,128], index: 1, kind: input, shape index: {}]   ;;  %s5454_s2 = inlined_call_operand.hbm [shape: f32[256,128], index: 2, kind: input, shape index: {}]   ;;  %s5455_s3 = inlined_call_operand.hbm [shape: bf16[3,256,128], index: 3, kind: input, shape index: {}]   ;;  %s5456_s4 = inlined_call_operand.vmem [shape: f32[256,8], index: 4, kind: input, shape index: {}]   ;;  %s5457_s5 = inlined_call_operand.vmem [shape: f32[256,8], index: 5, kind: output, shape index: {}]  }
   0x1   :  { %12 = vsyncpa [#allocation3 + $0x1], 0 }
   0x2   :  { %13 = vsyncpa [#allocation5], 0 }
   0x3   :  { %15 = vsyncpa [#allocation5 + $0x1], 0  ;;  %s3365_s18 = smov 0   ;;  %s3367_s19 = smov 0  }
   0x4   :  { %s3369_s20 = smov 0   ;;  %s3371_s21 = smov 0  }
   0x5 LB: > { %5522 = sst [smem:[#allocation12_spill]] %s3315_s20  ;;  %s3384_s22 = sadd.s32 4294967295, %s3319_s21   ;;  %s3319_s21 = sphi %s3371_s21, %s5669_s21   ;;  %s3315_s20 = sphi %s3369_s20, %s5666_s20   ;;  %s3311_s19 = sphi %s3367_s19, %s5668_s19   ;;  %s3307_s18 = sphi %s3365_s18, %s5667_s18  }
   0x6   : > { %s3387_s23 = sadd.s32 1, %s3319_s21   ;;  %s54_s25 = sadd.s32 1, %s3315_s20 }
   0x7   : > { %s51_s24 = ssub.s32 %s3319_s21, %s3387_s23  ;;  %p61_p1 = scmp.ne.s32.totalorder %s3315_s20, %s3311_s19 }
   0x8   : > { %p52_p0 = scmp.eq.s32.totalorder %s51_s24, 0  ;;  %p62_p2 = scmp.eq.s32.totalorder %s3319_s21, 0 }
   0x9   : > { %p67_p3 = scmp.ne.s32.totalorder %s3311_s19, %s3307_s18  ;;  %p68_p5 = scmp.eq.s32.totalorder %s3384_s22, 0 }
   0xa   : > { %s3397_s26 = scalar_select %p52_p0, %s3315_s20, %s54_s25  }
   0xb   : > { %p3399_p4 = por %p62_p2, %p61_p1  ;;  %p3404_p6 = por %p68_p5, %p67_p3 }
   0xc   : > { %5523 = sst [smem:[#allocation13_spill]] %s3397_s26  ;;  %p2732_p7 = scmp.ge.s32.totalorder %s3319_s21, 2 }
   0xd   : > { %s3410_s29 = sand.u32 (!%p2732_p7), 1, %s3315_s20   ;;  %s2834_s30 = sshll.u32 (!%p2732_p7), %s3319_s21, 7 }
   0xe   : > { %191 = sbr.rel (%p2732_p7) target bundleno = 59 (0x3b), region = 16  ;;  %s2733_s6 = sshll.u32 (!%p2732_p7), %s3410_s29, 7 }
   0xf   : > { %s213_s9 = scalar_lea.hbm (!%p2732_p7), %s5453_s1, %s2834_s30  ;;  %s208_s11 = scalar_lea.vmem (!%p2732_p7), [#allocation2], %s2733_s6 }
  0x10   : > { %s214_s10 = sshll.u32 (!%p2732_p7), %s213_s9, 4  ;;  %s216_s12 = sshll.u32 (!%p2732_p7), %s208_s11, 4  ;;  %s215_s10 = int_to_ptr.hbm [resolvable:$true] %s214_s10  ;;  %s217_s12 = int_to_ptr.vmem [resolvable:$true] %s216_s12 }
  0x11   : > { %s205_s13 = scalar_lea.sflag (!%p2732_p7), [#allocation3], %s3410_s29  ;;  %s3225_s14 = sshra.s32 (!%p2732_p7), %s215_s10, 4  ;;  %s3226_s14 = int_to_ptr.hbm [resolvable:$true] %s3225_s14 }
  0x12   : > { %s3227_s15 = scalar_lea.hbm (!%p2732_p7), %s3226_s14, 128  ;;  %s3231_s18 = scalar_lea.hbm (!%p2732_p7), %s5453_s1, 256 }
  0x13   : > { %p3228_p8 = scmp.ne.s32.totalorder %s3226_s14, %s3227_s15  ;;  %p3232_p11 = scmp.lt.s32.totalorder %s3226_s14, %s5453_s1 }
  0x14   : > { %p3233_p12 = scmp.lt.s32.totalorder %s3231_s18, %s3227_s15 }
  0x15   : > { %p3229_p9 = pnand %p3228_p8, %p3399_p4 }
  0x16   : > { %p3234_p13 = por %p3233_p12, %p3232_p11 }
  0x17   : > { %p3230_p10 = pneg %p3229_p9 }
  0x19   : > { %p3235_p0 = pnand %p3234_p13, %p3230_p10 }
  0x1b   : > { %3238 = shalt.err (!%p3235_p0)
}
  0x1c   : > { %s3321_s7 = smov 128   ;;  %s3322_s8 = smov 8  }
  0x1d   : > { %2990 = dma.hbm_to_vmem [thread:$0]  (%p3399_p4), %s215_s10, 2048, %s217_s12, %s205_s13, %s3321_s7, %s3321_s7, %s3322_s8  }
  0x1e   : > { %s226_s9 = sand.u32 1, %s3319_s21   ;;  %s235_s16 = scalar_lea.hbm %s5454_s2, %s2834_s30 }
  0x1f   : > { %s236_s17 = sshll.u32 %s235_s16, 4  ;;  %s230_s20 = scalar_lea.vmem [#allocation4], %s2733_s6  ;;  %s237_s17 = int_to_ptr.hbm [resolvable:$true] %s236_s17 }
  0x20   : > { %s238_s24 = sshll.u32 %s230_s20, 4  ;;  %s3432_s14 = scalar_lea.sflag [#allocation5], %s226_s9  ;;  %s239_s24 = int_to_ptr.vmem [resolvable:$true] %s238_s24 }
  0x21   : > { %s3253_s15 = sshra.s32 %s237_s17, 4  ;;  %s3259_s13 = scalar_lea.hbm %s5454_s2, 256  ;;  %s3254_s15 = int_to_ptr.hbm [resolvable:$true] %s3253_s15 }
  0x22   : > { %s3255_s18 = scalar_lea.hbm %s3254_s15, 128  ;;  %p3260_p5 = scmp.lt.s32.totalorder %s3254_s15, %s5454_s2 }
  0x23   : > { %p3256_p1 = scmp.ne.s32.totalorder %s3254_s15, %s3255_s18  ;;  %p3261_p7 = scmp.lt.s32.totalorder %s3259_s13, %s3255_s18 }
  0x25   : > { %p3257_p2 = pnand %p3256_p1, %p3399_p4  ;;  %p3262_p8 = por %p3261_p7, %p3260_p5 }
  0x27   : > { %p3258_p3 = pneg %p3257_p2 }
  0x29   : > { %p3263_p9 = pnand %p3262_p8, %p3258_p3 }
  0x2b   : > { %3266 = shalt.err (!%p3263_p9)
}
  0x2c   : > { %2991 = dma.hbm_to_vmem [thread:$0]  (%p3399_p4), %s237_s17, 2048, %s239_s24, %s3432_s14, %s3321_s7, %s3321_s7, %s3322_s8  }
  0x2d   : > { %s2988_s20 = smul.u32 192, %s3410_s29  ;;  %s2836_s6 = sshll.u32 %s3319_s21, 6 }
  0x2e   : > { %s257_s11 = scalar_lea.hbm %s5455_s3, %s2836_s6  ;;  %s3323_s24 = smov 2048  }
  0x2f   : > { %s270_s16 = sshll.u32 %s257_s11, 4  ;;  %s252_s7 = scalar_lea.vmem [#allocation6], %s2988_s20  ;;  %s271_s16 = int_to_ptr.hbm [resolvable:$true] %s270_s16 }
  0x30   : > { %s2992_s15 = scalar_select %p3399_p4, [#allocation0], [#allocation9] }
  0x31   : > { %s272_s8 = sshll.u32 %s252_s7, 4  ;;  %2993 = sst [smem:[#allocation8]] (%p3399_p4), %s3323_s24  ;;  %s273_s8 = int_to_ptr.vmem [resolvable:$true] %s272_s8 }
  0x32   : > { %s262_s17 = sld [smem:[%s2992_s15]]   ;;  %s3324_s29 = smov 1024  }
  0x33   : > { %2994 = sst [smem:[#allocation8 + $0x1]] (%p3399_p4), %s3324_s29  ;;  %s3325_s18 = smov 16  }
  0x34   : > { %2995 = sst [smem:[#allocation8 + $0x2]] (%p3399_p4), %s3325_s18  ;;  %s3326_s10 = smov 64  }
  0x35   : > { %2996 = sst [smem:[#allocation8 + $0x3]] (%p3399_p4), %s3326_s10  ;;  %s3327_s13 = smov 4  }
  0x36   : > { %2997 = sst [smem:[#allocation8 + $0x4]] (%p3399_p4), %s3326_s10  ;;  %s3328_s30 = smov [#allocation7]  }
  0x37   : > { %2998 = sst [smem:[#allocation8 + $0x5]] (%p3399_p4), %s3327_s13 }
  0x38   : > { %s2741_s12 = sshll.u32 %s262_s17, 26 }
  0x39   : > { %s2742_s26 = sadd.s32 134217728, %s2741_s12 }
  0x3a   : > { %2999 = dma.general (%p3399_p4), %s271_s16, 3072, %s273_s8, %s3432_s14, %s3328_s30, [#allocation8], %s2742_s26, 0  }
  0x3b PF: > { %p2743_p10 = scmp.ge.s32.totalorder %s3319_s21, 1  ;;  %p302_p11 = scmp.lt.s32.totalorder %s3319_s21, 3 }
  0x3d   : > { %p303_p12 = pnand %p2743_p10, %p302_p11 }
  0x3f   : > { %306 = sbr.rel (%p303_p12) target bundleno = 912 (0x390), region = 40 }
  0x44   : > { %s3470_s20 = sand.u32 1, %s3311_s19  }
  0x45   : > { %s2744_s6 = sshll.u32 %s3470_s20, 7  ;;  %s309_s25 = scalar_lea.sflag [#allocation3], %s3470_s20 }
  0x46   : > { %s3474_s9 = scalar_lea.vmem [#allocation2], %s2744_s6 }
  0x47   : > { %3298 = dma.done.wait (%p3404_p6), %s309_s25, 2048  }
  0x48   : > { %3300 = vsyncadd (%p3404_p6), %s309_s25, 4294965248  ;;  %s318_s21 = sand.u32 1, %s3384_s22   ;;  %s3481_s14 = scalar_lea.vmem [#allocation4], %s2744_s6 }
  0x49   : > { %s319_s27 = scalar_lea.sflag [#allocation5], %s318_s21 }
  0x4a   : > { %3302 = dma.done.wait (%p3404_p6), %s319_s27, 5120  }
  0x4b   : > { %3304 = vsyncadd (%p3404_p6), %s319_s27, 4294962176  ;;  %s2746_s11 = sshll.u32 %s3384_s22, 4  ;;  %s3329_s22 = smov 127   ;;  %v3330_v3 = vmov 2   ;;  %v449_v33 = vlaneseq  ;;  %v5471_v40 = vmov 0.0  }
  0x4c   : > { %p381_p4 = scmp.lt.s32.totalorder %s2746_s11, 31  ;;  %3050 = vset.pattern.permute.xlu2 %v3330_v3  ;;  %3049 = vset.pattern.permute.xlu1 %v3330_v3  ;;  %s2989_s29 = smul.u32 192, %s3470_s20 }
  0x4d   : > { %3051 = vset.pattern.permute.xlu0 %v3330_v3  ;;  %v3648_v35 = vshrl.u32 %v449_v33, 7  ;;  %v3650_v36 = vand.u32 127, %v449_v33 }
  0x4e   : > { %s5671_s11 = smov (!%p381_p4, %s2746_s11), 31  ;;  %s4700_s18 = scalar_lea.vmem [#allocation6], %s2989_s29 }
  0x4f   : > { %s3488_s16 = sshll.u32 %s5671_s11, 3  ;;  %5543 = vst [vmem:[#allocation31_spill] sm:$0xff] %v3650_v36  ;;  %v724_v37 = vadd.s32 120, %v3648_v35  ;;  %v723_v39 = vadd.s32 112, %v3648_v35  ;;  %v722_v44 = vadd.s32 104, %v3648_v35  ;;  %v721_v50 = vadd.s32 96, %v3648_v35 }
  0x50   : > { %s3494_s8 = scalar_lea.vmem %s5452_s0, %s3488_s16  ;;  %s3575_s24 = scalar_lea.vmem %s5456_s4, %s3488_s16  ;;  %v720_v57 = vadd.s32 88, %v3648_v35  ;;  %v719_v63 = vadd.s32 80, %v3648_v35  ;;  %vm3923_vm15 = vcmp.lt.s32.totalorder %v3648_v35, %v3650_v36 }
  0x51   : > { %v3497_v0 = vld [vmem:[%s3494_s8 + $0x20] sm:$0xff]  ;;  %v3500_v1 = vld [vmem:[%s3494_s8 + $0x10] sm:$0xff]  ;;  %v3512_v4 = vld [vmem:[%s3494_s8 + $0x28] sm:$0xff]  ;;  %vm3654_vm0 = vcmp.lt.s32.totalorder %v724_v37, %v3650_v36  ;;  %vm3665_vm1 = vcmp.lt.s32.totalorder %v723_v39, %v3650_v36  ;;  %vm3679_vm2 = vcmp.lt.s32.totalorder %v722_v44, %v3650_v36  ;;  %vm3694_vm3 = vcmp.lt.s32.totalorder %v721_v50, %v3650_v36  ;;  %s5328_s13 = scalar_lea.vmem %s5457_s5, %s3488_s16 }
  0x52   : > { %v3503_v2 = vld [vmem:[%s3494_s8] sm:$0xff]  ;;  %459 = vrot.lane.b32.xlu2 %v3497_v0, %s3329_s22  ;;  %455 = vrot.lane.b32.xlu1 %v3500_v1, %s3329_s22  ;;  %5526 = vst [vmem:[#allocation14_spill] sm:$0xff] %v3512_v4  ;;  %v3515_v5 = vld [vmem:[%s3494_s8 + $0x18] sm:$0xff]  ;;  %v2767_v41 = vsel %vm3654_vm0, 1.0, %v5471_v40  ;;  %v2766_v45 = vsel %vm3665_vm1, 1.0, %v5471_v40  ;;  %v2765_v51 = vsel %vm3679_vm2, 1.0, %v5471_v40  ;;  %vm3709_vm4 = vcmp.lt.s32.totalorder %v720_v57, %v3650_v36 }
  0x53   : > { %451 = vrot.lane.b32.xlu0 %v3503_v2, %s3329_s22  ;;  %v3518_v6 = vld [vmem:[%s3494_s8 + $0x8] sm:$0xff]  ;;  %v3527_v7 = vld [vmem:[%s3494_s8 + $0x40] sm:$0xff]  ;;  %v3530_v8 = vld [vmem:[%s3494_s8 + $0x38] sm:$0xff]  ;;  %v3662_v42 = vsub.f32 %v2767_v41, %v2767_v41  ;;  %v3676_v48 = vsub.f32 %v2766_v45, %v2766_v45  ;;  %v3691_v54 = vsub.f32 %v2765_v51, %v2765_v51  ;;  %v2764_v56 = vsel %vm3694_vm3, 1.0, %v5471_v40 }
  0x54   : > { %5527 = vst [vmem:[#allocation15_spill] sm:$0xff] %v3527_v7  ;;  %v3533_v9 = vld [vmem:[%s3494_s8 + $0x30] sm:$0xff]  ;;  %v3542_v10 = vld [vmem:[%s3494_s8 + $0x58] sm:$0xff]  ;;  %v3548_v12 = vld [vmem:[%s3494_s8 + $0x48] sm:$0xff]  ;;  %v3706_v61 = vsub.f32 %v2764_v56, %v2764_v56  ;;  %v2763_v39 = vsel %vm3709_vm4, 1.0, %v5471_v40  ;;  %vm3724_vm5 = vcmp.lt.s32.totalorder %v719_v63, %v3650_v36  ;;  %v718_v45 = vadd.s32 72, %v3648_v35 }
  0x55   : > { %5528 = vst [vmem:[#allocation16_spill] sm:$0xff] %v3530_v8  ;;  %v3545_v11 = vld [vmem:[%s3494_s8 + $0x50] sm:$0xff]  ;;  %v3560_v14 = vld [vmem:[%s3494_s8 + $0x68] sm:$0xff]  ;;  %v3563_v15 = vld [vmem:[%s3494_s8 + $0x60] sm:$0xff]  ;;  %v5463_v47 = vand.u32 4294901760, %v3662_v42  ;;  %v5461_v53 = vand.u32 4294901760, %v3676_v48  ;;  %v3721_v41 = vsub.f32 %v2763_v39, %v2763_v39 }
  0x56   : > { %5529 = vst [vmem:[#allocation17_spill] sm:$0xff] %v3533_v9  ;;  %v3557_v13 = vld [vmem:[%s3494_s8 + $0x70] sm:$0xff]  ;;  %v3578_v16 = vld [vmem:[%s3575_s24 + $0x8] sm:$0xff]  ;;  %v3581_v17 = vld [vmem:[%s3575_s24] sm:$0xff]  ;;  %v5460_v60 = vand.u32 4294901760, %v3691_v54  ;;  %v5459_v37 = vand.u32 4294901760, %v3706_v61  ;;  %vm3740_vm6 = vcmp.lt.s32.totalorder %v718_v45, %v3650_v36 }
  0x57   : > { %5530 = vst [vmem:[#allocation18_spill] sm:$0xff] %v3542_v10  ;;  %v3584_v18 = vld [vmem:[%s3494_s8 + $0x78] sm:$0xff]  ;;  %v3591_v19 = vld [vmem:[%s3575_s24 + $0x20] sm:$0xff]  ;;  %v3597_v21 = vld [vmem:[%s3575_s24 + $0x10] sm:$0xff]  ;;  %v937_v52 = vsub.f32 %v3662_v42, %v5463_v47  ;;  %v943_v59 = vsub.f32 %v3676_v48, %v5461_v53  ;;  %v717_v56 = vadd.s32 64, %v3648_v35  ;;  %v5462_v57 = vand.u32 4294901760, %v3721_v41 }
  0x58   : > { %5531 = vst [vmem:[#allocation19_spill] sm:$0xff] %v3545_v11  ;;  %v3594_v20 = vld [vmem:[%s3575_s24 + $0x18] sm:$0xff]  ;;  %v3603_v22 = vld [vmem:[%s3575_s24 + $0x30] sm:$0xff]  ;;  %v3606_v23 = vld [vmem:[%s3575_s24 + $0x28] sm:$0xff]  ;;  %v949_v33 = vsub.f32 %v3691_v54, %v5460_v60  ;;  %v955_v51 = vsub.f32 %v3706_v61, %v5459_v37  ;;  %v2761_v39 = vsel %vm3740_vm6, 1.0, %v5471_v40  ;;  %v5583_v38 = vand.u32 4294901760, %v3662_v42 }
  0x59   : > { %5532 = vst [vmem:[#allocation20_spill] sm:$0xff] %v3557_v13  ;;  %v3609_v24 = vld [vmem:[%s3575_s24 + $0x38] sm:$0xff]  ;;  %v3615_v25 = vld [vmem:[%s3575_s24 + $0x48] sm:$0xff]  ;;  %v3618_v26 = vld [vmem:[%s3575_s24 + $0x40] sm:$0xff]  ;;  %v938_v58 = vand.u32 4294901760, %v937_v52  ;;  %v944_v3 = vand.u32 4294901760, %v943_v59  ;;  %vm3750_vm7 = vcmp.lt.s32.totalorder %v717_v56, %v3650_v36  ;;  %v961_v45 = vsub.f32 %v3721_v41, %v5462_v57 }
  0x5a   : > { %461 = vrot.lane.b32.xlu2 %v3512_v4, %s3329_s22  ;;  %457 = vrot.lane.b32.xlu1 %v3515_v5, %s3329_s22  ;;  %5533 = vst [vmem:[#allocation21_spill] sm:$0xff] %v3560_v14  ;;  %v3621_v27 = vld [vmem:[%s3575_s24 + $0x50] sm:$0xff]  ;;  %v3627_v28 = vld [vmem:[%s3575_s24 + $0x60] sm:$0xff]  ;;  %v950_v50 = vand.u32 4294901760, %v949_v33  ;;  %v2762_v52 = vsel %vm3724_vm5, 1.0, %v5471_v40  ;;  %v956_v33 = vand.u32 4294901760, %v955_v51  ;;  %v3759_v60 = vsub.f32 %v2761_v39, %v2761_v39 }
  0x5b   : > { %453 = vrot.lane.b32.xlu0 %v3518_v6, %s3329_s22  ;;  %5534 = vst [vmem:[#allocation22_spill] sm:$0xff] %v3563_v15  ;;  %v3630_v29 = vld [vmem:[%s3575_s24 + $0x58] sm:$0xff]  ;;  %v3633_v30 = vld [vmem:[%s3575_s24 + $0x68] sm:$0xff]  ;;  %v3642_v32 = vld [vmem:[%s3575_s24 + $0x70] sm:$0xff]  ;;  %939 = vmatpush.msra.mxu1 %v938_v58  ;;  %v2760_v51 = vsel %vm3750_vm7, 1.0, %v5471_v40  ;;  %v962_v57 = vand.u32 4294901760, %v961_v45 }
  0x5c   : > { %5535 = vst [vmem:[#allocation23_spill] sm:$0xff] %v3584_v18  ;;  %v3639_v31 = vld [vmem:[%s3575_s24 + $0x78] sm:$0xff]  ;;  %2972 = vmatpush.msra.mxu3 %v938_v58  ;;  %v3737_v58 = vsub.f32 %v2762_v52, %v2762_v52  ;;  %v716_v52 = vadd.s32 56, %v3648_v35  ;;  %v3764_v56 = vsub.f32 %v2760_v51, %v2760_v51  ;;  %v5470_v47 = vand.u32 4294901760, %v3759_v60  ;;  %v427_v4 = vld [vmem:[%s3474_s9 + $0x50] sm:$0xff] }
  0x5d   : > { %5536 = vst [vmem:[#allocation24_spill] sm:$0xff] %v3615_v25  ;;  %945 = vmatpush.msra.mxu1 %v944_v3  ;;  %v714_v45 = vadd.s32 40, %v3648_v35  ;;  %v5584_v43 = vand.u32 4294901760, %v3676_v48 }
  0x5e   : > { %5537 = vst [vmem:[#allocation25_spill] sm:$0xff] %v3618_v26  ;;  %2973 = vmatpush.msra.mxu3 %v944_v3  ;;  %v5465_v37 = vand.u32 4294901760, %v3737_v58  ;;  %vm3767_vm8 = vcmp.lt.s32.totalorder %v716_v52, %v3650_v36  ;;  %v973_v52 = vsub.f32 %v3759_v60, %v5470_v47  ;;  %v713_v47 = vadd.s32 32, %v3648_v35 }
  0x5f   : > { %5538 = vst [vmem:[#allocation26_spill] sm:$0xff] %v3627_v28  ;;  %951 = vmatpush.msra.mxu1 %v950_v50  ;;  %v2759_v51 = vsel %vm3767_vm8, 1.0, %v5471_v40  ;;  %vm3811_vm10 = vcmp.lt.s32.totalorder %v714_v45, %v3650_v36  ;;  %v712_v45 = vadd.s32 24, %v3648_v35 }
  0x60   : > { %5539 = vst [vmem:[#allocation27_spill] sm:$0xff] %v3630_v29  ;;  %2974 = vmatpush.msra.mxu3 %v950_v50  ;;  %v715_v50 = vadd.s32 48, %v3648_v35  ;;  %v967_v39 = vsub.f32 %v3737_v58, %v5465_v37  ;;  %vm3838_vm11 = vcmp.lt.s32.totalorder %v713_v47, %v3650_v36  ;;  %v711_v47 = vadd.s32 16, %v3648_v35 }
  0x61   : > { %5540 = vst [vmem:[#allocation28_spill] sm:$0xff] %v3633_v30  ;;  %957 = vmatpush.msra.mxu1 %v956_v33  ;;  %vm3862_vm12 = vcmp.lt.s32.totalorder %v712_v45, %v3650_v36 }
  0x62   : > { %467 = vrot.lane.b32.xlu2 %v3527_v7, %s3329_s22  ;;  %465 = vrot.lane.b32.xlu1 %v3530_v8, %s3329_s22  ;;  %5541 = vst [vmem:[#allocation29_spill] sm:$0xff] %v3639_v31  ;;  %vm3784_vm9 = vcmp.lt.s32.totalorder %v715_v50, %v3650_v36  ;;  %v968_v37 = vand.u32 4294901760, %v967_v39  ;;  %vm3873_vm13 = vcmp.lt.s32.totalorder %v711_v47, %v3650_v36 }
  0x63   : > { %463 = vrot.lane.b32.xlu0 %v3533_v9, %s3329_s22  ;;  %5542 = vst [vmem:[#allocation30_spill] sm:$0xff] %v3642_v32  ;;  %2975 = vmatpush.msra.mxu3 %v956_v33  ;;  %v2758_v50 = vsel %vm3784_vm9, 1.0, %v5471_v40  ;;  %v974_v40 = vand.u32 4294901760, %v973_v52  ;;  %v5597_v9 = vld [vmem:[#allocation15_spill] sm:$0xff] }
  0x64   : > { %963 = vmatpush.msra.mxu1 %v962_v57 }
  0x65   : > { %2976 = vmatpush.msra.mxu3 %v962_v57 }
  0x66   : > { %969 = vmatpush.msra.mxu1 %v968_v37 }
  0x67   : > { %2977 = vmatpush.msra.mxu3 %v968_v37 }
  0x68   : > { %975 = vmatpush.msra.mxu1 %v974_v40 }
  0x69   : > { %2978 = vmatpush.msra.mxu3 %v974_v40 }
  0x6a   : > { %473 = vrot.lane.b32.xlu2 %v3542_v10, %s3329_s22  ;;  %471 = vrot.lane.b32.xlu1 %v3545_v11, %s3329_s22  ;;  %v710_v11 = vadd.s32 8, %v3648_v35 }
  0x6b   : > { %469 = vrot.lane.b32.xlu0 %v3548_v12, %s3329_s22 }
  0x6c   : > { %vm3911_vm14 = vcmp.lt.s32.totalorder %v710_v11, %v3650_v36 }
  0x72   : > { %479 = vrot.lane.b32.xlu2 %v3557_v13, %s3329_s22  ;;  %477 = vrot.lane.b32.xlu1 %v3560_v14, %s3329_s22  ;;  %v3795_v13 = vsub.f32 %v2759_v51, %v2759_v51 }
  0x73   : > { %475 = vrot.lane.b32.xlu0 %v3563_v15, %s3329_s22 }
  0x74   : > { %v5478_v8 = vand.u32 4294901760, %v3795_v13 }
  0x76   : > { %v985_v37 = vsub.f32 %v3795_v13, %v5478_v8 }
  0x78   : > { %v986_v40 = vand.u32 4294901760, %v985_v37  ;;  %v5603_v37 = vld [vmem:[#allocation24_spill] sm:$0xff] }
  0x7a   : > { %507 = vperm.xlu2 %3050, %v3578_v16   ;;  %502 = vperm.xlu1 %3049, %v3581_v17  }
  0x7b   : > { %481 = vrot.lane.b32.xlu0 %v3584_v18, %s3329_s22  ;;  %v3332_v18 = vmov 1.0  }
  0x7c   : > { %2768 = vmatpush.msk.msra.mxu0 %vm3654_vm0, %v3332_v18  ;;  %2956 = vmatpush.msk.msra.mxu2 %vm3654_vm0, %v3332_v18 }
  0x7e   : > { %2769 = vmatpush.msk.msra.mxu0 %vm3665_vm1, %v3332_v18  ;;  %2957 = vmatpush.msk.msra.mxu2 %vm3665_vm1, %v3332_v18 }
  0x80   : > { %2770 = vmatpush.msk.msra.mxu0 %vm3679_vm2, %v3332_v18  ;;  %2958 = vmatpush.msk.msra.mxu2 %vm3679_vm2, %v3332_v18 }
  0x82   : > { %522 = vperm.xlu2 %3050, %v3591_v19   ;;  %517 = vperm.xlu1 %3049, %v3594_v20  }
  0x83   : > { %512 = vperm.xlu0 %3051, %v3597_v21   ;;  %2771 = vmatpush.msk.msra.mxu0 %vm3694_vm3, %v3332_v18 }
  0x84   : > { %2959 = vmatpush.msk.msra.mxu2 %vm3694_vm3, %v3332_v18 }
  0x85   : > { %2772 = vmatpush.msk.msra.mxu0 %vm3709_vm4, %v3332_v18 }
  0x86   : > { %2960 = vmatpush.msk.msra.mxu2 %vm3709_vm4, %v3332_v18 }
  0x87   : > { %2773 = vmatpush.msk.msra.mxu0 %vm3724_vm5, %v3332_v18 }
  0x88   : > { %2961 = vmatpush.msk.msra.mxu2 %vm3724_vm5, %v3332_v18 }
  0x89   : > { %2774 = vmatpush.msk.msra.mxu0 %vm3740_vm6, %v3332_v18 }
  0x8a   : > { %532 = vperm.xlu2 %3050, %v3603_v22   ;;  %527 = vperm.xlu1 %3049, %v3606_v23  }
  0x8b   : > { %537 = vperm.xlu0 %3051, %v3609_v24   ;;  %2962 = vmatpush.msk.msra.mxu2 %vm3740_vm6, %v3332_v18 }
  0x8c   : > { %2775 = vmatpush.msk.msra.mxu0 %vm3750_vm7, %v3332_v18 }
  0x8d   : > { %2963 = vmatpush.msk.msra.mxu2 %vm3750_vm7, %v3332_v18 }
  0x8e   : > { %2776 = vmatpush.msk.msra.mxu0 %vm3767_vm8, %v3332_v18 }
  0x8f   : > { %2964 = vmatpush.msk.msra.mxu2 %vm3767_vm8, %v3332_v18 }
  0x90   : > { %2777 = vmatpush.msk.msra.mxu0 %vm3784_vm9, %v3332_v18 }
  0x91   : > { %2965 = vmatpush.msk.msra.mxu2 %vm3784_vm9, %v3332_v18 }
  0x92   : > { %547 = vperm.xlu2 %3050, %v3615_v25   ;;  %542 = vperm.xlu1 %3049, %v3618_v26  }
  0x93   : > { %552 = vperm.xlu0 %3051, %v3621_v27   ;;  %2778 = vmatpush.msk.msra.mxu0 %vm3811_vm10, %v3332_v18 }
  0x94   : > { %2966 = vmatpush.msk.msra.mxu2 %vm3811_vm10, %v3332_v18 }
  0x95   : > { %2779 = vmatpush.msk.msra.mxu0 %vm3838_vm11, %v3332_v18 }
  0x96   : > { %2967 = vmatpush.msk.msra.mxu2 %vm3838_vm11, %v3332_v18 }
  0x97   : > { %2780 = vmatpush.msk.msra.mxu0 %vm3862_vm12, %v3332_v18 }
  0x98   : > { %2968 = vmatpush.msk.msra.mxu2 %vm3862_vm12, %v3332_v18 }
  0x99   : > { %2781 = vmatpush.msk.msra.mxu0 %vm3873_vm13, %v3332_v18 }
  0x9a   : > { %562 = vperm.xlu2 %3050, %v3627_v28   ;;  %557 = vperm.xlu1 %3049, %v3630_v29  }
  0x9b   : > { %567 = vperm.xlu0 %3051, %v3633_v30   ;;  %2969 = vmatpush.msk.msra.mxu2 %vm3873_vm13, %v3332_v18 }
  0x9c   : > { %2782 = vmatpush.msk.msra.mxu0 %vm3911_vm14, %v3332_v18 }
  0x9d   : > { %2970 = vmatpush.msk.msra.mxu2 %vm3911_vm14, %v3332_v18 }
  0x9e   : > { %2783 = vmatpush.msk.msra.mxu0 %vm3923_vm15, %v3332_v18 }
  0x9f   : > { %2971 = vmatpush.msk.msra.mxu2 %vm3923_vm15, %v3332_v18 }
  0xa0   : > { %1356 = vmatpush.msrb.mxu0 %v5583_v38 }
  0xa1   : > { %1097 = vmatpush.msrb.mxu2 %v3662_v42  ;;  %v5585_v42 = vand.u32 4294901760, %v3691_v54 }
  0xa2   : > { %577 = vperm.xlu2 %3050, %v3639_v31   ;;  %572 = vperm.xlu1 %3049, %v3642_v32   ;;  %v5566_v31 = vand.u32 4294901760, %v3764_v56  ;;  %v3808_v32 = vsub.f32 %v2758_v50, %v2758_v50  ;;  %v5569_v50 = vmov 0.0  }
  0xa3   : > { %v2757_v15 = vsel %vm3811_vm10, 1.0, %v5569_v50  ;;  %v2755_v30 = vsel %vm3862_vm12, 1.0, %v5569_v50  ;;  %v2752_v35 = vsel %vm3923_vm15, 1.0, %v5569_v50  ;;  %1360 = vmatpush.msrb.mxu0 %v5584_v43  ;;  %1100 = vmatpush.msrb.mxu2 %v3676_v48  ;;  %v5586_v48 = vand.u32 4294901760, %v3706_v61 }
  0xa4   : > { %v979_v39 = vsub.f32 %v3764_v56, %v5566_v31  ;;  %v3835_v52 = vsub.f32 %v2757_v15, %v2757_v15  ;;  %v5573_v29 = vand.u32 4294901760, %v3808_v32  ;;  %v2756_v15 = vsel %vm3838_vm11, 1.0, %v5569_v50 }
  0xa5   : > { %v3859_v10 = vsub.f32 %v2756_v15, %v2756_v15  ;;  %v3884_v45 = vsub.f32 %v2755_v30, %v2755_v30  ;;  %v2754_v15 = vsel %vm3873_vm13, 1.0, %v5569_v50  ;;  %1364 = vmatpush.msrb.mxu0 %v5585_v42  ;;  %1103 = vmatpush.msrb.mxu2 %v3691_v54  ;;  %v5587_v54 = vand.u32 4294901760, %v3721_v41 }
  0xa6   : > { %v980_v31 = vand.u32 4294901760, %v979_v39  ;;  %v991_v8 = vsub.f32 %v3808_v32, %v5573_v29  ;;  %v3894_v25 = vsub.f32 %v2754_v15, %v2754_v15 }
  0xa7   : > { %v5490_v15 = vand.u32 4294901760, %v3884_v45  ;;  %1368 = vmatpush.msrb.mxu0 %v5586_v48  ;;  %1106 = vmatpush.msrb.mxu2 %v3706_v61  ;;  %v5590_v48 = vand.u32 4294901760, %v3764_v56 }
  0xa8   : > { %981 = vmatpush.msra.mxu1 %v980_v31  ;;  %2979 = vmatpush.msra.mxu3 %v980_v31  ;;  %v992_v29 = vand.u32 4294901760, %v991_v8  ;;  %v5486_v8 = vand.u32 4294901760, %v3859_v10 }
  0xa9   : > { %v1009_v11 = vsub.f32 %v3884_v45, %v5490_v15  ;;  %1372 = vmatpush.msrb.mxu0 %v5587_v54  ;;  %1109 = vmatpush.msrb.mxu2 %v3721_v41  ;;  %v5589_v41 = vand.u32 4294901760, %v3759_v60 }
  0xaa   : > { %987 = vmatpush.msra.mxu1 %v986_v40  ;;  %2980 = vmatpush.msra.mxu3 %v986_v40  ;;  %v1003_v40 = vsub.f32 %v3859_v10, %v5486_v8 }
  0xab   : > { %1112 = vmatpush.msrb.mxu2 %v3737_v58 }
  0xac   : > { %v3646_v34 = vpop.permute.xlu2 %459  ;;  %993 = vmatpush.msra.mxu1 %v992_v29  ;;  %2981 = vmatpush.msra.mxu3 %v992_v29  ;;  %v2753_v29 = vsel %vm3911_vm14, 1.0, %v5569_v50 }
  0xad   : > { %v3936_v26 = vsub.f32 %v2753_v29, %v2753_v29  ;;  %v1010_v29 = vand.u32 4294901760, %v1009_v11  ;;  %1115 = vmatpush.msrb.mxu2 %v3759_v60 }
  0xaf   : > { %v1020_v15 = vand.u32 4294901760, %v3936_v26  ;;  %1118 = vmatpush.msrb.mxu2 %v3764_v56 }
  0xb1   : > { %1121 = vmatpush.msrb.mxu2 %v3795_v13 }
  0xb3   : > { %1124 = vmatpush.msrb.mxu2 %v3808_v32 }
  0xb4   : > { %v3673_v46 = vpop.permute.xlu2 %461 }
  0xb5   : > { %5548 = vst [vmem:[#allocation32_spill] sm:$0xff] %v3673_v46  ;;  %v5489_v46 = vand.u32 4294901760, %v3894_v25  ;;  %1127 = vmatpush.msrb.mxu2 %v3835_v52 }
  0xb7   : > { %1130 = vmatpush.msrb.mxu2 %v3859_v10 }
  0xb9   : > { %1133 = vmatpush.msrb.mxu2 %v3884_v45 }
  0xbb   : > { %1136 = vmatpush.msrb.mxu2 %v3894_v25 }
  0xbc   : > { %v3744_v63 = vpop.permute.xlu2 %467 }
  0xbd   : > { %5559 = vst [vmem:[#allocation33_spill] sm:$0xff] %v3744_v63  ;;  %1139 = vmatpush.msrb.mxu2 %v3936_v26 }
  0xc4   : > { %v3800_v14 = vpop.permute.xlu1 %455  ;;  %v3843_v28 = vpop.permute.xlu2 %473 }
  0xc5   : > { %v3819_v57 = vpop.permute.xlu0 %451  ;;  %5572 = vst [vmem:[#allocation34_spill] sm:$0xff] %v3843_v28  ;;  %v5484_v28 = vand.u32 4294901760, %v3835_v52  ;;  %v486_v3 = vsub.f32 %v3800_v14, %v3500_v1  ;;  %v5591_v1 = vand.u32 4294901760, %v3795_v13  ;;  %v419_v14 = vld [vmem:[%s3474_s9 + $0x10] sm:$0xff] }
  0xc6   : > { %v484_v61 = vsub.f32 %v3819_v57, %v3503_v2  ;;  %v5588_v57 = vand.u32 4294901760, %v3737_v58 }
  0xc7   : > { %v997_v31 = vsub.f32 %v3835_v52, %v5484_v28 }
  0xc8   : > { %1376 = vmatpush.msrb.mxu0 %v5588_v57 }
  0xc9   : > { %v998_v28 = vand.u32 4294901760, %v997_v31  ;;  %v1004_v31 = vand.u32 4294901760, %v1003_v40  ;;  %v1015_v40 = vsub.f32 %v3894_v25, %v5489_v46 }
  0xca   : > { %1380 = vmatpush.msrb.mxu0 %v5589_v41  ;;  %v5594_v41 = vand.u32 4294901760, %v3859_v10  ;;  %v5598_v10 = vld [vmem:[#allocation33_spill] sm:$0xff] }
  0xcb   : > { %999 = vmatpush.msra.mxu1 %v998_v28  ;;  %2982 = vmatpush.msra.mxu3 %v998_v28  ;;  %v3944_v28 = vsub.f32 %v2752_v35, %v2752_v35  ;;  %v1016_v46 = vand.u32 4294901760, %v1015_v40 }
  0xcc   : > { %v3889_v47 = vpop.permute.xlu1 %457  ;;  %v3946_v63 = vpop.permute.xlu2 %479  ;;  %1384 = vmatpush.msrb.mxu0 %v5590_v48  ;;  %v5607_v8 = vld [vmem:[#allocation34_spill] sm:$0xff] }
  0xcd   : > { %v3900_v30 = vpop.permute.xlu0 %453  ;;  %1005 = vmatpush.msra.mxu1 %v1004_v31  ;;  %2983 = vmatpush.msra.mxu3 %v1004_v31  ;;  %5582 = vst [vmem:[#allocation35_spill] sm:$0xff] %v3946_v63  ;;  %v1026_v50 = vand.u32 4294901760, %v3944_v28  ;;  %v1021_v31 = vsub.f32 %v3936_v26, %v1020_v15  ;;  %v487_v60 = vsub.f32 %v3889_v47, %v3515_v5  ;;  %v5605_v26 = vld [vmem:[#allocation17_spill] sm:$0xff] }
  0xce   : > { %1388 = vmatpush.msrb.mxu0 %v5591_v1  ;;  %1142 = vmatpush.msrb.mxu2 %v3944_v28 }
  0xcf   : > { %1011 = vmatpush.msra.mxu1 %v1010_v29  ;;  %v1027_v40 = vsub.f32 %v3944_v28, %v1026_v50  ;;  %2984 = vmatpush.msra.mxu3 %v1010_v29  ;;  %v1022_v35 = vand.u32 4294901760, %v1021_v31 }
  0xd1   : > { %1017 = vmatpush.msra.mxu1 %v1016_v46  ;;  %v1028_v63 = vand.u32 4294901760, %v1027_v40  ;;  %2985 = vmatpush.msra.mxu3 %v1016_v46 }
  0xd3   : > { %1023 = vmatpush.msra.mxu1 %v1022_v35  ;;  %2986 = vmatpush.msra.mxu3 %v1022_v35  ;;  %v418_v35 = vld [vmem:[%s3474_s9 + $0x8] sm:$0xff] }
  0xd4   : > { %v3956_v7 = vpop.permute.xlu1 %465  ;;  %v508_v46 = vpop.permute.xlu2 %507 }
  0xd5   : > { %v3964_v11 = vpop.permute.xlu0 %463  ;;  %1029 = vmatpush.msra.mxu1 %v1028_v63  ;;  %2987 = vmatpush.msra.mxu3 %v1028_v63  ;;  %v485_v63 = vsub.f32 %v3900_v30, %v3518_v6 }
  0xd7   : > { %2800 = vmatpush.msk.msrb.mxu1 %vm3654_vm0, %v3332_v18  ;;  %2784 = vmatpush.msk.msrb.mxu3 %vm3654_vm0, %v3332_v18  ;;  %vm483_vm0 = vcmp.eq.s32.totalorder %v3650_v36, 127 }
  0xd8   : > { %v581_v49 = vsel %vm483_vm0, %v508_v46, %v485_v63  ;;  %v3333_v46 = vmov 0   ;;  %v417_v63 = vld [vmem:[%s3474_s9] sm:$0xff] }
  0xd9   : > { %2801 = vmatpush.msk.msrb.mxu1 %vm3665_vm1, %v3332_v18  ;;  %2785 = vmatpush.msk.msrb.mxu3 %vm3665_vm1, %v3332_v18  ;;  %v597_v55 = vmul.f32 1.1, %v581_v49 }
  0xda   : > { %3053 = vset.pattern.permute.xlu1 %v3333_v46  ;;  %3054 = vset.pattern.permute.xlu2 %v3333_v46 }
  0xdb   : > { %2802 = vmatpush.msk.msrb.mxu1 %vm3679_vm2, %v3332_v18  ;;  %2786 = vmatpush.msk.msrb.mxu3 %vm3679_vm2, %v3332_v18  ;;  %v4082_v38 = vmul.f32 %v597_v55, %v418_v35 }
  0xdc   : > { %v3990_v29 = vpop.permute.xlu1 %471  ;;  %v4056_v30 = vpop.permute.xlu2 %522  ;;  %1664 = vperm.xlu1 %3053, %v3578_v16   ;;  %3052 = vset.pattern.permute.xlu0 %v3333_v46 }
  0xdd   : > { %v3998_v31 = vpop.permute.xlu0 %469  ;;  %2803 = vmatpush.msk.msrb.mxu1 %vm3694_vm3, %v3332_v18  ;;  %2787 = vmatpush.msk.msrb.mxu3 %vm3694_vm3, %v3332_v18  ;;  %v5499_v59 = vsub.f32 0.0, %v4082_v38 }
  0xde   : > { %1668 = vperm.xlu2 %3054, %v3597_v21   ;;  %1660 = vperm.xlu0 %3052, %v3581_v17  }
  0xdf   : > { %2804 = vmatpush.msk.msrb.mxu1 %vm3709_vm4, %v3332_v18  ;;  %2788 = vmatpush.msk.msrb.mxu3 %vm3709_vm4, %v3332_v18  ;;  %v693_v53 = vmax.f32 %v5499_v59, -34.538776 }
  0xe1   : > { %2805 = vmatpush.msk.msrb.mxu1 %vm3724_vm5, %v3332_v18  ;;  %2789 = vmatpush.msk.msrb.mxu3 %vm3724_vm5, %v3332_v18 }
  0xe3   : > { %2806 = vmatpush.msk.msrb.mxu1 %vm3740_vm6, %v3332_v18  ;;  %2790 = vmatpush.msk.msrb.mxu3 %vm3740_vm6, %v3332_v18 }
  0xe4   : > { %v4041_v40 = vpop.permute.xlu1 %477  ;;  %v4102_v42 = vpop.permute.xlu2 %532  ;;  %1672 = vperm.xlu1 %3053, %v3594_v20  }
  0xe5   : > { %v4047_v6 = vpop.permute.xlu0 %475  ;;  %2807 = vmatpush.msk.msrb.mxu1 %vm3750_vm7, %v3332_v18  ;;  %2791 = vmatpush.msk.msrb.mxu3 %vm3750_vm7, %v3332_v18 }
  0xe6   : > { %1676 = vperm.xlu2 %3054, %v3591_v19   ;;  %1688 = vperm.xlu0 %3052, %v3609_v24  }
  0xe7   : > { %2808 = vmatpush.msk.msrb.mxu1 %vm3767_vm8, %v3332_v18  ;;  %2792 = vmatpush.msk.msrb.mxu3 %vm3767_vm8, %v3332_v18  ;;  %vm2578_vm8 = vcmask 64512  }
  0xe9   : > { %2809 = vmatpush.msk.msrb.mxu1 %vm3784_vm9, %v3332_v18  ;;  %2793 = vmatpush.msk.msrb.mxu3 %vm3784_vm9, %v3332_v18 }
  0xeb   : > { %2810 = vmatpush.msk.msrb.mxu1 %vm3811_vm10, %v3332_v18  ;;  %2794 = vmatpush.msk.msrb.mxu3 %vm3811_vm10, %v3332_v18 }
  0xec   : > { %v503_v62 = vpop.permute.xlu1 %502  ;;  %v548_v13 = vpop.permute.xlu2 %547  ;;  %1680 = vperm.xlu1 %3053, %v3606_v23  }
  0xed   : > { %v580_v44 = vsel %vm483_vm0, %v503_v62, %v484_v61  ;;  %v4087_v43 = vpop.permute.xlu0 %481  ;;  %2811 = vmatpush.msk.msrb.mxu1 %vm3838_vm11, %v3332_v18  ;;  %v5592_v61 = vand.u32 4294901760, %v3808_v32  ;;  %v493_v62 = vsub.f32 %v3998_v31, %v3548_v12  ;;  %v488_v12 = vsub.f32 %v3646_v34, %v3497_v0  ;;  %v420_v31 = vld [vmem:[%s3474_s9 + $0x18] sm:$0xff]  ;;  %2795 = vmatpush.msk.msrb.mxu3 %vm3838_vm11, %v3332_v18 }
  0xee   : > { %v596_v2 = vmul.f32 1.1, %v580_v44  ;;  %v4169_v44 = vand.u32 4294901760, %v693_v53  ;;  %1684 = vperm.xlu2 %3054, %v3603_v22   ;;  %1700 = vperm.xlu0 %3052, %v3621_v27  }
  0xef   : > { %2812 = vmatpush.msk.msrb.mxu1 %vm3862_vm12, %v3332_v18  ;;  %1392 = vmatpush.msrb.mxu0 %v5592_v61  ;;  %v584_v0 = vsel %vm483_vm0, %v4056_v30, %v488_v12  ;;  %v589_v32 = vsel %vm483_vm0, %v548_v13, %v493_v62  ;;  %v5595_v30 = vand.u32 4294901760, %v3884_v45  ;;  %v5599_v62 = vld [vmem:[#allocation25_spill] sm:$0xff]  ;;  %v5602_v13 = vld [vmem:[#allocation19_spill] sm:$0xff] }
  0xf0   : > { %v4104_v49 = vmul.f32 %v596_v2, %v417_v63  ;;  %v5593_v2 = vand.u32 4294901760, %v3835_v52  ;;  %v605_v1 = vmul.f32 1.1, %v589_v32  ;;  %2796 = vmatpush.msk.msrb.mxu3 %vm3862_vm12, %v3332_v18  ;;  %v426_v52 = vld [vmem:[%s3474_s9 + $0x48] sm:$0xff] }
  0xf1   : > { %2813 = vmatpush.msk.msrb.mxu1 %vm3873_vm13, %v3332_v18 }
  0xf2   : > { %v5502_v58 = vsub.f32 0.0, %v4104_v49  ;;  %1396 = vmatpush.msrb.mxu0 %v5593_v2  ;;  %2797 = vmatpush.msk.msrb.mxu3 %vm3873_vm13, %v3332_v18  ;;  %v5601_v2 = vld [vmem:[#allocation32_spill] sm:$0xff]  ;;  %v4244_v45 = vmul.f32 %v605_v1, %v426_v52 }
  0xf3   : > { %2814 = vmatpush.msk.msrb.mxu1 %vm3911_vm14, %v3332_v18 }
  0xf4   : > { %v518_v55 = vpop.permute.xlu1 %517  ;;  %v692_v54 = vmax.f32 %v5502_v58, -34.538776  ;;  %1400 = vmatpush.msrb.mxu0 %v5594_v41  ;;  %1692 = vperm.xlu1 %3053, %v5599_v62   ;;  %v5604_v41 = vld [vmem:[#allocation28_spill] sm:$0xff] }
  0xf5   : > { %v513_v35 = vpop.permute.xlu0 %512  ;;  %v583_v5 = vsel %vm483_vm0, %v518_v55, %v487_v60  ;;  %v4197_v60 = vsub.f32 %v693_v53, %v4169_v44  ;;  %v600_v55 = vmul.f32 1.1, %v584_v0  ;;  %2815 = vmatpush.msk.msrb.mxu1 %vm3923_vm15, %v3332_v18  ;;  %2798 = vmatpush.msk.msrb.mxu3 %vm3911_vm14, %v3332_v18 }
  0xf6   : > { %v582_v24 = vsel %vm483_vm0, %v513_v35, %v486_v3  ;;  %v4150_v46 = vand.u32 4294901760, %v692_v54  ;;  %v599_v56 = vmul.f32 1.1, %v583_v5  ;;  %1404 = vmatpush.msrb.mxu0 %v5595_v30  ;;  %v421_v35 = vld [vmem:[%s3474_s9 + $0x20] sm:$0xff]  ;;  %1696 = vperm.xlu2 %3054, %v5603_v37  }
  0xf7   : > { %v598_v47 = vmul.f32 1.1, %v582_v24  ;;  %v4237_v61 = vmul.f32 %v600_v55, %v421_v35  ;;  %1712 = vperm.xlu0 %3052, %v5604_v41   ;;  %v425_v35 = vld [vmem:[%s3474_s9 + $0x40] sm:$0xff]  ;;  %2799 = vmatpush.msk.msrb.mxu3 %vm3923_vm15, %v3332_v18 }
  0xf8   : > { %1031 = vmatmul.f32.vlgmr.msra.gmra.mxu1 %v4150_v46  ;;  %v4167_v63 = vsub.f32 %v692_v54, %v4150_v46  ;;  %v4192_v48 = vmul.f32 %v599_v56, %v420_v31  ;;  %v5596_v54 = vand.u32 4294901760, %v3894_v25  ;;  %v5600_v56 = vld [vmem:[#allocation14_spill] sm:$0xff] }
  0xf9   : > { %v4163_v33 = vmul.f32 %v598_v47, %v419_v14  ;;  %v815_v14 = vand.u32 4294901760, %v4197_v60  ;;  %v492_v47 = vsub.f32 %v5598_v10, %v5597_v9  ;;  %v489_v12 = vsub.f32 %v5601_v2, %v5600_v56  ;;  %v5606_v2 = vld [vmem:[#allocation18_spill] sm:$0xff] }
  0xfa   : > { %v807_v57 = vand.u32 4294901760, %v4167_v63  ;;  %1408 = vmatpush.msrb.mxu0 %v5596_v54  ;;  %v5497_v39 = vsub.f32 0.0, %v4192_v48  ;;  %v5496_v54 = vsub.f32 0.0, %v4237_v61  ;;  %v490_v10 = vsub.f32 %v3964_v11, %v5605_v26  ;;  %v5609_v37 = vld [vmem:[#allocation26_spill] sm:$0xff] }
  0xfb   : > { %v5498_v51 = vsub.f32 0.0, %v4163_v33  ;;  %v816_v55 = vsub.f32 %v4197_v60, %v815_v14  ;;  %v495_v18 = vsub.f32 %v5607_v8, %v5606_v2 }
  0xfc   : > { %v528_v34 = vpop.permute.xlu1 %527  ;;  %v808_v53 = vsub.f32 %v4167_v63, %v807_v57  ;;  %1412 = vmatpush.msrb.mxu0 %v1020_v15  ;;  %v494_v15 = vsub.f32 %v3990_v29, %v5602_v13  ;;  %v695_v0 = vmax.f32 %v5497_v39, -34.538776  ;;  %v5608_v13 = vld [vmem:[#allocation27_spill] sm:$0xff]  ;;  %v5614_v39 = vld [vmem:[#allocation21_spill] sm:$0xff] }
  0xfd   : > { %v4194_v3 = vpop.permute.xlu0 %537  ;;  %v694_v27 = vmax.f32 %v5498_v51, -34.538776  ;;  %v817_v52 = vand.u32 4294901760, %v816_v55  ;;  %1704 = vperm.xlu1 %3053, %v5608_v13  }
  0xfe   : > { %v809_v5 = vand.u32 4294901760, %v808_v53  ;;  %1416 = vmatpush.msrb.mxu0 %v1026_v50  ;;  %v585_v53 = vsel %vm483_vm0, %v528_v34, %v489_v12  ;;  %v5492_v50 = vsub.f32 0.0, %v4244_v45  ;;  %v4278_v9 = vand.u32 4294901760, %v695_v0  ;;  %1708 = vperm.xlu2 %3054, %v5609_v37  }
  0xff   : > { %v4227_v24 = vand.u32 4294901760, %v694_v27  ;;  %v601_v34 = vmul.f32 1.1, %v585_v53  ;;  %v696_v12 = vmax.f32 %v5496_v54, -34.538776  ;;  %v586_v53 = vsel %vm483_vm0, %v4102_v42, %v490_v10  ;;  %v428_v42 = vld [vmem:[%s3474_s9 + $0x58] sm:$0xff] }
 0x100   : > { %1035 = vmatmul.f32.gmra.mxu1 %v4169_v44  ;;  %810 = vmatmul.f32.vlgmr.msra.gmra.mxu0 %v809_v5  ;;  %v4305_v55 = vsub.f32 %v695_v0, %v4278_v9 }
 0x101   : > { %v4256_v29 = vsub.f32 %v694_v27, %v4227_v24 }
 0x102   : > { %v831_v8 = vand.u32 4294901760, %v4305_v55 }
 0x103   : > { %v823_v5 = vand.u32 4294901760, %v4256_v29 }
 0x104   : > { %v543_v31 = vpop.permute.xlu1 %542 }
 0x105   : > { %v588_v32 = vsel %vm483_vm0, %v543_v31, %v492_v47  ;;  %v553_v30 = vpop.permute.xlu0 %552  ;;  %v422_v47 = vld [vmem:[%s3474_s9 + $0x28] sm:$0xff] }
 0x106   : > { %v590_v27 = vsel %vm483_vm0, %v553_v30, %v494_v15  ;;  %v604_v1 = vmul.f32 1.1, %v588_v32  ;;  %v701_v15 = vmax.f32 %v5492_v50, -34.538776  ;;  %v4297_v41 = vmul.f32 %v601_v34, %v422_v47  ;;  %v563_v34 = vpop.permute.xlu2 %562 }
 0x107   : > { %v606_v25 = vmul.f32 1.1, %v590_v27  ;;  %v824_v30 = vsub.f32 %v4256_v29, %v823_v5  ;;  %v5610_v27 = vld [vmem:[#allocation22_spill] sm:$0xff]  ;;  %v602_v47 = vmul.f32 1.1, %v586_v53 }
 0x108   : > { %1039 = vmatmul.f32.gmra.mxu1 %v4227_v24  ;;  %v4284_v56 = vmul.f32 %v604_v1, %v425_v35  ;;  %818 = vmatmul.f32.gmra.mxu0 %v817_v52  ;;  %v496_v1 = vsub.f32 %v4047_v6, %v5610_v27  ;;  %v4319_v0 = vand.u32 4294901760, %v701_v15  ;;  %v5495_v2 = vsub.f32 0.0, %v4297_v41  ;;  %v423_v6 = vld [vmem:[%s3474_s9 + $0x30] sm:$0xff] }
 0x109   : > { %v4294_v31 = vmul.f32 %v606_v25, %v427_v4  ;;  %v4314_v25 = vand.u32 4294901760, %v696_v12  ;;  %v825_v10 = vand.u32 4294901760, %v824_v30  ;;  %v5612_v30 = vld [vmem:[#allocation30_spill] sm:$0xff] }
 0x10a   : > { %v5493_v28 = vsub.f32 0.0, %v4284_v56  ;;  %1716 = vperm.xlu1 %3053, %v5612_v30  }
 0x10b   : > { %v5494_v4 = vsub.f32 0.0, %v4294_v31  ;;  %v4335_v53 = vsub.f32 %v696_v12, %v4314_v25  ;;  %v697_v12 = vmax.f32 %v5495_v2, -34.538776 }
 0x10c   : > { %v558_v11 = vpop.permute.xlu1 %557  ;;  %v700_v35 = vmax.f32 %v5493_v28, -34.538776  ;;  %v4344_v28 = vsub.f32 %v701_v15, %v4319_v0 }
 0x10d   : > { %v591_v32 = vsel %vm483_vm0, %v558_v11, %v495_v18  ;;  %v5611_v11 = vld [vmem:[#allocation16_spill] sm:$0xff]  ;;  %v702_v27 = vmax.f32 %v5494_v4, -34.538776 }
 0x10e   : > { %v607_v52 = vmul.f32 1.1, %v591_v32  ;;  %v4317_v26 = vand.u32 4294901760, %v700_v35  ;;  %v491_v37 = vsub.f32 %v3956_v7, %v5611_v11  ;;  %v592_v32 = vsel %vm483_vm0, %v563_v34, %v496_v1  ;;  %v5613_v1 = vld [vmem:[#allocation29_spill] sm:$0xff] }
 0x10f   : > { %v3334_v7 = vmov 1   ;;  %1720 = vperm.xlu2 %3054, %v5613_v1   ;;  %v4347_v34 = vmul.f32 %v602_v47, %v423_v6  ;;  %v608_v47 = vmul.f32 1.1, %v592_v32  ;;  %v429_v6 = vld [vmem:[%s3474_s9 + $0x60] sm:$0xff]  ;;  %v5503_v1 = vand.u32 4294901760, %v4344_v28  ;;  %v568_v32 = vpop.permute.xlu0 %567 }
 0x110   : > { %1043 = vmatmul.f32.gmra.mxu1 %v4278_v9  ;;  %1063 = vmatmul.f32.vlgmr.msra.gmra.mxu3 %v4317_v26  ;;  %v4328_v18 = vsub.f32 %v700_v35, %v4317_v26  ;;  %v4340_v50 = vmul.f32 %v607_v52, %v428_v42  ;;  %v587_v15 = vsel %vm483_vm0, %v4194_v3, %v491_v37  ;;  %v839_v42 = vand.u32 4294901760, %v4335_v53  ;;  %v424_v37 = vld [vmem:[%s3474_s9 + $0x38] sm:$0xff] }
 0x111   : > { %826 = vmatmul.f32.gmra.mxu0 %v825_v10  ;;  %3055 = vset.pattern.permute.xlu0 %v3334_v7  ;;  %v832_v10 = vsub.f32 %v4305_v55, %v831_v8  ;;  %v4365_v4 = vand.u32 4294901760, %v702_v27  ;;  %v603_v2 = vmul.f32 1.1, %v587_v15  ;;  %v4369_v3 = vand.u32 4294901760, %v697_v12 }
 0x112   : > { %v5507_v35 = vand.u32 4294901760, %v4328_v18  ;;  %1740 = vperm.xlu0 %3055, %v3581_v17   ;;  %v5500_v11 = vsub.f32 0.0, %v4340_v50  ;;  %v5501_v17 = vsub.f32 0.0, %v4347_v34  ;;  %v4375_v51 = vmul.f32 %v608_v47, %v429_v6  ;;  %3056 = vset.pattern.permute.xlu1 %v3334_v7 }
 0x113   : > { %v833_v54 = vand.u32 4294901760, %v832_v10  ;;  %v840_v10 = vsub.f32 %v4335_v53, %v839_v42  ;;  %v4386_v59 = vsub.f32 %v702_v27, %v4365_v4  ;;  %1744 = vperm.xlu1 %3056, %v3578_v16   ;;  %v4396_v47 = vsub.f32 %v697_v12, %v4369_v3 }
 0x114   : > { %v872_v52 = vsub.f32 %v4328_v18, %v5507_v35  ;;  %5615 = vst [vmem:[#allocation15_spill] sm:$0xff] %v4375_v51  ;;  %v703_v15 = vmax.f32 %v5500_v11, -34.538776  ;;  %v5504_v27 = vsub.f32 0.0, %v4375_v51 }
 0x115   : > { %v847_v12 = vand.u32 4294901760, %v4396_v47 }
 0x116   : > { %v873_v30 = vand.u32 4294901760, %v872_v52  ;;  %v497_v52 = vsub.f32 %v4041_v40, %v5614_v39  ;;  %v698_v40 = vmax.f32 %v5501_v17, -34.538776  ;;  %v4391_v39 = vmul.f32 %v603_v2, %v424_v37  ;;  %v430_v37 = vld [vmem:[%s3474_s9 + $0x68] sm:$0xff] }
 0x117   : > { %3057 = vset.pattern.permute.xlu2 %v3334_v7  ;;  %v5506_v7 = vand.u32 4294901760, %v4386_v59  ;;  %v4402_v11 = vand.u32 4294901760, %v703_v15  ;;  %v841_v17 = vand.u32 4294901760, %v840_v10 }
 0x118   : > { %1047 = vmatmul.f32.gmra.mxu1 %v4314_v25  ;;  %874 = vmatmul.f32.vlgmr.msra.gmra.mxu2 %v873_v30  ;;  %v880_v30 = vsub.f32 %v4344_v28, %v5503_v1  ;;  %v5505_v2 = vsub.f32 0.0, %v4391_v39 }
 0x119   : > { %1067 = vmatmul.f32.gmra.mxu3 %v4319_v0  ;;  %834 = vmatmul.f32.gmra.mxu0 %v833_v54  ;;  %v593_v54 = vsel %vm483_vm0, %v568_v32, %v497_v52  ;;  %v4408_v32 = vand.u32 4294901760, %v698_v40  ;;  %v5617_v52 = vld [vmem:[#allocation35_spill] sm:$0xff]  ;;  %v888_v10 = vsub.f32 %v4386_v59, %v5506_v7  ;;  %v4421_v1 = vsub.f32 %v703_v15, %v4402_v11  ;;  %v431_v7 = vld [vmem:[%s3474_s9 + $0x70] sm:$0xff] }
 0x11a   : > { %1760 = vperm.xlu0 %3055, %v3606_v23   ;;  %1748 = vperm.xlu2 %3057, %v3597_v21   ;;  %v609_v6 = vmul.f32 1.1, %v593_v54  ;;  %v881_v16 = vand.u32 4294901760, %v880_v30  ;;  %v573_v23 = vpop.permute.xlu1 %572  ;;  %v5616_v21 = vld [vmem:[#allocation20_spill] sm:$0xff]  ;;  %v704_v54 = vmax.f32 %v5504_v27, -34.538776 }
 0x11b   : > { %v498_v30 = vsub.f32 %v5617_v52, %v5616_v21  ;;  %1752 = vperm.xlu1 %3056, %v3594_v20   ;;  %v5619_v15 = vld [vmem:[#allocation23_spill] sm:$0xff]  ;;  %v578_v52 = vpop.permute.xlu2 %577 }
 0x11c   : > { %v4415_v58 = vmul.f32 %v609_v6, %v430_v37  ;;  %v4432_v6 = vsub.f32 %v698_v40, %v4408_v32  ;;  %v499_v20 = vsub.f32 %v4087_v43, %v5619_v15  ;;  %v4438_v37 = vand.u32 4294901760, %v704_v54 }
 0x11d   : > { %v594_v21 = vsel %vm483_vm0, %v573_v23, %v498_v30  ;;  %v889_v30 = vand.u32 4294901760, %v888_v10 }
 0x11e   : > { %5618 = vst [vmem:[#allocation33_spill] sm:$0xff] %v4415_v58  ;;  %v5508_v27 = vsub.f32 0.0, %v4415_v58  ;;  %v610_v23 = vmul.f32 1.1, %v594_v21  ;;  %v595_v43 = vsel %vm483_vm0, %v578_v52, %v499_v20 }
 0x11f   : > { %v611_v20 = vmul.f32 1.1, %v595_v43 }
 0x120   : > { %1051 = vmatmul.f32.gmra.mxu1 %v4369_v3  ;;  %882 = vmatmul.f32.gmra.mxu2 %v881_v16  ;;  %v699_v16 = vmax.f32 %v5505_v2, -34.538776  ;;  %v5509_v2 = vand.u32 4294901760, %v4421_v1  ;;  %v705_v40 = vmax.f32 %v5508_v27, -34.538776  ;;  %v4452_v10 = vmul.f32 %v610_v23, %v431_v7  ;;  %v3186_v7 = vld [vmem:[%s3575_s24 + $0x38] sm:$0xff] }
 0x121   : > { %1071 = vmatmul.f32.gmra.mxu3 %v4365_v4  ;;  %842 = vmatmul.f32.gmra.mxu0 %v841_v17  ;;  %v848_v17 = vsub.f32 %v4396_v47, %v847_v12 }
 0x122   : > { %1772 = vperm.xlu0 %3055, %v5599_v62   ;;  %1756 = vperm.xlu2 %3057, %v3591_v19   ;;  %v5513_v62 = vand.u32 4294901760, %v4432_v6  ;;  %v4445_v19 = vand.u32 4294901760, %v699_v16  ;;  %5620 = vst [vmem:[#allocation25_spill] sm:$0xff] %v4452_v10  ;;  %v896_v21 = vsub.f32 %v4421_v1, %v5509_v2  ;;  %v5510_v52 = vsub.f32 0.0, %v4452_v10  ;;  %v3188_v2 = vld [vmem:[%s3575_s24 + $0x70] sm:$0xff] }
 0x123   : > { %v849_v35 = vand.u32 4294901760, %v848_v17  ;;  %v4458_v17 = vsub.f32 %v704_v54, %v4438_v37  ;;  %1764 = vperm.xlu1 %3056, %v3603_v22   ;;  %v4471_v22 = vand.u32 4294901760, %v705_v40 }
 0x124   : > { %v856_v15 = vsub.f32 %v4432_v6, %v5513_v62  ;;  %v897_v23 = vand.u32 4294901760, %v896_v21  ;;  %v706_v43 = vmax.f32 %v5510_v52, -34.538776 }
 0x125   : > { %v5511_v54 = vand.u32 4294901760, %v4458_v17 }
 0x126   : > { %v857_v27 = vand.u32 4294901760, %v856_v15  ;;  %v3187_v15 = vld [vmem:[%s3575_s24 + $0x48] sm:$0xff] }
 0x127   : > { %v904_v21 = vsub.f32 %v4458_v17, %v5511_v54  ;;  %v4495_v54 = vand.u32 4294901760, %v706_v43 }
 0x128   : > { %1055 = vmatmul.f32.gmra.mxu1 %v4408_v32  ;;  %890 = vmatmul.f32.gmra.mxu2 %v889_v30  ;;  %v432_v30 = vld [vmem:[%s3474_s9 + $0x78] sm:$0xff] }
 0x129   : > { %1075 = vmatmul.f32.gmra.mxu3 %v4402_v11  ;;  %850 = vmatmul.f32.gmra.mxu0 %v849_v35  ;;  %v4465_v35 = vsub.f32 %v699_v16, %v4445_v19 }
 0x12a   : > { %1784 = vperm.xlu0 %3055, %v5608_v13   ;;  %1768 = vperm.xlu2 %3057, %v3186_v7   ;;  %v4477_v13 = vmul.f32 %v611_v20, %v432_v30  ;;  %v4485_v7 = vsub.f32 %v705_v40, %v4471_v22  ;;  %v905_v30 = vand.u32 4294901760, %v904_v21  ;;  %v4505_v21 = vsub.f32 %v706_v43, %v4495_v54 }
 0x12b   : > { %v5512_v16 = vand.u32 4294901760, %v4465_v35  ;;  %1776 = vperm.xlu1 %3056, %v3187_v15  }
 0x12c   : > { %5621 = vst [vmem:[#allocation14_spill] sm:$0xff] %v4477_v13  ;;  %v5514_v20 = vsub.f32 0.0, %v4477_v13  ;;  %v911_v52 = vand.u32 4294901760, %v4485_v7 }
 0x12e   : > { %v912_v15 = vsub.f32 %v4485_v7, %v911_v52 }
 0x130   : > { %1059 = vmatmul.f32.gmra.mxu1 %v4445_v19  ;;  %898 = vmatmul.f32.gmra.mxu2 %v897_v23  ;;  %v864_v23 = vsub.f32 %v4465_v35, %v5512_v16  ;;  %v913_v16 = vand.u32 4294901760, %v912_v15 }
 0x131   : > { %1079 = vmatmul.f32.gmra.mxu3 %v4438_v37  ;;  %858 = vmatmul.f32.gmra.mxu0 %v857_v27  ;;  %v3189_v27 = vld [vmem:[%s3575_s24 + $0x50] sm:$0xff] }
 0x132   : > { %1796 = vperm.xlu0 %3055, %v3188_v2   ;;  %1780 = vperm.xlu2 %3057, %v3189_v27   ;;  %v865_v40 = vand.u32 4294901760, %v864_v23  ;;  %v707_v2 = vmax.f32 %v5514_v20, -34.538776  ;;  %v3190_v27 = vld [vmem:[%s3575_s24 + $0x60] sm:$0xff]  ;;  %v3191_v23 = vld [vmem:[%s3575_s24 + $0x68] sm:$0xff] }
 0x133   : > { %1788 = vperm.xlu1 %3056, %v3190_v27   ;;  %v3192_v27 = vld [vmem:[%s3575_s24 + $0x78] sm:$0xff] }
 0x134   : > { %v4510_v62 = vand.u32 4294901760, %v707_v2 }
 0x138   : > { %1515 = vmatmul.f32.vlgmr.msrb.gmra.mxu1 %v4150_v46  ;;  %906 = vmatmul.f32.gmra.mxu2 %v905_v30  ;;  %v919_v30 = vand.u32 4294901760, %v4505_v21 }
 0x139   : > { %1083 = vmatmul.f32.gmra.mxu3 %v4471_v22  ;;  %866 = vmatmul.f32.gmra.mxu0 %v865_v40  ;;  %v4519_v40 = vsub.f32 %v707_v2, %v4510_v62 }
 0x13a   : > { %1792 = vperm.xlu2 %3057, %v3191_v23   ;;  %v920_v43 = vsub.f32 %v4505_v21, %v919_v30 }
 0x13b   : > { %1800 = vperm.xlu1 %3056, %v3192_v27   ;;  %v5515_v23 = vand.u32 4294901760, %v4519_v40 }
 0x13c   : > { %v921_v15 = vand.u32 4294901760, %v920_v43 }
 0x140   : > { %1519 = vmatmul.f32.gmra.mxu1 %v4169_v44  ;;  %914 = vmatmul.f32.gmra.mxu2 %v913_v16 }
 0x141   : > { %1087 = vmatmul.f32.gmra.mxu3 %v4495_v54  ;;  %1418 = vmatmul.f32.vlgmr.msrb.gmra.mxu0 %v4150_v46  ;;  %v928_v46 = vsub.f32 %v4519_v40, %v5515_v23 }
 0x143   : > { %v929_v16 = vand.u32 4294901760, %v928_v46 }
 0x148   : > { %1523 = vmatmul.f32.gmra.mxu1 %v4227_v24  ;;  %922 = vmatmul.f32.gmra.mxu2 %v921_v15 }
 0x149   : > { %1091 = vmatmul.f32.gmra.mxu3 %v4510_v62  ;;  %1422 = vmatmul.f32.gmra.mxu0 %v4169_v44  ;;  %v4538_v44 = vpop.permute.xlu2 %1668 }
 0x150   : > { %1527 = vmatmul.f32.gmra.mxu1 %v4278_v9  ;;  %930 = vmatmul.f32.gmra.mxu2 %v929_v16 }
 0x151   : > { %1259 = vmatmul.f32.vlgmr.msrb.gmra.mxu3 %v807_v57  ;;  %1426 = vmatmul.f32.gmra.mxu0 %v4227_v24  ;;  %v4545_v57 = vpop.permute.xlu2 %1676 }
 0x158   : > { %1531 = vmatmul.f32.gmra.mxu1 %v4314_v25  ;;  %1145 = vmatmul.f32.vlgmr.msrb.gmra.mxu2 %v4167_v63 }
 0x159   : > { %1265 = vmatmul.f32.gmra.mxu3 %v815_v14  ;;  %1430 = vmatmul.f32.gmra.mxu0 %v4278_v9  ;;  %v4552_v63 = vpop.permute.xlu2 %1684  ;;  %v5623_v9 = vand.u32 4294901760, %v4432_v6 }
 0x160   : > { %1535 = vmatmul.f32.gmra.mxu1 %v4369_v3  ;;  %1150 = vmatmul.f32.gmra.mxu2 %v4197_v60 }
 0x161   : > { %1271 = vmatmul.f32.gmra.mxu3 %v823_v5  ;;  %1434 = vmatmul.f32.gmra.mxu0 %v4314_v25  ;;  %v4559_v60 = vpop.permute.xlu2 %1696 }
 0x168   : > { %1539 = vmatmul.f32.gmra.mxu1 %v4408_v32  ;;  %1155 = vmatmul.f32.gmra.mxu2 %v4256_v29 }
 0x169   : > { %1277 = vmatmul.f32.gmra.mxu3 %v831_v8  ;;  %1438 = vmatmul.f32.gmra.mxu0 %v4369_v3  ;;  %v4568_v24 = vpop.permute.xlu2 %1708 }
 0x16a   : > { %5622 = vst [vmem:[#allocation32_spill] sm:$0xff] %v4568_v24 }
 0x170   : > { %1543 = vmatmul.f32.gmra.mxu1 %v4445_v19  ;;  %1160 = vmatmul.f32.gmra.mxu2 %v4305_v55 }
 0x171   : > { %1283 = vmatmul.f32.gmra.mxu3 %v839_v42  ;;  %1442 = vmatmul.f32.gmra.mxu0 %v4408_v32  ;;  %v4579_v55 = vpop.permute.xlu2 %1720  ;;  %v5625_v42 = vand.u32 4294901760, %v4465_v35  ;;  %v5626_v32 = vand.u32 4294901760, %v4328_v18 }
 0x172   : > { %5624 = vst [vmem:[#allocation19_spill] sm:$0xff] %v4579_v55 }
 0x175   : > { %v4561_v14 = vpop.f32.mrf.mxu1 }
 0x178   : > { %1547 = vmatmul.f32.gmra.mxu1 %v4317_v26  ;;  %1165 = vmatmul.f32.gmra.mxu2 %v4335_v53  ;;  %v4583_v53 = vpop.permute.xlu0 %1660 }
 0x179   : > { %1289 = vmatmul.f32.gmra.mxu3 %v847_v12  ;;  %1446 = vmatmul.f32.gmra.mxu0 %v4445_v19  ;;  %v4590_v3 = vpop.permute.xlu2 %1748 }
 0x17d   : > { %v4570_v29 = vpop.f32.mrf.mxu1  ;;  %v4572_v5 = vpop.f32.mrf.mxu0 }
 0x17e   : > { %v1033_v36 = vadd.f32 %v4561_v14, %v4572_v5 }
 0x180   : > { %1551 = vmatmul.f32.gmra.mxu1 %v4319_v0  ;;  %1170 = vmatmul.f32.gmra.mxu2 %v4396_v47  ;;  %v4598_v19 = vpop.permute.xlu0 %1688 }
 0x181   : > { %1295 = vmatmul.f32.gmra.mxu3 %v5623_v9  ;;  %1450 = vmatmul.f32.gmra.mxu0 %v4317_v26 }
 0x185   : > { %v1040_v25 = vpop.f32.mrf.mxu1  ;;  %v4581_v8 = vpop.f32.mrf.mxu0 }
 0x186   : > { %v1037_v14 = vadd.f32 %v4570_v29, %v4581_v8  ;;  %v4703_v29 = vld [vmem:[%s4700_s18 + $0x40] sm:$0xff]  }
 0x188   : > { %1555 = vmatmul.f32.gmra.mxu1 %v4365_v4  ;;  %1175 = vmatmul.f32.gmra.mxu2 %v4432_v6  ;;  %v4601_v6 = vpop.permute.xlu2 %1756  ;;  %v4612_v46 = vpop.permute.xlu0 %1700 }
 0x189   : > { %1301 = vmatmul.f32.gmra.mxu3 %v5625_v42  ;;  %1454 = vmatmul.f32.gmra.mxu0 %v4319_v0 }
 0x18d   : > { %v1044_v26 = vpop.f32.mrf.mxu1 }
 0x18e   : > { %v827_v47 = vpop.f32.mrf.mxu0 }
 0x18f   : > { %v4592_v12 = vadd.f32 %v1040_v25, %v827_v47 }
 0x190   : > { %1559 = vmatmul.f32.gmra.mxu1 %v4402_v11  ;;  %1180 = vmatmul.f32.gmra.mxu2 %v4465_v35  ;;  %v5627_v35 = vand.u32 4294901760, %v4344_v28  ;;  %v4610_v15 = vpop.permute.xlu2 %1768 }
 0x191   : > { %1307 = vmatmul.f32.gmra.mxu3 %v5626_v32  ;;  %1458 = vmatmul.f32.gmra.mxu0 %v4365_v4 }
 0x193   : > { %v1064_v0 = vpop.f32.mrf.mxu3 }
 0x195   : > { %v1048_v27 = vpop.f32.mrf.mxu1 }
 0x196   : > { %v835_v2 = vpop.f32.mrf.mxu0 }
 0x197   : > { %v4603_v43 = vadd.f32 %v1044_v26, %v835_v2 }
 0x198   : > { %1563 = vmatmul.f32.gmra.mxu1 %v4438_v37  ;;  %1185 = vmatmul.f32.gmra.mxu2 %v4328_v18  ;;  %v5628_v18 = vand.u32 4294901760, %v4386_v59 }
 0x199   : > { %1313 = vmatmul.f32.gmra.mxu3 %v5627_v35  ;;  %1462 = vmatmul.f32.gmra.mxu0 %v4402_v11  ;;  %v4623_v11 = vpop.permute.xlu2 %1780 }
 0x19b   : > { %v875_v4 = vpop.f32.mrf.mxu2 }
 0x19c   : > { %v1068_v16 = vpop.f32.mrf.mxu3  ;;  %v4614_v9 = vadd.f32 %v1064_v0, %v875_v4  ;;  %v1713_v0 = vpop.permute.xlu0 %1712 }
 0x19d   : > { %v1052_v47 = vpop.f32.mrf.mxu1 }
 0x19e   : > { %v843_v25 = vpop.f32.mrf.mxu0 }
 0x19f   : > { %v4616_v42 = vadd.f32 %v1048_v27, %v843_v25  ;;  %v3193_v27 = vld [vmem:[%s3494_s8 + $0x68] sm:$0xff] }
 0x1a0   : > { %1567 = vmatmul.f32.gmra.mxu1 %v4471_v22  ;;  %1190 = vmatmul.f32.gmra.mxu2 %v4344_v28  ;;  %v1736_v4 = vsub.f32 %v3193_v27, %v1713_v0  ;;  %v5629_v28 = vand.u32 4294901760, %v4421_v1 }
 0x1a1   : > { %1319 = vmatmul.f32.gmra.mxu3 %v5628_v18  ;;  %1466 = vmatmul.f32.gmra.mxu0 %v4438_v37  ;;  %v1793_v37 = vpop.permute.xlu2 %1792 }
 0x1a2   : > { %v4635_v18 = vmul.f32 %v1793_v37, %v1736_v4  ;;  %v4648_v4 = vpop.permute.xlu1 %1664 }
 0x1a3   : > { %v883_v26 = vpop.f32.mrf.mxu2 }
 0x1a4   : > { %v1072_v32 = vpop.f32.mrf.mxu3  ;;  %v4625_v2 = vadd.f32 %v1068_v16, %v883_v26  ;;  %5630 = vst [vmem:[#allocation24_spill] sm:$0xff] %v4635_v18 }
 0x1a5   : > { %v1056_v20 = vpop.f32.mrf.mxu1 }
 0x1a6   : > { %v851_v35 = vpop.f32.mrf.mxu0 }
 0x1a7   : > { %v4628_v25 = vadd.f32 %v1052_v47, %v851_v35 }
 0x1a8   : > { %1571 = vmatmul.f32.gmra.mxu1 %v4495_v54  ;;  %1195 = vmatmul.f32.gmra.mxu2 %v4386_v59  ;;  %v5631_v59 = vand.u32 4294901760, %v4458_v17 }
 0x1a9   : > { %1325 = vmatmul.f32.gmra.mxu3 %v5629_v28  ;;  %1470 = vmatmul.f32.gmra.mxu0 %v4471_v22 }
 0x1ab   : > { %v891_v16 = vpop.f32.mrf.mxu2 }
 0x1ac   : > { %v1076_v26 = vpop.f32.mrf.mxu3  ;;  %v4637_v23 = vadd.f32 %v1072_v32, %v891_v16  ;;  %v4658_v16 = vpop.permute.xlu1 %1672 }
 0x1ad   : > { %v1060_v32 = vpop.f32.mrf.mxu1 }
 0x1ae   : > { %v859_v0 = vpop.f32.mrf.mxu0 }
 0x1af   : > { %v4639_v47 = vadd.f32 %v1056_v20, %v859_v0 }
 0x1b0   : > { %1575 = vmatmul.f32.gmra.mxu1 %v4510_v62  ;;  %1200 = vmatmul.f32.gmra.mxu2 %v4421_v1 }
 0x1b1   : > { %1331 = vmatmul.f32.gmra.mxu3 %v5631_v59  ;;  %1474 = vmatmul.f32.gmra.mxu0 %v4495_v54 }
 0x1b3   : > { %v899_v22 = vpop.f32.mrf.mxu2 }
 0x1b4   : > { %v1080_v35 = vpop.f32.mrf.mxu3  ;;  %v4646_v27 = vadd.f32 %v1076_v26, %v899_v22 }
 0x1b5   : > { %v1516_v0 = vpop.f32.mrf.mxu1 }
 0x1b6   : > { %v867_v28 = vpop.f32.mrf.mxu0 }
 0x1b7   : > { %v4650_v37 = vadd.f32 %v1060_v32, %v867_v28 }
 0x1b8   : > { %1205 = vmatmul.f32.gmra.mxu2 %v4458_v17 }
 0x1b9   : > { %1337 = vmatmul.f32.gmra.mxu3 %v911_v52  ;;  %1478 = vmatmul.f32.gmra.mxu0 %v4510_v62  ;;  %v5634_v62 = vand.u32 4294901760, %v4519_v40  ;;  %v4668_v52 = vpop.permute.xlu1 %1680 }
 0x1bb   : > { %v907_v1 = vpop.f32.mrf.mxu2 }
 0x1bc   : > { %v1084_v20 = vpop.f32.mrf.mxu3  ;;  %v4656_v54 = vadd.f32 %v1080_v35, %v907_v1 }
 0x1bd   : > { %v1520_v1 = vpop.f32.mrf.mxu1 }
 0x1be   : > { %5632 = vst [vmem:[#allocation28_spill] sm:$0xff] %v4656_v54  ;;  %v1419_v26 = vpop.f32.mrf.mxu0 }
 0x1c0   : > { %1210 = vmatmul.f32.gmra.mxu2 %v4485_v7 }
 0x1c1   : > { %1343 = vmatmul.f32.gmra.mxu3 %v919_v30 }
 0x1c3   : > { %v915_v59 = vpop.f32.mrf.mxu2 }
 0x1c4   : > { %v1088_v17 = vpop.f32.mrf.mxu3  ;;  %v4663_v22 = vadd.f32 %v1084_v20, %v915_v59  ;;  %v4673_v20 = vpop.permute.xlu1 %1692 }
 0x1c6   : > { %5633 = vst [vmem:[#allocation17_spill] sm:$0xff] %v4663_v22  ;;  %v1423_v35 = vpop.f32.mrf.mxu0 }
 0x1c8   : > { %1215 = vmatmul.f32.gmra.mxu2 %v4505_v21 }
 0x1c9   : > { %1349 = vmatmul.f32.gmra.mxu3 %v5634_v62  ;;  %v4677_v62 = vpop.f32.mrf.mxu1 }
 0x1cb   : > { %v923_v32 = vpop.f32.mrf.mxu2 }
 0x1cc   : > { %v1092_v28 = vpop.f32.mrf.mxu3  ;;  %v4670_v7 = vadd.f32 %v1088_v17, %v923_v32  ;;  %v5637_v32 = vsub.f32 0.0, %v4104_v49  ;;  %v4683_v18 = vpop.permute.xlu1 %1704 }
 0x1ce   : > { %5635 = vst [vmem:[#allocation18_spill] sm:$0xff] %v4670_v7  ;;  %v1427_v21 = vpop.f32.mrf.mxu0 }
 0x1d0   : > { %1220 = vmatmul.f32.gmra.mxu2 %v4519_v40  ;;  %v644_v40 = vmul.f32 1.442695, %v5637_v32 }
 0x1d1   : > { %v4687_v58 = vpop.f32.mrf.mxu1 }
 0x1d2   : > { %3058 = vpow2.f32 %v644_v40 }
 0x1d3   : > { %v931_v30 = vpop.f32.mrf.mxu2 }
 0x1d4   : > { %v1260_v24 = vpop.f32.mrf.mxu3  ;;  %v4675_v59 = vadd.f32 %v1092_v28, %v931_v30  ;;  %v3194_v30 = vld [vmem:[%s3494_s8] sm:$0xff]  ;;  %v4696_v54 = vpop.permute.xlu1 %1716 }
 0x1d6   : > { %5636 = vst [vmem:[#allocation34_spill] sm:$0xff] %v4675_v59  ;;  %v4685_v10 = vpop.f32.mrf.mxu0  ;;  %v1723_v59 = vsub.f32 %v3194_v30, %v4583_v53 }
 0x1db   : > { %v1146_v55 = vpop.f32.mrf.mxu2 }
 0x1dc   : > { %v1266_v13 = vpop.f32.mrf.mxu3  ;;  %v1147_v17 = vadd.f32 %v1146_v55, %v1033_v36  ;;  %v1741_v55 = vpop.permute.xlu0 %1740 }
 0x1dd   : > { %v1803_v51 = vmul.f32 %v1741_v55, %v1723_v59 }
 0x1de   : > { %v1261_v7 = vadd.f32 %v1260_v24, %v1147_v17  ;;  %v3059_v17 = vpop.eup %3058  ;;  %v4698_v53 = vpop.f32.mrf.mxu0 }
 0x1df   : > { %v1819_v8 = vmax.f32 %v1803_v51, 0.0  ;;  %v5639_v51 = vsub.f32 0.0, %v4163_v33 }
 0x1e0   : > { %v1420_v28 = vadd.f32 %v1419_v26, %v1261_v7  ;;  %v5638_v26 = vsub.f32 0.0, %v4082_v38 }
 0x1e1   : > { %v648_v55 = vmul.f32 1.442695, %v5639_v51 }
 0x1e2   : > { %v1517_v36 = vadd.f32 %v1516_v0, %v1420_v28  ;;  %v646_v7 = vmul.f32 1.442695, %v5638_v26  ;;  %v4705_v0 = vpop.f32.mrf.mxu1  ;;  %v2871_v28 = vunpack.c.l.bf16 %v4703_v29 }
 0x1e3   : > { %v1151_v5 = vpop.f32.mrf.mxu2 }
 0x1e4   : > { %v1272_v49 = vpop.f32.mrf.mxu3  ;;  %v1579_v32 = vmul.f32 1.442695, %v1517_v36  ;;  %v1152_v22 = vadd.f32 %v1151_v5, %v1037_v14  ;;  %v1835_v36 = vmin.f32 %v1819_v8, 1.0 }
 0x1e6   : > { %3060 = vpow2.f32 %v1579_v32  ;;  %v1267_v24 = vadd.f32 %v1266_v13, %v1152_v22  ;;  %v676_v22 = vsub.f32 1.0, %v3059_v17 }
 0x1e7   : > { %3062 = vpow2.f32 %v646_v7 }
 0x1e8   : > { %v1424_v40 = vadd.f32 %v1423_v35, %v1267_v24  ;;  %v3195_v24 = vld [vmem:[%s3494_s8 + $0x8] sm:$0xff] }
 0x1e9   : > { %v1724_v17 = vsub.f32 %v3195_v24, %v4648_v4 }
 0x1ea   : > { %v1521_v13 = vadd.f32 %v1520_v1, %v1424_v40  ;;  %v4714_v1 = vld [vmem:[%s4700_s18] sm:$0xff]  }
 0x1eb   : > { %v1156_v59 = vpop.f32.mrf.mxu2  ;;  %v4722_v40 = vld [vmem:[%s4700_s18 + $0x80] sm:$0xff]   ;;  %v2839_v33 = vunpack.c.l.bf16 %v4714_v1 }
 0x1ec   : > { %v1278_v38 = vpop.f32.mrf.mxu3  ;;  %v3061_v30 = vpop.eup %3060  ;;  %v1581_v35 = vmul.f32 1.442695, %v1521_v13  ;;  %v1157_v14 = vadd.f32 %v1156_v59, %v4592_v12 }
 0x1ed   : > { %v4709_v5 = vmul.f32 %v3061_v30, %v676_v22  ;;  %v3063_v8 = vpop.eup %3062  ;;  %v4725_v13 = vpop.f32.mrf.mxu0 }
 0x1ee   : > { %3064 = vpow2.f32 %v1581_v35  ;;  %v1273_v32 = vadd.f32 %v1272_v49, %v1157_v14  ;;  %v1745_v49 = vpop.permute.xlu1 %1744  ;;  %v4729_v35 = vpop.f32.mrf.mxu1  ;;  %v677_v51 = vsub.f32 1.0, %v3063_v8  ;;  %v3197_v8 = vld [vmem:[%s3494_s8 + $0x18] sm:$0xff] }
 0x1ef   : > { %1627 = vadd.xlane.f32.xlu0 %v4709_v5  ;;  %v2075_v26 = vmul.f32 %v2871_v28, %v4709_v5  ;;  %v1851_v7 = vmul.f32 %v1835_v36, %v4709_v5  ;;  %3066 = vpow2.f32 %v648_v55  ;;  %v1804_v22 = vmul.f32 %v1745_v49, %v1724_v17  ;;  %v3196_v49 = vld [vmem:[%s3494_s8 + $0x10] sm:$0xff] }
 0x1f0   : > { %v1428_v12 = vadd.f32 %v1427_v21, %v1273_v32  ;;  %v2903_v28 = vunpack.c.l.bf16 %v4722_v40  ;;  %v2011_v55 = vmul.f32 %v2839_v33, %v4709_v5  ;;  %v5640_v32 = vsub.f32 0.0, %v4192_v48 }
 0x1f1   : > { %2091 = vadd.xlane.f32.xlu1 %v2075_v26  ;;  %1867 = vadd.xlane.f32.xlu2 %v1851_v7  ;;  %v1820_v17 = vmax.f32 %v1804_v22, 0.0  ;;  %v1726_v33 = vsub.f32 %v3197_v8, %v4658_v16 }
 0x1f2   : > { %v1525_v4 = vadd.f32 %v4677_v62, %v1428_v12  ;;  %v650_v24 = vmul.f32 1.442695, %v5640_v32  ;;  %v2139_v7 = vmul.f32 %v2903_v28, %v4709_v5  ;;  %v2840_v28 = vunpack.c.h.bf16 %v4714_v1 }
 0x1f3   : > { %v1161_v59 = vpop.f32.mrf.mxu2  ;;  %v1836_v22 = vmin.f32 %v1820_v17, 1.0  ;;  %v5641_v1 = vsub.f32 0.0, %v4237_v61  ;;  %v2904_v61 = vunpack.c.h.bf16 %v4722_v40 }
 0x1f4   : > { %v1284_v30 = vpop.f32.mrf.mxu3  ;;  %v3065_v21 = vpop.eup %3064  ;;  %v1583_v14 = vmul.f32 1.442695, %v1525_v4  ;;  %v1162_v36 = vadd.f32 %v1161_v59, %v4603_v43  ;;  %v1725_v4 = vsub.f32 %v3196_v49, %v4538_v44 }
 0x1f5   : > { %v4735_v26 = vmul.f32 %v3065_v21, %v677_v51  ;;  %v3067_v12 = vpop.eup %3066  ;;  %v4748_v51 = vpop.f32.mrf.mxu0 }
 0x1f6   : > { %3068 = vpow2.f32 %v1583_v14  ;;  %v1279_v62 = vadd.f32 %v1278_v38, %v1162_v36  ;;  %v678_v38 = vsub.f32 1.0, %v3067_v12  ;;  %v2872_v14 = vunpack.c.h.bf16 %v4703_v29  ;;  %v1753_v36 = vpop.permute.xlu1 %1752  ;;  %v4757_v17 = vpop.f32.mrf.mxu1 }
 0x1f7   : > { %2027 = vadd.xlane.f32.xlu0 %v2011_v55  ;;  %3070 = vpow2.f32 %v650_v24  ;;  %v1806_v32 = vmul.f32 %v1753_v36, %v1726_v33  ;;  %v652_v29 = vmul.f32 1.442695, %v5641_v1 }
 0x1f8   : > { %v1432_v43 = vadd.f32 %v4685_v10, %v1279_v62  ;;  %v1805_v10 = vmul.f32 %v4590_v3, %v1725_v4  ;;  %v1852_v62 = vmul.f32 %v1836_v22, %v4735_v26 }
 0x1f9   : > { %1629 = vadd.xlane.f32.xlu1 %v4735_v26  ;;  %2155 = vadd.xlane.f32.xlu2 %v2139_v7  ;;  %v2012_v7 = vmul.f32 %v2840_v28, %v4735_v26  ;;  %v1822_v33 = vmax.f32 %v1806_v32, 0.0  ;;  %v5642_v28 = vsub.f32 0.0, %v4297_v41 }
 0x1fa   : > { %v1529_v48 = vadd.f32 %v4687_v58, %v1432_v43  ;;  %v2219_v58 = vadd.f32 1e-07, %v4709_v5  ;;  %v1821_v49 = vmax.f32 %v1805_v10, 0.0  ;;  %v3198_v43 = vld [vmem:[%s3494_s8 + $0x20] sm:$0xff] }
 0x1fb   : > { %v1166_v59 = vpop.f32.mrf.mxu2  ;;  %v1727_v8 = vsub.f32 %v3198_v43, %v4545_v57  ;;  %v1838_v36 = vmin.f32 %v1822_v33, 1.0 }
 0x1fc   : > { %v1290_v21 = vpop.f32.mrf.mxu3  ;;  %v3069_v44 = vpop.eup %3068  ;;  %v1585_v16 = vmul.f32 1.442695, %v1529_v48  ;;  %v1167_v55 = vadd.f32 %v1166_v59, %v4616_v42  ;;  %v2076_v42 = vmul.f32 %v2872_v14, %v4735_v26  ;;  %v654_v14 = vmul.f32 1.442695, %v5642_v28 }
 0x1fd   : > { %v4752_v24 = vmul.f32 %v3069_v44, %v678_v38  ;;  %v3071_v12 = vpop.eup %3070  ;;  %v1807_v57 = vmul.f32 %v4601_v6, %v1727_v8  ;;  %v2203_v8 = vsub.f32 0.0, %v4709_v5 }
 0x1fe   : > { %3072 = vpow2.f32 %v1585_v16  ;;  %v1285_v3 = vadd.f32 %v1284_v30, %v1167_v55  ;;  %v679_v48 = vsub.f32 1.0, %v3071_v12  ;;  %v4773_v55 = vpop.f32.mrf.mxu0 }
 0x1ff   : > { %1869 = vadd.xlane.f32.xlu0 %v1852_v62  ;;  %3074 = vlog2.f32 %v2219_v58  ;;  %v2220_v58 = vadd.f32 1e-07, %v4735_v26  ;;  %v4780_v62 = vpop.f32.mrf.mxu1 }
 0x200   : > { %v1436_v4 = vadd.f32 %v4698_v53, %v1285_v3  ;;  %3076 = vpow2.f32 %v652_v29  ;;  %v1837_v53 = vmin.f32 %v1821_v49, 1.0  ;;  %v4784_v29 = vld [vmem:[%s4700_s18 + $0x88] sm:$0xff]  }
 0x201   : > { %2029 = vadd.xlane.f32.xlu1 %v2012_v7  ;;  %2093 = vadd.xlane.f32.xlu2 %v2076_v42  ;;  %v4787_v3 = vld [vmem:[%s4700_s18 + $0x8] sm:$0xff]   ;;  %v1823_v42 = vmax.f32 %v1807_v57, 0.0  ;;  %v2907_v33 = vunpack.c.l.bf16 %v4784_v29 }
 0x202   : > { %v1533_v30 = vadd.f32 %v4705_v0, %v1436_v4  ;;  %v2140_v0 = vmul.f32 %v2904_v61, %v4735_v26  ;;  %v3199_v7 = vld [vmem:[%s3494_s8 + $0x28] sm:$0xff]  ;;  %v2843_v61 = vunpack.c.l.bf16 %v4787_v3 }
 0x203   : > { %v1171_v38 = vpop.f32.mrf.mxu2 }
 0x204   : > { %v1296_v22 = vpop.f32.mrf.mxu3  ;;  %v3073_v59 = vpop.eup %3072  ;;  %v1587_v44 = vmul.f32 1.442695, %v1533_v30  ;;  %v1172_v10 = vadd.f32 %v1171_v38, %v4628_v25  ;;  %v1853_v25 = vmul.f32 %v1837_v53, %v4752_v24  ;;  %v5643_v53 = vsub.f32 0.0, %v4347_v34 }
 0x205   : > { %v4770_v40 = vmul.f32 %v3073_v59, %v679_v48  ;;  %v3075_v16 = vpop.eup %3074  ;;  %v1839_v59 = vmin.f32 %v1823_v42, 1.0 }
 0x206   : > { %3078 = vpow2.f32 %v1587_v44  ;;  %v1291_v41 = vadd.f32 %v1290_v21, %v1172_v10  ;;  %v3077_v6 = vpop.eup %3076  ;;  %v1728_v21 = vsub.f32 %v3199_v7, %v4668_v52  ;;  %v2236_v12 = vmul.f32 0.6931472, %v3075_v16  ;;  %v1761_v52 = vpop.permute.xlu0 %1760  ;;  %v4802_v10 = vld [vmem:[%s4700_s18 + $0x48] sm:$0xff]  }
 0x207   : > { %2157 = vadd.xlane.f32.xlu0 %v2140_v0  ;;  %v4778_v32 = vmul.f32 %v1838_v36, %v4770_v40  ;;  %3080 = vpow2.f32 %v654_v14  ;;  %v680_v4 = vsub.f32 1.0, %v3077_v6  ;;  %v656_v44 = vmul.f32 1.442695, %v5643_v53  ;;  %v1548_v7 = vpop.f32.mrf.mxu1  ;;  %v3201_v53 = vld [vmem:[%s3494_s8 + $0x38] sm:$0xff] }
 0x208   : > { %v1440_v1 = vadd.f32 %v4725_v13, %v1291_v41  ;;  %3082 = vlog2.f32 %v2220_v58  ;;  %v1808_v28 = vmul.f32 %v1761_v52, %v1728_v21  ;;  %v2267_v14 = vmul.f32 %v2236_v12, %v2203_v8  ;;  %v3200_v41 = vld [vmem:[%s3494_s8 + $0x30] sm:$0xff] }
 0x209   : > { %1871 = vadd.xlane.f32.xlu1 %v1853_v25  ;;  %1631 = vadd.xlane.f32.xlu2 %v4752_v24  ;;  %v2141_v36 = vmul.f32 %v2907_v33, %v4752_v24  ;;  %v2013_v0 = vmul.f32 %v2843_v61, %v4752_v24  ;;  %v1729_v58 = vsub.f32 %v3200_v41, %v4552_v63  ;;  %v1451_v25 = vpop.f32.mrf.mxu0  ;;  %v2204_v52 = vsub.f32 0.0, %v4735_v26 }
 0x20a   : > { %v1537_v49 = vadd.f32 %v4729_v35, %v1440_v1  ;;  %v1824_v6 = vmax.f32 %v1808_v28, 0.0  ;;  %v1765_v1 = vpop.permute.xlu1 %1764 }
 0x20b   : > { %v1176_v43 = vpop.f32.mrf.mxu2  ;;  %v1809_v63 = vmul.f32 %v1765_v1, %v1729_v58 }
 0x20c   : > { %v1302_v13 = vpop.f32.mrf.mxu3  ;;  %v3079_v30 = vpop.eup %3078  ;;  %v1589_v48 = vmul.f32 1.442695, %v1537_v49  ;;  %v1177_v38 = vadd.f32 %v1176_v43, %v4639_v47  ;;  %v1840_v33 = vmin.f32 %v1824_v6, 1.0 }
 0x20d   : > { %v4797_v35 = vmul.f32 %v3079_v30, %v680_v4  ;;  %v3081_v57 = vpop.eup %3080 }
 0x20e   : > { %3084 = vpow2.f32 %v1589_v48  ;;  %v1297_v5 = vadd.f32 %v1296_v22, %v1177_v38  ;;  %v3083_v16 = vpop.eup %3082  ;;  %v2875_v22 = vunpack.c.l.bf16 %v4802_v10  ;;  %v681_v42 = vsub.f32 1.0, %v3081_v57 }
 0x20f   : > { %2283 = vadd.xlane.f32.xlu0 %v2267_v14  ;;  %v4807_v47 = vmul.f32 %v1839_v59, %v4797_v35  ;;  %3086 = vpow2.f32 %v656_v44  ;;  %v2238_v4 = vmul.f32 0.6931472, %v3083_v16  ;;  %v5644_v48 = vsub.f32 0.0, %v4391_v39  ;;  %v1552_v6 = vpop.f32.mrf.mxu1 }
 0x210   : > { %v1444_v34 = vadd.f32 %v4748_v51, %v1297_v5  ;;  %v2077_v30 = vmul.f32 %v2875_v22, %v4752_v24  ;;  %v1730_v44 = vsub.f32 %v3201_v53, %v4598_v19  ;;  %v1825_v5 = vmax.f32 %v1809_v63, 0.0 }
 0x211   : > { %2159 = vadd.xlane.f32.xlu1 %v2141_v36  ;;  %2031 = vadd.xlane.f32.xlu2 %v2013_v0  ;;  %v2268_v59 = vmul.f32 %v2238_v4, %v2204_v52  ;;  %v2844_v39 = vunpack.c.h.bf16 %v4787_v3  ;;  %v1455_v26 = vpop.f32.mrf.mxu0  ;;  %v2876_v16 = vunpack.c.h.bf16 %v4802_v10  ;;  %v3202_v4 = vld [vmem:[%s3494_s8 + $0x40] sm:$0xff] }
 0x212   : > { %v1541_v21 = vadd.f32 %v4757_v17, %v1444_v34  ;;  %v658_v17 = vmul.f32 1.442695, %v5644_v48  ;;  %v1810_v58 = vmul.f32 %v4610_v15, %v1730_v44  ;;  %v1841_v34 = vmin.f32 %v1825_v5, 1.0  ;;  %v4843_v15 = vld [vmem:[%s4700_s18 + $0x10] sm:$0xff]  }
 0x213   : > { %v1181_v12 = vpop.f32.mrf.mxu2  ;;  %v2014_v22 = vmul.f32 %v2844_v39, %v4770_v40  ;;  %v2078_v10 = vmul.f32 %v2876_v16, %v4770_v40 }
 0x214   : > { %v1308_v49 = vpop.f32.mrf.mxu3  ;;  %v3085_v43 = vpop.eup %3084  ;;  %v1591_v8 = vmul.f32 1.442695, %v1541_v21  ;;  %v1182_v51 = vadd.f32 %v1181_v12, %v4650_v37  ;;  %v1826_v63 = vmax.f32 %v1810_v58, 0.0 }
 0x215   : > { %v4815_v61 = vmul.f32 %v3085_v43, %v681_v42  ;;  %v3087_v14 = vpop.eup %3086  ;;  %v1731_v43 = vsub.f32 %v3202_v4, %v4673_v20  ;;  %v1777_v58 = vpop.permute.xlu1 %1776 }
 0x216   : > { %3088 = vpow2.f32 %v1591_v8  ;;  %v1303_v38 = vadd.f32 %v1302_v13, %v1182_v51  ;;  %v682_v57 = vsub.f32 1.0, %v3087_v14  ;;  %v1842_v20 = vmin.f32 %v1826_v63, 1.0 }
 0x217   : > { %2095 = vadd.xlane.f32.xlu0 %v2077_v30  ;;  %v4822_v28 = vmul.f32 %v1840_v33, %v4815_v61  ;;  %3090 = vpow2.f32 %v658_v17  ;;  %v2847_v33 = vunpack.c.l.bf16 %v4843_v15  ;;  %v2908_v30 = vunpack.c.h.bf16 %v4784_v29  ;;  %v1556_v53 = vpop.f32.mrf.mxu1 }
 0x218   : > { %v1448_v37 = vadd.f32 %v4773_v55, %v1303_v38 }
 0x219   : > { %2285 = vadd.xlane.f32.xlu1 %v2268_v59  ;;  %1633 = vadd.xlane.f32.xlu2 %v4770_v40  ;;  %v1459_v59 = vpop.f32.mrf.mxu0  ;;  %v2015_v29 = vmul.f32 %v2847_v33, %v4797_v35  ;;  %v2142_v44 = vmul.f32 %v2908_v30, %v4770_v40 }
 0x21a   : > { %v1545_v13 = vadd.f32 %v4780_v62, %v1448_v37  ;;  %v5645_v62 = vsub.f32 0.0, %v4284_v56 }
 0x21b   : > { %v1186_v36 = vpop.f32.mrf.mxu2 }
 0x21c   : > { %v1314_v0 = vpop.f32.mrf.mxu3  ;;  %v3089_v41 = vpop.eup %3088  ;;  %v1593_v55 = vmul.f32 1.442695, %v1545_v13  ;;  %v1187_v19 = vadd.f32 %v1186_v36, %v4614_v9  ;;  %v660_v1 = vmul.f32 1.442695, %v5645_v62  ;;  %v4862_v13 = vld [vmem:[%s4700_s18 + $0x50] sm:$0xff]  }
 0x21d   : > { %v4833_v3 = vmul.f32 %v3089_v41, %v682_v57  ;;  %v3091_v9 = vpop.eup %3090  ;;  %v3203_v57 = vld [vmem:[%s3494_s8 + $0x48] sm:$0xff] }
 0x21e   : > { %3092 = vpow2.f32 %v1593_v55  ;;  %v1309_v21 = vadd.f32 %v1308_v49, %v1187_v19  ;;  %v683_v49 = vsub.f32 1.0, %v3091_v9  ;;  %v2879_v55 = vunpack.c.l.bf16 %v4862_v13  ;;  %v2950_v9 = vld [vmem:[%s4700_s18 + $0x90] sm:$0xff]  }
 0x21f   : > { %2033 = vadd.xlane.f32.xlu0 %v2014_v22  ;;  %v4840_v42 = vmul.f32 %v1841_v34, %v4833_v3  ;;  %3094 = vpow2.f32 %v660_v1  ;;  %v1560_v33 = vpop.f32.mrf.mxu1 }
 0x220   : > { %v1452_v12 = vadd.f32 %v1451_v25, %v1309_v21  ;;  %v1773_v25 = vpop.permute.xlu0 %1772  ;;  %v5647_v21 = vsub.f32 0.0, %v4294_v31  ;;  %v2079_v4 = vmul.f32 %v2879_v55, %v4797_v35  ;;  %v2911_v31 = vunpack.c.l.bf16 %v2950_v9 }
 0x221   : > { %2097 = vadd.xlane.f32.xlu1 %v2078_v10  ;;  %1873 = vadd.xlane.f32.xlu2 %v4778_v32  ;;  %v1811_v38 = vmul.f32 %v1773_v25, %v1731_v43 }
 0x222   : > { %v1549_v56 = vadd.f32 %v1548_v7, %v1452_v12  ;;  %v5646_v7 = vsub.f32 0.0, %v4244_v45  ;;  %v1732_v45 = vsub.f32 %v3203_v57, %v4559_v60  ;;  %v664_v10 = vmul.f32 1.442695, %v5647_v21  ;;  %v1463_v12 = vpop.f32.mrf.mxu0 }
 0x223   : > { %v1191_v8 = vpop.f32.mrf.mxu2  ;;  %v1827_v36 = vmax.f32 %v1811_v38, 0.0 }
 0x224   : > { %v1320_v51 = vpop.f32.mrf.mxu3  ;;  %v3093_v52 = vpop.eup %3092  ;;  %v1595_v48 = vmul.f32 1.442695, %v1549_v56  ;;  %v1192_v17 = vadd.f32 %v1191_v8, %v4625_v2  ;;  %v662_v14 = vmul.f32 1.442695, %v5646_v7  ;;  %v1812_v62 = vmul.f32 %v1777_v58, %v1732_v45  ;;  %v3204_v56 = vld [vmem:[%s3494_s8 + $0x50] sm:$0xff] }
 0x225   : > { %v4851_v32 = vmul.f32 %v3093_v52, %v683_v49  ;;  %v3095_v5 = vpop.eup %3094  ;;  %v1843_v22 = vmin.f32 %v1827_v36, 1.0  ;;  %v1733_v49 = vsub.f32 %v3204_v56, %v4612_v46  ;;  %v2848_v52 = vunpack.c.h.bf16 %v4843_v15 }
 0x226   : > { %3096 = vpow2.f32 %v1595_v48  ;;  %v1315_v37 = vadd.f32 %v1314_v0, %v1192_v17  ;;  %v684_v16 = vsub.f32 1.0, %v3095_v5  ;;  %v1828_v8 = vmax.f32 %v1812_v62, 0.0 }
 0x227   : > { %1635 = vadd.xlane.f32.xlu0 %v4797_v35  ;;  %v4859_v2 = vmul.f32 %v1842_v20, %v4851_v32  ;;  %3098 = vpow2.f32 %v662_v14  ;;  %v1813_v20 = vmul.f32 %v4623_v11, %v1733_v49  ;;  %v5648_v7 = vsub.f32 0.0, %v4340_v50  ;;  %v3205_v11 = vld [vmem:[%s3494_s8 + $0x58] sm:$0xff] }
 0x228   : > { %v1456_v39 = vadd.f32 %v1455_v26, %v1315_v37  ;;  %v1844_v46 = vmin.f32 %v1828_v8, 1.0  ;;  %v2016_v15 = vmul.f32 %v2848_v52, %v4815_v61  ;;  %v1734_v5 = vsub.f32 %v3205_v11, %v4683_v18 }
 0x229   : > { %2035 = vadd.xlane.f32.xlu1 %v2015_v29  ;;  %2161 = vadd.xlane.f32.xlu2 %v2142_v44  ;;  %v666_v14 = vmul.f32 1.442695, %v5648_v7  ;;  %v2880_v50 = vunpack.c.h.bf16 %v4862_v13  ;;  %v5650_v13 = vld [vmem:[#allocation15_spill] sm:$0xff] }
 0x22a   : > { %v1553_v0 = vadd.f32 %v1552_v6, %v1456_v39  ;;  %v1829_v39 = vmax.f32 %v1813_v20, 0.0  ;;  %v1467_v57 = vpop.f32.mrf.mxu0 }
 0x22b   : > { %v1196_v41 = vpop.f32.mrf.mxu2 }
 0x22c   : > { %v3097_v19 = vpop.eup %3096  ;;  %v1597_v34 = vmul.f32 1.442695, %v1553_v0  ;;  %v1197_v26 = vadd.f32 %v1196_v41, %v4637_v23  ;;  %v1326_v60 = vpop.f32.mrf.mxu3  ;;  %v2912_v41 = vunpack.c.h.bf16 %v2950_v9 }
 0x22d   : > { %v4868_v1 = vmul.f32 %v3097_v19, %v684_v16  ;;  %v3099_v23 = vpop.eup %3098  ;;  %v1564_v0 = vpop.f32.mrf.mxu1 }
 0x22e   : > { %3100 = vpow2.f32 %v1597_v34  ;;  %v1321_v6 = vadd.f32 %v1320_v51, %v1197_v26  ;;  %v685_v30 = vsub.f32 1.0, %v3099_v23  ;;  %v1785_v19 = vpop.permute.xlu0 %1784  ;;  %v5649_v34 = vld [vmem:[#allocation28_spill] sm:$0xff]  ;;  %v1845_v26 = vmin.f32 %v1829_v39, 1.0  ;;  %v4924_v39 = vld [vmem:[%s4700_s18 + $0x98] sm:$0xff]  }
 0x22f   : > { %1875 = vadd.xlane.f32.xlu0 %v4807_v47  ;;  %v4876_v43 = vmul.f32 %v1843_v22, %v4868_v1  ;;  %3102 = vpow2.f32 %v664_v10  ;;  %v1814_v22 = vmul.f32 %v1785_v19, %v1734_v5  ;;  %v2144_v9 = vmul.f32 %v2912_v41, %v4815_v61  ;;  %v5655_v19 = vld [vmem:[#allocation18_spill] sm:$0xff] }
 0x230   : > { %v1460_v63 = vadd.f32 %v1459_v59, %v1321_v6  ;;  %v2143_v59 = vmul.f32 %v2911_v31, %v4797_v35  ;;  %v2935_v6 = vld [vmem:[%s4700_s18 + $0x18] sm:$0xff]  }
 0x231   : > { %1637 = vadd.xlane.f32.xlu1 %v4815_v61  ;;  %2099 = vadd.xlane.f32.xlu2 %v2079_v4  ;;  %v1830_v56 = vmax.f32 %v1814_v22, 0.0  ;;  %v2851_v8 = vunpack.c.l.bf16 %v2935_v6 }
 0x232   : > { %v1557_v51 = vadd.f32 %v1556_v53, %v1460_v63  ;;  %v4909_v63 = vld [vmem:[%s4700_s18 + $0x58] sm:$0xff]  }
 0x233   : > { %v1201_v47 = vpop.f32.mrf.mxu2  ;;  %v1846_v20 = vmin.f32 %v1830_v56, 1.0  ;;  %v2017_v7 = vmul.f32 %v2851_v8, %v4833_v3 }
 0x234   : > { %v3101_v25 = vpop.eup %3100  ;;  %v1599_v48 = vmul.f32 1.442695, %v1557_v51  ;;  %v1202_v17 = vadd.f32 %v1201_v47, %v4646_v27  ;;  %v1332_v53 = vpop.f32.mrf.mxu3  ;;  %v2883_v47 = vunpack.c.l.bf16 %v4909_v63 }
 0x235   : > { %v4884_v38 = vmul.f32 %v3101_v25, %v685_v30  ;;  %v3103_v27 = vpop.eup %3102  ;;  %v1471_v51 = vpop.f32.mrf.mxu0 }
 0x236   : > { %3104 = vpow2.f32 %v1599_v48  ;;  %v1327_v37 = vadd.f32 %v1326_v60, %v1202_v17  ;;  %v686_v36 = vsub.f32 1.0, %v3103_v27  ;;  %v5651_v60 = vsub.f32 0.0, %v5650_v13  ;;  %v5652_v48 = vld [vmem:[#allocation17_spill] sm:$0xff] }
 0x237   : > { %2163 = vadd.xlane.f32.xlu0 %v2143_v59  ;;  %v4891_v29 = vmul.f32 %v1844_v46, %v4884_v38  ;;  %3106 = vpow2.f32 %v666_v14  ;;  %v1568_v46 = vpop.f32.mrf.mxu1  ;;  %v5653_v14 = vld [vmem:[#allocation33_spill] sm:$0xff]  ;;  %v2081_v27 = vmul.f32 %v2883_v47, %v4833_v3 }
 0x238   : > { %v1464_v44 = vadd.f32 %v1463_v12, %v1327_v37  ;;  %v668_v21 = vmul.f32 1.442695, %v5651_v60  ;;  %v5654_v37 = vsub.f32 0.0, %v5653_v14 }
 0x239   : > { %2037 = vadd.xlane.f32.xlu2 %v2016_v15  ;;  %1877 = vadd.xlane.f32.xlu1 %v4822_v28  ;;  %v2080_v28 = vmul.f32 %v2880_v50, %v4815_v61 }
 0x23a   : > { %v1561_v45 = vadd.f32 %v1560_v33, %v1464_v44 }
 0x23b   : > { %v1206_v16 = vpop.f32.mrf.mxu2 }
 0x23c   : > { %v3105_v55 = vpop.eup %3104  ;;  %v1601_v58 = vmul.f32 1.442695, %v1561_v45  ;;  %v1207_v18 = vadd.f32 %v1206_v16, %v5649_v34  ;;  %v1338_v49 = vpop.f32.mrf.mxu3  ;;  %v2852_v16 = vunpack.c.h.bf16 %v2935_v6 }
 0x23d   : > { %v4898_v62 = vmul.f32 %v3105_v55, %v686_v36  ;;  %v3107_v4 = vpop.eup %3106  ;;  %v1475_v34 = vpop.f32.mrf.mxu0 }
 0x23e   : > { %3108 = vpow2.f32 %v1601_v58  ;;  %v1333_v10 = vadd.f32 %v1332_v53, %v1207_v18  ;;  %v687_v31 = vsub.f32 1.0, %v3107_v4  ;;  %v670_v53 = vmul.f32 1.442695, %v5654_v37  ;;  %v4936_v6 = vpop.permute.xlu1 %1788  ;;  %v5658_v4 = vld [vmem:[#allocation24_spill] sm:$0xff] }
 0x23f   : > { %2101 = vadd.xlane.f32.xlu0 %v2080_v28  ;;  %v4906_v12 = vmul.f32 %v1845_v26, %v4898_v62  ;;  %3110 = vpow2.f32 %v668_v21  ;;  %v5656_v26 = vld [vmem:[#allocation25_spill] sm:$0xff]  ;;  %v1572_v13 = vpop.f32.mrf.mxu1  ;;  %v2018_v21 = vmul.f32 %v2852_v16, %v4851_v32 }
 0x240   : > { %v1468_v23 = vadd.f32 %v1467_v57, %v1333_v10  ;;  %v5657_v22 = vsub.f32 0.0, %v5656_v26 }
 0x241   : > { %1639 = vadd.xlane.f32.xlu2 %v4833_v3  ;;  %2165 = vadd.xlane.f32.xlu1 %v2144_v9 }
 0x242   : > { %v1565_v33 = vadd.f32 %v1564_v0, %v1468_v23  ;;  %v2915_v0 = vunpack.c.l.bf16 %v4924_v39  ;;  %v672_v28 = vmul.f32 1.442695, %v5657_v22  ;;  %v1832_v23 = vmax.f32 %v5658_v4, 0.0  ;;  %v2944_v22 = vld [vmem:[%s4700_s18 + $0x60] sm:$0xff]  }
 0x243   : > { %v1211_v30 = vpop.f32.mrf.mxu2 }
 0x244   : > { %v3109_v52 = vpop.eup %3108  ;;  %v1603_v25 = vmul.f32 1.442695, %v1565_v33  ;;  %v1212_v17 = vadd.f32 %v1211_v30, %v5652_v48  ;;  %v1344_v45 = vpop.f32.mrf.mxu3  ;;  %v2145_v60 = vmul.f32 %v2915_v0, %v4833_v3  ;;  %v2884_v33 = vunpack.c.h.bf16 %v4909_v63  ;;  %v5659_v30 = vld [vmem:[#allocation34_spill] sm:$0xff] }
 0x245   : > { %v4914_v59 = vmul.f32 %v3109_v52, %v687_v31  ;;  %v3111_v11 = vpop.eup %3110  ;;  %v1848_v52 = vmin.f32 %v1832_v23, 1.0  ;;  %v1479_v14 = vpop.f32.mrf.mxu0 }
 0x246   : > { %3112 = vpow2.f32 %v1603_v25  ;;  %v1339_v15 = vadd.f32 %v1338_v49, %v1212_v17  ;;  %v688_v50 = vsub.f32 1.0, %v3111_v11  ;;  %v5660_v17 = vld [vmem:[#allocation14_spill] sm:$0xff]  ;;  %v2082_v63 = vmul.f32 %v2884_v33, %v4851_v32  ;;  %v3206_v11 = vld [vmem:[%s3494_s8 + $0x78] sm:$0xff] }
 0x247   : > { %2039 = vadd.xlane.f32.xlu0 %v2017_v7  ;;  %v4921_v44 = vmul.f32 %v1846_v20, %v4914_v59  ;;  %3114 = vpow2.f32 %v670_v53  ;;  %v5661_v20 = vsub.f32 0.0, %v5660_v17 }
 0x248   : > { %v1472_v5 = vadd.f32 %v1471_v51, %v1339_v15 }
 0x249   : > { %1879 = vadd.xlane.f32.xlu2 %v4840_v42  ;;  %2103 = vadd.xlane.f32.xlu1 %v2081_v27  ;;  %v2936_v27 = vld [vmem:[%s4700_s18 + $0x20] sm:$0xff]  }
 0x24a   : > { %v1569_v57 = vadd.f32 %v1568_v46, %v1472_v5  ;;  %v674_v46 = vmul.f32 1.442695, %v5661_v20  ;;  %v5662_v5 = vld [vmem:[#allocation19_spill] sm:$0xff]  ;;  %v2888_v20 = vunpack.c.h.bf16 %v2944_v22 }
 0x24b   : > { %v1216_v36 = vpop.f32.mrf.mxu2 }
 0x24c   : > { %v3113_v41 = vpop.eup %3112  ;;  %v1605_v55 = vmul.f32 1.442695, %v1569_v57  ;;  %v1217_v58 = vadd.f32 %v1216_v36, %v5655_v19  ;;  %v1350_v48 = vpop.f32.mrf.mxu3  ;;  %v1738_v57 = vsub.f32 %v3206_v11, %v5662_v5  ;;  %v2084_v5 = vmul.f32 %v2888_v20, %v4884_v38 }
 0x24d   : > { %v4929_v18 = vmul.f32 %v3113_v41, %v688_v50  ;;  %v3115_v10 = vpop.eup %3114  ;;  %v1576_v50 = vpop.f32.mrf.mxu1  ;;  %v2855_v41 = vunpack.c.l.bf16 %v2936_v27 }
 0x24e   : > { %3116 = vpow2.f32 %v1605_v55  ;;  %v1345_v42 = vadd.f32 %v1344_v45, %v1217_v58  ;;  %v689_v49 = vsub.f32 1.0, %v3115_v10  ;;  %v2916_v45 = vunpack.c.h.bf16 %v4924_v39  ;;  %v1801_v36 = vpop.permute.xlu1 %1800 }
 0x24f   : > { %1641 = vadd.xlane.f32.xlu0 %v4851_v32  ;;  %3118 = vpow2.f32 %v672_v28  ;;  %v1818_v58 = vmul.f32 %v1801_v36, %v1738_v57  ;;  %v2019_v39 = vmul.f32 %v2855_v41, %v4868_v1  ;;  %v2937_v57 = vld [vmem:[%s4700_s18 + $0x28] sm:$0xff]  }
 0x250   : > { %v1476_v9 = vadd.f32 %v1475_v34, %v1345_v42  ;;  %v2146_v26 = vmul.f32 %v2916_v45, %v4851_v32  ;;  %v2952_v42 = vld [vmem:[%s4700_s18 + $0xa0] sm:$0xff]  }
 0x251   : > { %2167 = vadd.xlane.f32.xlu2 %v2145_v60  ;;  %2041 = vadd.xlane.f32.xlu1 %v2018_v21  ;;  %v2887_v60 = vunpack.c.l.bf16 %v2944_v22  ;;  %v2919_v4 = vunpack.c.l.bf16 %v2952_v42 }
 0x252   : > { %v1573_v56 = vadd.f32 %v1572_v13, %v1476_v9  ;;  %v1834_v13 = vmax.f32 %v1818_v58, 0.0 }
 0x253   : > { %v1221_v8 = vpop.f32.mrf.mxu2 }
 0x254   : > { %v3117_v31 = vpop.eup %3116  ;;  %v1607_v51 = vmul.f32 1.442695, %v1573_v56  ;;  %v1222_v47 = vadd.f32 %v1221_v8, %v5659_v30  ;;  %v1850_v8 = vmin.f32 %v1834_v13, 1.0  ;;  %v2147_v30 = vmul.f32 %v2919_v4, %v4868_v1 }
 0x255   : > { %v4941_v25 = vmul.f32 %v3117_v31, %v689_v49  ;;  %v3119_v53 = vpop.eup %3118 }
 0x256   : > { %3120 = vpow2.f32 %v1607_v51  ;;  %v1351_v7 = vadd.f32 %v1350_v48, %v1222_v47  ;;  %v690_v16 = vsub.f32 1.0, %v3119_v53  ;;  %v2083_v51 = vmul.f32 %v2887_v60, %v4868_v1 }
 0x257   : > { %1881 = vadd.xlane.f32.xlu0 %v4859_v2  ;;  %v4948_v37 = vmul.f32 %v1848_v52, %v4941_v25  ;;  %3122 = vpow2.f32 %v674_v46  ;;  %v4955_v2 = vpop.permute.xlu0 %1796  ;;  %v2856_v52 = vunpack.c.h.bf16 %v2936_v27 }
 0x258   : > { %v1480_v15 = vadd.f32 %v1479_v14, %v1351_v7 }
 0x259   : > { %2105 = vadd.xlane.f32.xlu2 %v2082_v63  ;;  %1643 = vadd.xlane.f32.xlu1 %v4868_v1 }
 0x25a   : > { %v1577_v0 = vadd.f32 %v1576_v50, %v1480_v15  ;;  %v2020_v15 = vmul.f32 %v2856_v52, %v4884_v38  ;;  %v2860_v52 = vunpack.c.h.bf16 %v2937_v57 }
 0x25c   : > { %v3121_v55 = vpop.eup %3120  ;;  %v1609_v19 = vmul.f32 1.442695, %v1577_v0  ;;  %v2920_v0 = vunpack.c.h.bf16 %v2952_v42  ;;  %v2945_v42 = vld [vmem:[%s4700_s18 + $0x68] sm:$0xff]  }
 0x25d   : > { %v4957_v34 = vmul.f32 %v3121_v55, %v690_v16  ;;  %v3123_v28 = vpop.eup %3122  ;;  %v2859_v16 = vunpack.c.l.bf16 %v2937_v57 }
 0x25e   : > { %3124 = vpow2.f32 %v1609_v19  ;;  %v691_v10 = vsub.f32 1.0, %v3123_v28 }
 0x25f   : > { %2169 = vadd.xlane.f32.xlu0 %v2146_v26 }
 0x261   : > { %2043 = vadd.xlane.f32.xlu2 %v2019_v39  ;;  %1883 = vadd.xlane.f32.xlu1 %v4876_v43  ;;  %v5663_v43 = vld [vmem:[#allocation31_spill] sm:$0xff]  ;;  %v2021_v39 = vmul.f32 %v2859_v16, %v4898_v62 }
 0x262   : > { %v1628_v21 = vpop.xlane.xlu0 %1627  ;;  %vm2459_vm1 = vcmp.eq.s32.totalorder %v5663_v43, 0  ;;  %vm2476_vm2 = vcmp.eq.s32.totalorder %v5663_v43, 1  ;;  %vm2493_vm3 = vcmp.eq.s32.totalorder %v5663_v43, 2  ;;  %vm2510_vm4 = vcmp.eq.s32.totalorder %v5663_v43, 3 }
 0x263   : > { %v1995_v9 = vsub.f32 1.0, %v1628_v21  ;;  %vm2527_vm5 = vcmp.eq.s32.totalorder %v5663_v43, 4  ;;  %vm2544_vm6 = vcmp.eq.s32.totalorder %v5663_v43, 5  ;;  %vm2561_vm7 = vcmp.eq.s32.totalorder %v5663_v43, 6 }
 0x264   : > { %v3125_v23 = vpop.eup %3124  ;;  %v2092_v56 = vpop.xlane.xlu1 %2091 }
 0x265   : > { %v1868_v49 = vpop.xlane.xlu2 %1867  ;;  %v4964_v33 = vmul.f32 %v3125_v23, %v691_v10  ;;  %v2123_v31 = vadd.f32 %v2092_v56, %v1995_v9  ;;  %v2953_v23 = vld [vmem:[%s4700_s18 + $0xa8] sm:$0xff]  }
 0x266   : > { %v2460_v46 = vsel %vm2459_vm1, %v1868_v49, 0.0 }
 0x267   : > { %2107 = vadd.xlane.f32.xlu0 %v2083_v51  ;;  %v4969_v47 = vmul.f32 %v1850_v8, %v4964_v33  ;;  %v2923_v8 = vunpack.c.l.bf16 %v2953_v23 }
 0x269   : > { %1645 = vadd.xlane.f32.xlu2 %v4884_v38  ;;  %2171 = vadd.xlane.f32.xlu1 %v2147_v30 }
 0x26a   : > { %v2028_v48 = vpop.xlane.xlu0 %2027 }
 0x26b   : > { %v2059_v17 = vadd.f32 %v2028_v48, %v1995_v9 }
 0x26c   : > { %v1630_v7 = vpop.xlane.xlu1 %1629 }
 0x26d   : > { %v2156_v14 = vpop.xlane.xlu2 %2155  ;;  %v2477_v63 = vsel %vm2476_vm2, %v2059_v17, %v2460_v46  ;;  %v1996_v36 = vsub.f32 1.0, %v1630_v7  ;;  %v2149_v46 = vmul.f32 %v2923_v8, %v4898_v62 }
 0x26e   : > { %v2187_v53 = vadd.f32 %v2156_v14, %v1995_v9  ;;  %v2494_v27 = vsel %vm2493_vm3, %v2123_v31, %v2477_v63  ;;  %v2022_v63 = vmul.f32 %v2860_v52, %v4914_v59 }
 0x26f   : > { %2045 = vadd.xlane.f32.xlu0 %v2020_v15  ;;  %v5664_v15 = vld [vmem:[#allocation32_spill] sm:$0xff] }
 0x270   : > { %v2511_v11 = vsel %vm2510_vm4, %v2187_v53, %v2494_v27  ;;  %v3207_v53 = vld [vmem:[%s3494_s8 + $0x60] sm:$0xff] }
 0x271   : > { %v2528_v50 = vsel %vm2527_vm5, %v1628_v21, %v2511_v11  ;;  %1885 = vadd.xlane.f32.xlu2 %v4891_v29  ;;  %2109 = vadd.xlane.f32.xlu1 %v2084_v5  ;;  %v2148_v29 = vmul.f32 %v2920_v0, %v4884_v38  ;;  %v2891_v21 = vunpack.c.l.bf16 %v2945_v42  ;;  %v1735_v27 = vsub.f32 %v3207_v53, %v5664_v15 }
 0x272   : > { %v1870_v45 = vpop.xlane.xlu0 %1869  ;;  %v2892_v11 = vunpack.c.h.bf16 %v2945_v42 }
 0x273   : > { %v2461_v26 = vsel %vm2459_vm1, %v1870_v45, 0.0  ;;  %v2085_v49 = vmul.f32 %v2891_v21, %v4898_v62  ;;  %v1815_v0 = vmul.f32 %v4936_v6, %v1735_v27  ;;  %v2946_v6 = vld [vmem:[%s4700_s18 + $0x70] sm:$0xff]  }
 0x274   : > { %v2030_v41 = vpop.xlane.xlu1 %2029  ;;  %v3208_v27 = vld [vmem:[%s3494_s8 + $0x70] sm:$0xff] }
 0x275   : > { %v2094_v55 = vpop.xlane.xlu2 %2093  ;;  %v2060_v19 = vadd.f32 %v2030_v41, %v1996_v36 }
 0x276   : > { %v2124_v58 = vadd.f32 %v2094_v55, %v1996_v36  ;;  %v2086_v55 = vmul.f32 %v2892_v11, %v4914_v59  ;;  %v1737_v11 = vsub.f32 %v3208_v27, %v4696_v54 }
 0x277   : > { %v2478_v22 = vsel %vm2476_vm2, %v2060_v19, %v2461_v26  ;;  %1647 = vadd.xlane.f32.xlu0 %v4898_v62  ;;  %v2938_v19 = vld [vmem:[%s4700_s18 + $0x30] sm:$0xff]  }
 0x278   : > { %v2495_v28 = vsel %vm2493_vm3, %v2124_v58, %v2478_v22  ;;  %v1831_v22 = vmax.f32 %v1815_v0, 0.0  ;;  %v1817_v0 = vmul.f32 %v4955_v2, %v1737_v11 }
 0x279   : > { %2173 = vadd.xlane.f32.xlu2 %v2148_v29  ;;  %2047 = vadd.xlane.f32.xlu1 %v2021_v39  ;;  %v2863_v39 = vunpack.c.l.bf16 %v2938_v19 }
 0x27a   : > { %v2158_v13 = vpop.xlane.xlu0 %2157 }
 0x27b   : > { %v2188_v60 = vadd.f32 %v2158_v13, %v1996_v36  ;;  %v2895_v13 = vunpack.c.l.bf16 %v2946_v6 }
 0x27c   : > { %v1872_v10 = vpop.xlane.xlu1 %1871 }
 0x27d   : > { %v1632_v9 = vpop.xlane.xlu2 %1631  ;;  %v2512_v4 = vsel %vm2510_vm4, %v2188_v60, %v2495_v28 }
 0x27e   : > { %v2529_v56 = vsel %vm2527_vm5, %v1630_v7, %v2512_v4  ;;  %v1997_v51 = vsub.f32 1.0, %v1632_v9  ;;  %v2462_v7 = vsel %vm2459_vm1, %v1872_v10, 0.0  ;;  %v1847_v10 = vmin.f32 %v1831_v22, 1.0  ;;  %v2939_v22 = vld [vmem:[%s4700_s18 + $0x38] sm:$0xff]  }
 0x27f   : > { %1887 = vadd.xlane.f32.xlu0 %v4906_v12 }
 0x280   : > { %v1863_v8 = vmul.f32 %v1847_v10, %v4929_v18 }
 0x281   : > { %2111 = vadd.xlane.f32.xlu2 %v2085_v49  ;;  %1649 = vadd.xlane.f32.xlu1 %v4914_v59 }
 0x282   : > { %v2284_v31 = vpop.xlane.xlu0 %2283 }
 0x283   : > { %v5012_v30 = vsel %vm2544_vm6, %v2284_v31, %v2528_v50  ;;  %v2924_v50 = vunpack.c.h.bf16 %v2953_v23  ;;  %v2087_v31 = vmul.f32 %v2895_v13, %v4929_v18 }
 0x284   : > { %v2160_v48 = vpop.xlane.xlu1 %2159 }
 0x285   : > { %v2032_v17 = vpop.xlane.xlu2 %2031  ;;  %v2189_v20 = vadd.f32 %v2160_v48, %v1997_v51  ;;  %v2150_v58 = vmul.f32 %v2924_v50, %v4914_v59 }
 0x286   : > { %v2061_v12 = vadd.f32 %v2032_v17, %v1997_v51 }
 0x287   : > { %2175 = vadd.xlane.f32.xlu0 %v2149_v46 }
 0x288   : > { %v2479_v14 = vsel %vm2476_vm2, %v2061_v12, %v2462_v7 }
 0x289   : > { %2049 = vadd.xlane.f32.xlu2 %v2022_v63  ;;  %1889 = vadd.xlane.f32.xlu1 %v4921_v44 }
 0x28a   : > { %v2096_v5 = vpop.xlane.xlu0 %2095 }
 0x28b   : > { %v2125_v57 = vadd.f32 %v2096_v5, %v1997_v51  ;;  %v2954_v51 = vld [vmem:[%s4700_s18 + $0xb0] sm:$0xff]  }
 0x28c   : > { %v2286_v45 = vpop.xlane.xlu1 %2285  ;;  %v2927_v17 = vunpack.c.l.bf16 %v2954_v51  ;;  %v2928_v2 = vunpack.c.h.bf16 %v2954_v51 }
 0x28d   : > { %v1634_v36 = vpop.xlane.xlu2 %1633  ;;  %v2496_v16 = vsel %vm2493_vm3, %v2125_v57, %v2479_v14  ;;  %v5028_v41 = vsel %vm2544_vm6, %v2286_v45, %v2529_v56  ;;  %v2896_v45 = vunpack.c.h.bf16 %v2946_v6 }
 0x28e   : > { %v2513_v44 = vsel %vm2510_vm4, %v2189_v20, %v2496_v16  ;;  %v1998_v29 = vsub.f32 1.0, %v1634_v36  ;;  %v2864_v20 = vunpack.c.h.bf16 %v2938_v19  ;;  %v2151_v53 = vmul.f32 %v2927_v17, %v4929_v18 }
 0x28f   : > { %2113 = vadd.xlane.f32.xlu0 %v2086_v55  ;;  %v5037_v26 = vsel %vm2527_vm5, %v1632_v9, %v2513_v44  ;;  %v2023_v9 = vmul.f32 %v2863_v39, %v4929_v18 }
 0x290   : > { %v2024_v15 = vmul.f32 %v2864_v20, %v4941_v25 }
 0x291   : > { %1651 = vadd.xlane.f32.xlu2 %v4929_v18  ;;  %2177 = vadd.xlane.f32.xlu1 %v2150_v58  ;;  %v1833_v58 = vmax.f32 %v1817_v0, 0.0 }
 0x292   : > { %v2034_v28 = vpop.xlane.xlu0 %2033 }
 0x293   : > { %v2062_v42 = vadd.f32 %v2034_v28, %v1998_v29  ;;  %v2867_v28 = vunpack.c.l.bf16 %v2939_v22 }
 0x294   : > { %v2098_v60 = vpop.xlane.xlu1 %2097 }
 0x295   : > { %v1874_v21 = vpop.xlane.xlu2 %1873  ;;  %v2126_v4 = vadd.f32 %v2098_v60, %v1998_v29 }
 0x296   : > { %v2463_v23 = vsel %vm2459_vm1, %v1874_v21, 0.0 }
 0x297   : > { %v2480_v56 = vsel %vm2476_vm2, %v2062_v42, %v2463_v23  ;;  %2051 = vadd.xlane.f32.xlu0 %v2023_v9  ;;  %v1849_v42 = vmin.f32 %v1833_v58, 1.0  ;;  %v2947_v23 = vld [vmem:[%s4700_s18 + $0x78] sm:$0xff]  }
 0x298   : > { %v2497_v49 = vsel %vm2493_vm3, %v2126_v4, %v2480_v56  ;;  %v2152_v4 = vmul.f32 %v2928_v2, %v4941_v25  ;;  %v2899_v51 = vunpack.c.l.bf16 %v2947_v23  ;;  %v2900_v0 = vunpack.c.h.bf16 %v2947_v23 }
 0x299   : > { %1891 = vadd.xlane.f32.xlu2 %v1863_v8  ;;  %2115 = vadd.xlane.f32.xlu1 %v2087_v31  ;;  %v1865_v8 = vmul.f32 %v1849_v42, %v4957_v34  ;;  %v5088_v31 = vld [vmem:[%s4700_s18 + $0xb8] sm:$0xff]   ;;  %v2221_v2 = vadd.f32 1e-07, %v4752_v24  ;;  %v2228_v23 = vadd.f32 1e-07, %v4884_v38 }
 0x29a   : > { %v1636_v52 = vpop.xlane.xlu0 %1635  ;;  %v2931_v20 = vunpack.c.l.bf16 %v5088_v31 }
 0x29b   : > { %v1999_v48 = vsub.f32 1.0, %v1636_v52 }
 0x29c   : > { %v2036_v12 = vpop.xlane.xlu1 %2035  ;;  %v2153_v27 = vmul.f32 %v2931_v20, %v4957_v34 }
 0x29d   : > { %v2162_v46 = vpop.xlane.xlu2 %2161  ;;  %v2063_v7 = vadd.f32 %v2036_v12, %v1999_v48 }
 0x29e   : > { %v2190_v14 = vadd.f32 %v2162_v46, %v1998_v29  ;;  %v2222_v46 = vadd.f32 1e-07, %v4770_v40 }
 0x29f   : > { %1653 = vadd.xlane.f32.xlu0 %v4941_v25 }
 0x2a0   : > { %v2514_v63 = vsel %vm2510_vm4, %v2190_v14, %v2497_v49  ;;  %v2025_v49 = vmul.f32 %v2867_v28, %v4957_v34  ;;  %3126 = vlog2.f32 %v2222_v46  ;;  %v2090_v28 = vmul.f32 %v2900_v0, %v4964_v33 }
 0x2a1   : > { %v5060_v5 = vsel %vm2527_vm5, %v1634_v36, %v2514_v63  ;;  %2179 = vadd.xlane.f32.xlu2 %v2151_v53  ;;  %2053 = vadd.xlane.f32.xlu1 %v2024_v15  ;;  %v2088_v36 = vmul.f32 %v2896_v45, %v4941_v25  ;;  %v2089_v63 = vmul.f32 %v2899_v51, %v4957_v34  ;;  %v2223_v53 = vadd.f32 1e-07, %v4797_v35 }
 0x2a2   : > { %v1876_v57 = vpop.xlane.xlu0 %1875 }
 0x2a3   : > { %v2464_v50 = vsel %vm2459_vm1, %v1876_v57, 0.0  ;;  %3128 = vlog2.f32 %v2223_v53  ;;  %v2315_v53 = vld [vmem:[%s3481_s14] sm:$0xff] }
 0x2a4   : > { %v2481_v16 = vsel %vm2476_vm2, %v2063_v7, %v2464_v50  ;;  %v1638_v55 = vpop.xlane.xlu1 %1637  ;;  %v2868_v50 = vunpack.c.h.bf16 %v2939_v22 }
 0x2a5   : > { %v2100_v19 = vpop.xlane.xlu2 %2099  ;;  %v2000_v29 = vsub.f32 1.0, %v1638_v55 }
 0x2a6   : > { %v2127_v54 = vadd.f32 %v2100_v19, %v1999_v48 }
 0x2a7   : > { %1893 = vadd.xlane.f32.xlu0 %v4948_v37 }
 0x2a8   : > { %v2498_v44 = vsel %vm2493_vm3, %v2127_v54, %v2481_v16 }
 0x2a9   : > { %2117 = vadd.xlane.f32.xlu2 %v2088_v36  ;;  %1655 = vadd.xlane.f32.xlu1 %v4957_v34 }
 0x2aa   : > { %v2164_v6 = vpop.xlane.xlu0 %2163 }
 0x2ab   : > { %v2191_v39 = vadd.f32 %v2164_v6, %v1999_v48  ;;  %v3127_v6 = vpop.eup %3126 }
 0x2ac   : > { %v1878_v60 = vpop.xlane.xlu1 %1877  ;;  %v3129_v42 = vpop.eup %3128 }
 0x2ad   : > { %v2038_v13 = vpop.xlane.xlu2 %2037  ;;  %v2515_v37 = vsel %vm2510_vm4, %v2191_v39, %v2498_v44  ;;  %v2465_v10 = vsel %vm2459_vm1, %v1878_v60, 0.0  ;;  %v2225_v44 = vadd.f32 1e-07, %v4833_v3 }
 0x2ae   : > { %v2064_v21 = vadd.f32 %v2038_v13, %v2000_v29  ;;  %v5081_v9 = vsel %vm2527_vm5, %v1636_v52, %v2515_v37  ;;  %v2242_v13 = vmul.f32 0.6931472, %v3127_v6  ;;  %v2206_v37 = vsub.f32 0.0, %v4770_v40 }
 0x2af   : > { %2181 = vadd.xlane.f32.xlu0 %v2152_v4  ;;  %3130 = vlog2.f32 %v2225_v44  ;;  %v2244_v4 = vmul.f32 0.6931472, %v3129_v42  ;;  %v2224_v40 = vadd.f32 1e-07, %v4815_v61  ;;  %v2331_v44 = vmax.f32 %v2315_v53, 0.0 }
 0x2b0   : > { %v2482_v56 = vsel %vm2476_vm2, %v2064_v21, %v2465_v10  ;;  %3132 = vlog2.f32 %v2221_v2  ;;  %v2932_v21 = vunpack.c.h.bf16 %v5088_v31  ;;  %v2229_v31 = vadd.f32 1e-07, %v4898_v62 }
 0x2b1   : > { %2055 = vadd.xlane.f32.xlu2 %v2025_v49  ;;  %1895 = vadd.xlane.f32.xlu1 %v1865_v8  ;;  %v2227_v2 = vadd.f32 1e-07, %v4868_v1  ;;  %v2232_v6 = vadd.f32 1e-07, %v4941_v25 }
 0x2b2   : > { %v2102_v48 = vpop.xlane.xlu0 %2101  ;;  %v2154_v46 = vmul.f32 %v2932_v21, %v4964_v33  ;;  %v2318_v21 = vld [vmem:[%s3481_s14 + $0x18] sm:$0xff] }
 0x2b3   : > { %v2128_v17 = vadd.f32 %v2102_v48, %v2000_v29  ;;  %v2270_v48 = vmul.f32 %v2242_v13, %v2206_v37  ;;  %v2347_v37 = vmul.f32 20.0, %v2331_v44  ;;  %v2215_v44 = vsub.f32 0.0, %v4929_v18 }
 0x2b4   : > { %v2166_v52 = vpop.xlane.xlu1 %2165 }
 0x2b5   : > { %v5091_v12 = vpop.xlane.xlu2 %1639  ;;  %v2499_v7 = vsel %vm2493_vm3, %v2128_v17, %v2482_v56  ;;  %v2192_v14 = vadd.f32 %v2166_v52, %v2000_v29  ;;  %v2226_v29 = vadd.f32 1e-07, %v4851_v32  ;;  %v3131_v17 = vpop.eup %3130 }
 0x2b6   : > { %v2001_v57 = vsub.f32 1.0, %v5091_v12  ;;  %v3133_v20 = vpop.eup %3132 }
 0x2b7   : > { %v2516_v15 = vsel %vm2510_vm4, %v2192_v14, %v2499_v7  ;;  %2119 = vadd.xlane.f32.xlu0 %v2089_v63  ;;  %3134 = vlog2.f32 %v2226_v29  ;;  %v2248_v63 = vmul.f32 0.6931472, %v3131_v17 }
 0x2b8   : > { %v5103_v11 = vsel %vm2527_vm5, %v1638_v55, %v2516_v15  ;;  %v2026_v55 = vmul.f32 %v2868_v50, %v4964_v33  ;;  %3136 = vlog2.f32 %v2228_v23  ;;  %v2240_v50 = vmul.f32 0.6931472, %v3133_v20 }
 0x2b9   : > { %1657 = vadd.xlane.f32.xlu2 %v4964_v33  ;;  %2183 = vadd.xlane.f32.xlu1 %v2153_v27  ;;  %3138 = vlog2.f32 %v2224_v40  ;;  %v2212_v23 = vsub.f32 0.0, %v4884_v38  ;;  %v2363_v20 = vmul.f32 1.442695, %v2347_v37 }
 0x2ba   : > { %v2040_v45 = vpop.xlane.xlu0 %2039  ;;  %3140 = vlog2.f32 %v2229_v31 }
 0x2bb   : > { %v2065_v16 = vadd.f32 %v2040_v45, %v2001_v57 }
 0x2bc   : > { %v2104_v54 = vpop.xlane.xlu1 %2103 }
 0x2bd   : > { %v1880_v19 = vpop.xlane.xlu2 %1879  ;;  %v2129_v58 = vadd.f32 %v2104_v54, %v2001_v57  ;;  %v2231_v54 = vadd.f32 1e-07, %v4929_v18 }
 0x2be   : > { %v2466_v36 = vsel %vm2459_vm1, %v1880_v19, 0.0  ;;  %v2205_v19 = vsub.f32 0.0, %v4752_v24 }
 0x2bf   : > { %v2483_v22 = vsel %vm2476_vm2, %v2065_v16, %v2466_v36  ;;  %2057 = vadd.xlane.f32.xlu0 %v2026_v55  ;;  %3142 = vlog2.f32 %v2231_v54 }
 0x2c0   : > { %v2500_v39 = vsel %vm2493_vm3, %v2129_v58, %v2483_v22  ;;  %v2269_v24 = vmul.f32 %v2240_v50, %v2205_v19  ;;  %3144 = vlog2.f32 %v2227_v2  ;;  %v2320_v50 = vld [vmem:[%s3481_s14 + $0x28] sm:$0xff] }
 0x2c1   : > { %1897 = vadd.xlane.f32.xlu2 %v4969_v47  ;;  %2121 = vadd.xlane.f32.xlu1 %v2090_v28  ;;  %v2207_v47 = vsub.f32 0.0, %v4797_v35  ;;  %v3135_v35 = vpop.eup %3134  ;;  %v2317_v28 = vld [vmem:[%s3481_s14 + $0x10] sm:$0xff]  ;;  %3146 = vlog2.f32 %v2232_v6  ;;  %v2233_v6 = vadd.f32 1e-07, %v4957_v34 }
 0x2c2   : > { %v5119_v60 = vpop.xlane.xlu0 %1641  ;;  %v2250_v45 = vmul.f32 0.6931472, %v3135_v35  ;;  %v3137_v36 = vpop.eup %3136 }
 0x2c3   : > { %v5124_v10 = vsub.f32 1.0, %v5119_v60  ;;  %v2271_v7 = vmul.f32 %v2244_v4, %v2207_v47  ;;  %v3139_v22 = vpop.eup %3138  ;;  %v2254_v13 = vmul.f32 0.6931472, %v3137_v36 }
 0x2c4   : > { %v2042_v49 = vpop.xlane.xlu1 %2041  ;;  %v3141_v42 = vpop.eup %3140 }
 0x2c5   : > { %v2168_v56 = vpop.xlane.xlu2 %2167  ;;  %v2066_v51 = vadd.f32 %v2042_v49, %v5124_v10  ;;  %v2333_v49 = vmax.f32 %v2317_v28, 0.0  ;;  %v2276_v31 = vmul.f32 %v2254_v13, %v2212_v23  ;;  %v3143_v35 = vpop.eup %3142 }
 0x2c6   : > { %v2193_v8 = vadd.f32 %v2168_v56, %v2001_v57  ;;  %v2209_v57 = vsub.f32 0.0, %v4833_v3  ;;  %v2210_v3 = vsub.f32 0.0, %v4851_v32  ;;  %v2208_v32 = vsub.f32 0.0, %v4815_v61 }
 0x2c7   : > { %2289 = vadd.xlane.f32.xlu0 %v2270_v48  ;;  %v2246_v56 = vmul.f32 0.6931472, %v3139_v22  ;;  %v2234_v48 = vadd.f32 1e-07, %v4964_v33  ;;  %v2213_v61 = vsub.f32 0.0, %v4898_v62  ;;  %v3145_v62 = vpop.eup %3144 }
 0x2c8   : > { %v2517_v52 = vsel %vm2510_vm4, %v2193_v8, %v2500_v39  ;;  %v2273_v55 = vmul.f32 %v2248_v63, %v2209_v57  ;;  %v2274_v39 = vmul.f32 %v2250_v45, %v2210_v3  ;;  %v2349_v63 = vmul.f32 20.0, %v2333_v49  ;;  %v3147_v45 = vpop.eup %3146 }
 0x2c9   : > { %v5137_v14 = vsel %vm2527_vm5, %v5091_v12, %v2517_v52  ;;  %2185 = vadd.xlane.f32.xlu2 %v2154_v46  ;;  %2291 = vadd.xlane.f32.xlu1 %v2271_v7  ;;  %v2334_v52 = vmax.f32 %v2318_v21, 0.0  ;;  %3148 = vlog2.f32 %v2234_v48  ;;  %v2260_v19 = vmul.f32 0.6931472, %v3143_v35  ;;  %v2323_v48 = vld [vmem:[%s3481_s14 + $0x40] sm:$0xff] }
 0x2ca   : > { %v1882_v15 = vpop.xlane.xlu0 %1881  ;;  %3150 = vpow2.f32 %v2363_v20  ;;  %v2252_v36 = vmul.f32 0.6931472, %v3145_v62  ;;  %v2262_v2 = vmul.f32 0.6931472, %v3147_v45  ;;  %v2216_v21 = vsub.f32 0.0, %v4941_v25 }
 0x2cb   : > { %v2467_v27 = vsel %vm2459_vm1, %v1882_v15, 0.0  ;;  %v2218_v35 = vsub.f32 0.0, %v4964_v33 }
 0x2cc   : > { %v2484_v0 = vsel %vm2476_vm2, %v2066_v51, %v2467_v27  ;;  %v5145_v12 = vpop.xlane.xlu1 %1643  ;;  %v2256_v51 = vmul.f32 0.6931472, %v3141_v42  ;;  %v2272_v27 = vmul.f32 %v2246_v56, %v2208_v32  ;;  %v2279_v32 = vmul.f32 %v2260_v19, %v2215_v44 }
 0x2cd   : > { %v2106_v16 = vpop.xlane.xlu2 %2105  ;;  %v2003_v47 = vsub.f32 1.0, %v5145_v12 }
 0x2ce   : > { %v2130_v58 = vadd.f32 %v2106_v16, %v5124_v10  ;;  %v2277_v57 = vmul.f32 %v2256_v51, %v2213_v61  ;;  %v2316_v16 = vld [vmem:[%s3481_s14 + $0x8] sm:$0xff] }
 0x2cf   : > { %2295 = vadd.xlane.f32.xlu0 %v2273_v55  ;;  %v2336_v55 = vmax.f32 %v2320_v50, 0.0  ;;  %v2332_v22 = vmax.f32 %v2316_v16, 0.0  ;;  %v3149_v13 = vpop.eup %3148  ;;  %v2324_v61 = vld [vmem:[%s3481_s14 + $0x48] sm:$0xff]  ;;  %v2214_v50 = vsub.f32 0.0, %v4914_v59 }
 0x2d0   : > { %v2501_v29 = vsel %vm2493_vm3, %v2130_v58, %v2484_v0  ;;  %v2350_v0 = vmul.f32 20.0, %v2334_v52  ;;  %v2367_v58 = vmul.f32 1.442695, %v2349_v63  ;;  %v2266_v25 = vmul.f32 0.6931472, %v3149_v13 }
 0x2d1   : > { %2287 = vadd.xlane.f32.xlu2 %v2269_v24  ;;  %2297 = vadd.xlane.f32.xlu1 %v2274_v39  ;;  %v2211_v39 = vsub.f32 0.0, %v4868_v1  ;;  %v2352_v56 = vmul.f32 20.0, %v2336_v55  ;;  %v2348_v51 = vmul.f32 20.0, %v2332_v22 }
 0x2d2   : > { %v2170_v4 = vpop.xlane.xlu0 %2169  ;;  %v2369_v28 = vmul.f32 1.442695, %v2350_v0  ;;  %v2340_v0 = vmax.f32 %v2324_v61, 0.0  ;;  %v3211_v61 = vld [vmem:[%s3474_s9 + $0x18] sm:$0xff] }
 0x2d3   : > { %v2194_v8 = vadd.f32 %v2170_v4, %v5124_v10  ;;  %v2230_v10 = vadd.f32 1e-07, %v4914_v59  ;;  %v3151_v4 = vpop.eup %3150  ;;  %v2275_v23 = vmul.f32 %v2252_v36, %v2211_v39  ;;  %v2365_v63 = vmul.f32 1.442695, %v2348_v51 }
 0x2d4   : > { %v1884_v17 = vpop.xlane.xlu1 %1883  ;;  %v2356_v22 = vmul.f32 20.0, %v2340_v0  ;;  %v2217_v51 = vsub.f32 0.0, %v4957_v34 }
 0x2d5   : > { %v2044_v40 = vpop.xlane.xlu2 %2043  ;;  %v2518_v38 = vsel %vm2510_vm4, %v2194_v8, %v2501_v29  ;;  %v2468_v7 = vsel %vm2459_vm1, %v1884_v17, 0.0  ;;  %3152 = vlog2.f32 %v2230_v10  ;;  %v2280_v8 = vmul.f32 %v2262_v2, %v2216_v21  ;;  %v3210_v21 = vld [vmem:[%s3474_s9 + $0x10] sm:$0xff] }
 0x2d6   : > { %v2067_v46 = vadd.f32 %v2044_v40, %v2003_v47  ;;  %v5171_v53 = vsel %vm2527_vm5, %v5119_v60, %v2518_v38  ;;  %v2321_v60 = vld [vmem:[%s3481_s14 + $0x30] sm:$0xff]  ;;  %3154 = vpow2.f32 %v2367_v58  ;;  %v2319_v40 = vld [vmem:[%s3481_s14 + $0x20] sm:$0xff] }
 0x2d7   : > { %2301 = vadd.xlane.f32.xlu0 %v2276_v31  ;;  %v2337_v42 = vmax.f32 %v2321_v60, 0.0  ;;  %3156 = vlog2.f32 %v2233_v6  ;;  %v2816_v31 = vadd.f32 -1.0, %v3151_v4  ;;  %v2335_v62 = vmax.f32 %v2319_v40, 0.0  ;;  %v2326_v6 = vld [vmem:[%s3481_s14 + $0x58] sm:$0xff] }
 0x2d8   : > { %v2485_v15 = vsel %vm2476_vm2, %v2067_v46, %v2468_v7  ;;  %3158 = vpow2.f32 %v2369_v28  ;;  %v2373_v46 = vmul.f32 1.442695, %v2352_v56  ;;  %v2339_v7 = vmax.f32 %v2323_v48, 0.0  ;;  %v2327_v28 = vld [vmem:[%s3481_s14 + $0x60] sm:$0xff] }
 0x2d9   : > { %2293 = vadd.xlane.f32.xlu2 %v2272_v27  ;;  %2303 = vadd.xlane.f32.xlu1 %v2277_v57  ;;  %v2282_v60 = vmul.f32 %v2266_v25, %v2218_v35  ;;  %v2351_v2 = vmul.f32 20.0, %v2335_v62  ;;  %v2381_v48 = vmul.f32 1.442695, %v2356_v22  ;;  %v2325_v62 = vld [vmem:[%s3481_s14 + $0x50] sm:$0xff] }
 0x2da   : > { %v2108_v54 = vpop.xlane.xlu0 %2107  ;;  %3160 = vpow2.f32 %v2373_v46  ;;  %v2355_v59 = vmul.f32 20.0, %v2339_v7 }
 0x2db   : > { %v2131_v3 = vadd.f32 %v2108_v54, %v2003_v47  ;;  %v3153_v49 = vpop.eup %3152  ;;  %v3209_v54 = vld [vmem:[%s3474_s9] sm:$0xff]  ;;  %3162 = vpow2.f32 %v2365_v63  ;;  %v2329_v63 = vld [vmem:[%s3481_s14 + $0x70] sm:$0xff] }
 0x2dc   : > { %v2172_v24 = vpop.xlane.xlu1 %2171  ;;  %v2258_v38 = vmul.f32 0.6931472, %v3153_v49  ;;  %v2411_v44 = vmul.f32 %v3209_v54, %v2816_v31 }
 0x2dd   : > { %v5180_v29 = vpop.xlane.xlu2 %1645  ;;  %v2502_v18 = vsel %vm2493_vm3, %v2131_v3, %v2485_v15  ;;  %v2195_v37 = vadd.f32 %v2172_v24, %v2003_v47  ;;  %v2353_v47 = vmul.f32 20.0, %v2337_v42  ;;  %v3155_v15 = vpop.eup %3154  ;;  %v2322_v24 = vld [vmem:[%s3481_s14 + $0x38] sm:$0xff] }
 0x2de   : > { %v2004_v17 = vsub.f32 1.0, %v5180_v29  ;;  %v3157_v16 = vpop.eup %3156  ;;  %v2278_v58 = vmul.f32 %v2258_v38, %v2214_v50  ;;  %v2818_v3 = vadd.f32 -1.0, %v3155_v15  ;;  %v2338_v56 = vmax.f32 %v2322_v24, 0.0  ;;  %v2330_v50 = vld [vmem:[%s3481_s14 + $0x78] sm:$0xff]  ;;  %v3214_v24 = vld [vmem:[%s3474_s9 + $0x30] sm:$0xff] }
 0x2df   : > { %v2519_v1 = vsel %vm2510_vm4, %v2195_v37, %v2502_v18  ;;  %2307 = vadd.xlane.f32.xlu0 %v2279_v32  ;;  %v2375_v45 = vmul.f32 1.442695, %v2353_v47  ;;  %v3159_v33 = vpop.eup %3158  ;;  %v2264_v13 = vmul.f32 0.6931472, %v3157_v16  ;;  %v2379_v18 = vmul.f32 1.442695, %v2355_v59 }
 0x2e0   : > { %v5195_v20 = vsel %vm2527_vm5, %v5145_v12, %v2519_v1  ;;  %v2819_v39 = vadd.f32 -1.0, %v3159_v33  ;;  %v2342_v37 = vmax.f32 %v2326_v6, 0.0  ;;  %v2413_v4 = vmul.f32 %v3210_v21, %v2818_v3  ;;  %v3161_v49 = vpop.eup %3160  ;;  %v3213_v6 = vld [vmem:[%s3474_s9 + $0x8] sm:$0xff] }
 0x2e1   : > { %2299 = vadd.xlane.f32.xlu2 %v2275_v23  ;;  %2309 = vadd.xlane.f32.xlu1 %v2280_v8  ;;  %3164 = vpow2.f32 %v2375_v45  ;;  %v2371_v23 = vmul.f32 1.442695, %v2351_v2  ;;  %v2343_v47 = vmax.f32 %v2327_v28, 0.0  ;;  %v3163_v40 = vpop.eup %3162  ;;  %v2281_v46 = vmul.f32 %v2264_v13, %v2217_v51 }
 0x2e2   : > { %v2046_v52 = vpop.xlane.xlu0 %2045  ;;  %3166 = vpow2.f32 %v2379_v18  ;;  %v2358_v7 = vmul.f32 20.0, %v2342_v37  ;;  %v2821_v34 = vadd.f32 -1.0, %v3161_v49  ;;  %v2354_v35 = vmul.f32 20.0, %v2338_v56  ;;  %v2328_v49 = vld [vmem:[%s3481_s14 + $0x68] sm:$0xff] }
 0x2e3   : > { %v2068_v10 = vadd.f32 %v2046_v52, %v2004_v17  ;;  %v2414_v52 = vmul.f32 %v3211_v61, %v2819_v39  ;;  %3168 = vpow2.f32 %v2371_v23  ;;  %v2345_v16 = vmax.f32 %v2329_v63, 0.0 }
 0x2e4   : > { %v2110_v57 = vpop.xlane.xlu1 %2109  ;;  %3170 = vpow2.f32 %v2381_v48  ;;  %v2385_v0 = vmul.f32 1.442695, %v2358_v7  ;;  %v2377_v54 = vmul.f32 1.442695, %v2354_v35 }
 0x2e5   : > { %v1886_v27 = vpop.xlane.xlu2 %1885  ;;  %v2132_v19 = vadd.f32 %v2110_v57, %v2004_v17  ;;  %v2361_v13 = vmul.f32 20.0, %v2345_v16 }
 0x2e6   : > { %v2469_v12 = vsel %vm2459_vm1, %v1886_v27, 0.0  ;;  %v2817_v27 = vadd.f32 -1.0, %v3163_v40  ;;  %3172 = vpow2.f32 %v2385_v0 }
 0x2e7   : > { %v2486_v36 = vsel %vm2476_vm2, %v2068_v10, %v2469_v12  ;;  %2313 = vadd.xlane.f32.xlu0 %v2282_v60  ;;  %v3165_v38 = vpop.eup %3164  ;;  %3174 = vpow2.f32 %v2377_v54  ;;  %v3218_v54 = vld [vmem:[%s3474_s9 + $0x58] sm:$0xff] }
 0x2e8   : > { %v2503_v55 = vsel %vm2493_vm3, %v2132_v19, %v2486_v36  ;;  %v2822_v57 = vadd.f32 -1.0, %v3165_v38  ;;  %v3212_v19 = vld [vmem:[%s3474_s9 + $0x28] sm:$0xff]  ;;  %v3167_v33 = vpop.eup %3166  ;;  %v2412_v22 = vmul.f32 %v3213_v6, %v2817_v27  ;;  %v3216_v38 = vld [vmem:[%s3474_s9 + $0x20] sm:$0xff] }
 0x2e9   : > { %2305 = vadd.xlane.f32.xlu2 %v2278_v58  ;;  %2427 = vadd.xlane.f32.xlu1 %v2411_v44  ;;  %v2416_v60 = vmul.f32 %v3212_v19, %v2821_v34  ;;  %v2341_v44 = vmax.f32 %v2325_v62, 0.0  ;;  %v3169_v3 = vpop.eup %3168  ;;  %v2824_v37 = vadd.f32 -1.0, %v3167_v33  ;;  %v3217_v62 = vld [vmem:[%s3474_s9 + $0x48] sm:$0xff] }
 0x2ea   : > { %v5209_v42 = vpop.xlane.xlu0 %1647  ;;  %v2417_v39 = vmul.f32 %v3214_v24, %v2822_v57  ;;  %v3171_v28 = vpop.eup %3170 }
 0x2eb   : > { %v5212_v32 = vsub.f32 1.0, %v5209_v42  ;;  %v2357_v21 = vmul.f32 20.0, %v2341_v44  ;;  %v2825_v56 = vadd.f32 -1.0, %v3171_v28 }
 0x2ec   : > { %v2048_v8 = vpop.xlane.xlu1 %2047 }
 0x2ed   : > { %v2174_v1 = vpop.xlane.xlu2 %2173  ;;  %v2069_v31 = vadd.f32 %v2048_v8, %v5212_v32  ;;  %v2391_v8 = vmul.f32 1.442695, %v2361_v13 }
 0x2ee   : > { %v2196_v25 = vadd.f32 %v2174_v1, %v2004_v17  ;;  %v2359_v17 = vmul.f32 20.0, %v2343_v47  ;;  %v3215_v47 = vld [vmem:[%s3474_s9 + $0x40] sm:$0xff] }
 0x2ef   : > { %2431 = vadd.xlane.f32.xlu0 %v2413_v4  ;;  %v2820_v4 = vadd.f32 -1.0, %v3169_v3  ;;  %v2419_v40 = vmul.f32 %v3215_v47, %v2824_v37 }
 0x2f0   : > { %v2520_v10 = vsel %vm2510_vm4, %v2196_v25, %v2503_v55  ;;  %v2387_v59 = vmul.f32 1.442695, %v2359_v17  ;;  %v2346_v55 = vmax.f32 %v2330_v50, 0.0  ;;  %v2383_v25 = vmul.f32 1.442695, %v2357_v21 }
 0x2f1   : > { %v5225_v15 = vsel %vm2527_vm5, %v5180_v29, %v2520_v10  ;;  %2311 = vadd.xlane.f32.xlu2 %v2281_v46  ;;  %2433 = vadd.xlane.f32.xlu1 %v2414_v52  ;;  %v2415_v46 = vmul.f32 %v3216_v38, %v2820_v4  ;;  %v2344_v10 = vmax.f32 %v2328_v49, 0.0  ;;  %v3221_v49 = vld [vmem:[%s3474_s9 + $0x70] sm:$0xff] }
 0x2f2   : > { %v1888_v45 = vpop.xlane.xlu0 %1887  ;;  %3176 = vpow2.f32 %v2387_v59  ;;  %v2362_v23 = vmul.f32 20.0, %v2346_v55 }
 0x2f3   : > { %v2470_v12 = vsel %vm2459_vm1, %v1888_v45, 0.0  ;;  %3178 = vpow2.f32 %v2391_v8  ;;  %v2360_v0 = vmul.f32 20.0, %v2344_v10 }
 0x2f4   : > { %v2487_v29 = vsel %vm2476_vm2, %v2069_v31, %v2470_v12  ;;  %v5233_v58 = vpop.xlane.xlu1 %1649  ;;  %v3173_v31 = vpop.eup %3172  ;;  %v2393_v7 = vmul.f32 1.442695, %v2362_v23  ;;  %3180 = vpow2.f32 %v2383_v25 }
 0x2f5   : > { %v2112_v36 = vpop.xlane.xlu2 %2111  ;;  %v2006_v51 = vsub.f32 1.0, %v5233_v58  ;;  %v3175_v34 = vpop.eup %3174  ;;  %v2827_v45 = vadd.f32 -1.0, %v3173_v31 }
 0x2f6   : > { %v2133_v2 = vadd.f32 %v2112_v36, %v5212_v32  ;;  %3182 = vpow2.f32 %v2393_v7  ;;  %v2823_v16 = vadd.f32 -1.0, %v3175_v34  ;;  %v2389_v36 = vmul.f32 1.442695, %v2360_v0 }
 0x2f7   : > { %2437 = vadd.xlane.f32.xlu0 %v2416_v60  ;;  %v2422_v44 = vmul.f32 %v3218_v54, %v2827_v45 }
 0x2f8   : > { %v2504_v18 = vsel %vm2493_vm3, %v2133_v2, %v2487_v29  ;;  %v3177_v27 = vpop.eup %3176  ;;  %v3219_v2 = vld [vmem:[%s3474_s9 + $0x38] sm:$0xff]  ;;  %3184 = vpow2.f32 %v2389_v36 }
 0x2f9   : > { %2429 = vadd.xlane.f32.xlu2 %v2412_v22  ;;  %2439 = vadd.xlane.f32.xlu1 %v2417_v39  ;;  %v2828_v12 = vadd.f32 -1.0, %v3177_v27  ;;  %v2418_v6 = vmul.f32 %v3219_v2, %v2823_v16  ;;  %v3220_v22 = vld [vmem:[%s3474_s9 + $0x60] sm:$0xff] }
 0x2fa   : > { %v2176_v1 = vpop.xlane.xlu0 %2175 }
 0x2fb   : > { %v2197_v48 = vadd.f32 %v2176_v1, %v5212_v32  ;;  %v2420_v32 = vmul.f32 %v3217_v62, %v2825_v56  ;;  %v2423_v24 = vmul.f32 %v3220_v22, %v2828_v12  ;;  %v3224_v62 = vld [vmem:[%s3474_s9 + $0x68] sm:$0xff] }
 0x2fc   : > { %v1890_v52 = vpop.xlane.xlu1 %1889 }
 0x2fd   : > { %v2050_v61 = vpop.xlane.xlu2 %2049  ;;  %v2521_v35 = vsel %vm2510_vm4, %v2197_v48, %v2504_v18  ;;  %v2471_v17 = vsel %vm2459_vm1, %v1890_v52, 0.0 }
 0x2fe   : > { %v2070_v63 = vadd.f32 %v2050_v61, %v2006_v51  ;;  %v5253_v57 = vsel %vm2527_vm5, %v5209_v42, %v2521_v35  ;;  %v3179_v42 = vpop.eup %3178 }
 0x2ff   : > { %2443 = vadd.xlane.f32.xlu0 %v2419_v40  ;;  %v3181_v59 = vpop.eup %3180  ;;  %v2830_v13 = vadd.f32 -1.0, %v3179_v42  ;;  %v3222_v40 = vld [vmem:[%s3474_s9 + $0x50] sm:$0xff] }
 0x300   : > { %v2488_v50 = vsel %vm2476_vm2, %v2070_v63, %v2471_v17  ;;  %v3183_v39 = vpop.eup %3182  ;;  %v2826_v21 = vadd.f32 -1.0, %v3181_v59 }
 0x301   : > { %2435 = vadd.xlane.f32.xlu2 %v2415_v46  ;;  %2445 = vadd.xlane.f32.xlu1 %v2420_v32  ;;  %v2831_v4 = vadd.f32 -1.0, %v3183_v39  ;;  %v2425_v1 = vmul.f32 %v3221_v49, %v2830_v13  ;;  %v3185_v61 = vpop.eup %3184 }
 0x302   : > { %v2114_v19 = vpop.xlane.xlu0 %2113  ;;  %v2421_v25 = vmul.f32 %v3222_v40, %v2826_v21  ;;  %v2829_v46 = vadd.f32 -1.0, %v3185_v61 }
 0x303   : > { %v2134_v60 = vadd.f32 %v2114_v19, %v2006_v51 }
 0x304   : > { %v2178_v29 = vpop.xlane.xlu1 %2177  ;;  %v2424_v32 = vmul.f32 %v3224_v62, %v2829_v46 }
 0x305   : > { %v1652_v33 = vpop.xlane.xlu2 %1651  ;;  %v2505_v55 = vsel %vm2493_vm3, %v2134_v60, %v2488_v50  ;;  %v2198_v3 = vadd.f32 %v2178_v29, %v2006_v51 }
 0x306   : > { %v2007_v37 = vsub.f32 1.0, %v1652_v33 }
 0x307   : > { %v2522_v28 = vsel %vm2510_vm4, %v2198_v3, %v2505_v55  ;;  %2449 = vadd.xlane.f32.xlu0 %v2422_v44 }
 0x308   : > { %v5267_v18 = vsel %vm2527_vm5, %v5233_v58, %v2522_v28  ;;  %v3223_v58 = vld [vmem:[%s3474_s9 + $0x78] sm:$0xff] }
 0x309   : > { %2441 = vadd.xlane.f32.xlu2 %v2418_v6  ;;  %2451 = vadd.xlane.f32.xlu1 %v2423_v24  ;;  %v2426_v31 = vmul.f32 %v3223_v58, %v2831_v4 }
 0x30a   : > { %v2052_v23 = vpop.xlane.xlu0 %2051 }
 0x30b   : > { %v2071_v56 = vadd.f32 %v2052_v23, %v2007_v37 }
 0x30c   : > { %v2116_v51 = vpop.xlane.xlu1 %2115 }
 0x30d   : > { %v1892_v8 = vpop.xlane.xlu2 %1891  ;;  %v2135_v47 = vadd.f32 %v2116_v51, %v2007_v37 }
 0x30e   : > { %v2472_v48 = vsel %vm2459_vm1, %v1892_v8, 0.0 }
 0x30f   : > { %v2489_v52 = vsel %vm2476_vm2, %v2071_v56, %v2472_v48  ;;  %2455 = vadd.xlane.f32.xlu0 %v2425_v1 }
 0x310   : > { %v2506_v38 = vsel %vm2493_vm3, %v2135_v47, %v2489_v52 }
 0x311   : > { %2447 = vadd.xlane.f32.xlu2 %v2421_v25  ;;  %2457 = vadd.xlane.f32.xlu1 %v2426_v31 }
 0x312   : > { %v1654_v7 = vpop.xlane.xlu0 %1653 }
 0x313   : > { %v2008_v10 = vsub.f32 1.0, %v1654_v7 }
 0x314   : > { %v2054_v35 = vpop.xlane.xlu1 %2053 }
 0x315   : > { %v2180_v34 = vpop.xlane.xlu2 %2179  ;;  %v2072_v17 = vadd.f32 %v2054_v35, %v2008_v10 }
 0x316   : > { %v2199_v63 = vadd.f32 %v2180_v34, %v2007_v37 }
 0x318   : > { %v2523_v27 = vsel %vm2510_vm4, %v2199_v63, %v2506_v38 }
 0x319   : > { %v5283_v50 = vsel %vm2527_vm5, %v1652_v33, %v2523_v27  ;;  %2453 = vadd.xlane.f32.xlu2 %v2424_v32 }
 0x31a   : > { %v1894_v45 = vpop.xlane.xlu0 %1893 }
 0x31b   : > { %v2473_v0 = vsel %vm2459_vm1, %v1894_v45, 0.0 }
 0x31c   : > { %v2490_v16 = vsel %vm2476_vm2, %v2072_v17, %v2473_v0  ;;  %v1656_v19 = vpop.xlane.xlu1 %1655 }
 0x31d   : > { %v2118_v12 = vpop.xlane.xlu2 %2117  ;;  %v2009_v42 = vsub.f32 1.0, %v1656_v19 }
 0x31e   : > { %v2136_v60 = vadd.f32 %v2118_v12, %v2008_v10 }
 0x320   : > { %v2507_v54 = vsel %vm2493_vm3, %v2136_v60, %v2490_v16 }
 0x322   : > { %v2182_v44 = vpop.xlane.xlu0 %2181 }
 0x323   : > { %v2200_v29 = vadd.f32 %v2182_v44, %v2008_v10 }
 0x324   : > { %v1896_v33 = vpop.xlane.xlu1 %1895 }
 0x325   : > { %v2056_v36 = vpop.xlane.xlu2 %2055  ;;  %v2524_v59 = vsel %vm2510_vm4, %v2200_v29, %v2507_v54  ;;  %v2474_v3 = vsel %vm2459_vm1, %v1896_v33, 0.0 }
 0x326   : > { %v2073_v55 = vadd.f32 %v2056_v36, %v2009_v42  ;;  %v5297_v2 = vsel %vm2527_vm5, %v1654_v7, %v2524_v59 }
 0x328   : > { %v2491_v6 = vsel %vm2476_vm2, %v2073_v55, %v2474_v3 }
 0x32a   : > { %v2120_v22 = vpop.xlane.xlu0 %2119 }
 0x32b   : > { %v2137_v24 = vadd.f32 %v2120_v22, %v2009_v42 }
 0x32c   : > { %v2184_v28 = vpop.xlane.xlu1 %2183 }
 0x32d   : > { %v1658_v39 = vpop.xlane.xlu2 %1657  ;;  %v2508_v13 = vsel %vm2493_vm3, %v2137_v24, %v2491_v6  ;;  %v2201_v37 = vadd.f32 %v2184_v28, %v2009_v42 }
 0x32e   : > { %v2010_v23 = vsub.f32 1.0, %v1658_v39 }
 0x32f   : > { %v2525_v21 = vsel %vm2510_vm4, %v2201_v37, %v2508_v13 }
 0x330   : > { %v5307_v4 = vsel %vm2527_vm5, %v1656_v19, %v2525_v21 }
 0x332   : > { %v2058_v56 = vpop.xlane.xlu0 %2057 }
 0x333   : > { %v2074_v49 = vadd.f32 %v2058_v56, %v2010_v23 }
 0x334   : > { %v2122_v8 = vpop.xlane.xlu1 %2121 }
 0x335   : > { %v1898_v1 = vpop.xlane.xlu2 %1897  ;;  %v2138_v48 = vadd.f32 %v2122_v8, %v2010_v23 }
 0x336   : > { %v2475_v51 = vsel %vm2459_vm1, %v1898_v1, 0.0 }
 0x337   : > { %v2492_v47 = vsel %vm2476_vm2, %v2074_v49, %v2475_v51 }
 0x338   : > { %v2509_v40 = vsel %vm2493_vm3, %v2138_v48, %v2492_v47 }
 0x33a   : > { %v2290_v25 = vpop.xlane.xlu0 %2289 }
 0x33b   : > { %v2548_v54 = vsel %vm2544_vm6, %v2290_v25, %v5060_v5 }
 0x33c   : > { %v2292_v31 = vpop.xlane.xlu1 %2291 }
 0x33d   : > { %v2186_v58 = vpop.xlane.xlu2 %2185 }
 0x33e   : > { %v2202_v61 = vadd.f32 %v2186_v58, %v2010_v23 }
 0x340   : > { %v2526_v52 = vsel %vm2510_vm4, %v2202_v61, %v2509_v40 }
 0x341   : > { %v5319_v38 = vsel %vm2527_vm5, %v1658_v39, %v2526_v52 }
 0x342   : > { %v2296_v46 = vpop.xlane.xlu0 %2295 }
 0x343   : > { %v2551_v5 = vsel %vm2544_vm6, %v2296_v46, %v5137_v14 }
 0x344   : > { %v2298_v10 = vpop.xlane.xlu1 %2297 }
 0x345   : > { %v2288_v7 = vpop.xlane.xlu2 %2287  ;;  %v2552_v37 = vsel %vm2544_vm6, %v2298_v10, %v5171_v53 }
 0x346   : > { %v2547_v12 = vsel %vm2544_vm6, %v2288_v7, %v5037_v26 }
 0x34a   : > { %v2302_v34 = vpop.xlane.xlu0 %2301 }
 0x34b   : > { %v2554_v22 = vsel %vm2544_vm6, %v2302_v34, %v5225_v15 }
 0x34c   : > { %v2304_v63 = vpop.xlane.xlu1 %2303 }
 0x34d   : > { %v2294_v35 = vpop.xlane.xlu2 %2293  ;;  %v2555_v8 = vsel %vm2544_vm6, %v2304_v63, %v5253_v57 }
 0x34e   : > { %v2550_v26 = vsel %vm2544_vm6, %v2294_v35, %v5103_v11 }
 0x352   : > { %v2308_v17 = vpop.xlane.xlu0 %2307 }
 0x353   : > { %v2557_v21 = vsel %vm2544_vm6, %v2308_v17, %v5283_v50 }
 0x354   : > { %v5321_v32 = vpop.xlane.xlu1 %2309 }
 0x355   : > { %v2300_v62 = vpop.xlane.xlu2 %2299  ;;  %v2558_v57 = vsel %vm2544_vm6, %v5321_v32, %v5297_v2 }
 0x356   : > { %v2553_v14 = vsel %vm2544_vm6, %v2300_v62, %v5195_v20 }
 0x35a   : > { %v2314_v27 = vpop.xlane.xlu0 %2313 }
 0x35b   : > { %v2560_v51 = vsel %vm2544_vm6, %v2314_v27, %v5319_v38 }
 0x35c   : > { %v2428_v0 = vpop.xlane.xlu1 %2427 }
 0x35d   : > { %v2306_v45 = vpop.xlane.xlu2 %2305  ;;  %v2562_v16 = vsel %vm2561_vm7, %v2428_v0, %v5012_v30 }
 0x35e   : > { %2579 = vst.msk [vmem:[%s5328_s13] sm:$0xff] %vm2578_vm8, %v2562_v16 }
 0x362   : > { %v2432_v19 = vpop.xlane.xlu0 %2431 }
 0x363   : > { %v2564_v60 = vsel %vm2561_vm7, %v2432_v19, %v2547_v12 }
 0x364   : > { %2581 = vst.msk [vmem:[%s5328_s13 + $0x10] sm:$0xff] %vm2578_vm8, %v2564_v60  ;;  %v2434_v30 = vpop.xlane.xlu1 %2433 }
 0x365   : > { %v2312_v44 = vpop.xlane.xlu2 %2311  ;;  %v2565_v42 = vsel %vm2561_vm7, %v2434_v30, %v2548_v54 }
 0x366   : > { %2582 = vst.msk [vmem:[%s5328_s13 + $0x18] sm:$0xff] %vm2578_vm8, %v2565_v42  ;;  %v2559_v53 = vsel %vm2544_vm6, %v2312_v44, %v5307_v4 }
 0x36a   : > { %v2438_v29 = vpop.xlane.xlu0 %2437 }
 0x36b   : > { %v2567_v36 = vsel %vm2561_vm7, %v2438_v29, %v2550_v26 }
 0x36c   : > { %2584 = vst.msk [vmem:[%s5328_s13 + $0x28] sm:$0xff] %vm2578_vm8, %v2567_v36  ;;  %v2440_v59 = vpop.xlane.xlu1 %2439 }
 0x36d   : > { %v2430_v33 = vpop.xlane.xlu2 %2429  ;;  %v2568_v11 = vsel %vm2561_vm7, %v2440_v59, %v2551_v5 }
 0x36e   : > { %v2563_v55 = vsel %vm2561_vm7, %v2430_v33, %v5028_v41  ;;  %2585 = vst.msk [vmem:[%s5328_s13 + $0x30] sm:$0xff] %vm2578_vm8, %v2568_v11  ;;  %v2549_v41 = vsel %vm2544_vm6, %v2292_v31, %v5081_v9  ;;  %v2556_v9 = vsel %vm2544_vm6, %v2306_v45, %v5267_v18 }
 0x36f   : > { %2580 = vst.msk [vmem:[%s5328_s13 + $0x8] sm:$0xff] %vm2578_vm8, %v2563_v55 }
 0x372   : > { %v2444_v3 = vpop.xlane.xlu0 %2443 }
 0x373   : > { %v2570_v6 = vsel %vm2561_vm7, %v2444_v3, %v2553_v14 }
 0x374   : > { %2587 = vst.msk [vmem:[%s5328_s13 + $0x40] sm:$0xff] %vm2578_vm8, %v2570_v6  ;;  %v2446_v39 = vpop.xlane.xlu1 %2445 }
 0x375   : > { %v2436_v24 = vpop.xlane.xlu2 %2435  ;;  %v2571_v28 = vsel %vm2561_vm7, %v2446_v39, %v2554_v22 }
 0x376   : > { %v2566_v20 = vsel %vm2561_vm7, %v2436_v24, %v2549_v41  ;;  %2588 = vst.msk [vmem:[%s5328_s13 + $0x48] sm:$0xff] %vm2578_vm8, %v2571_v28 }
 0x377   : > { %2583 = vst.msk [vmem:[%s5328_s13 + $0x20] sm:$0xff] %vm2578_vm8, %v2566_v20 }
 0x37a   : > { %v2450_v15 = vpop.xlane.xlu0 %2449 }
 0x37b   : > { %v2573_v13 = vsel %vm2561_vm7, %v2450_v15, %v2556_v9 }
 0x37c   : > { %2590 = vst.msk [vmem:[%s5328_s13 + $0x58] sm:$0xff] %vm2578_vm8, %v2573_v13  ;;  %v2452_v56 = vpop.xlane.xlu1 %2451 }
 0x37d   : > { %v2442_v23 = vpop.xlane.xlu2 %2441  ;;  %v2574_v49 = vsel %vm2561_vm7, %v2452_v56, %v2557_v21 }
 0x37e   : > { %v2569_v18 = vsel %vm2561_vm7, %v2442_v23, %v2552_v37  ;;  %2591 = vst.msk [vmem:[%s5328_s13 + $0x60] sm:$0xff] %vm2578_vm8, %v2574_v49 }
 0x37f   : > { %2586 = vst.msk [vmem:[%s5328_s13 + $0x38] sm:$0xff] %vm2578_vm8, %v2569_v18 }
 0x382   : > { %v2456_v50 = vpop.xlane.xlu0 %2455 }
 0x383   : > { %v2576_v1 = vsel %vm2561_vm7, %v2456_v50, %v2559_v53 }
 0x384   : > { %2593 = vst.msk [vmem:[%s5328_s13 + $0x70] sm:$0xff] %vm2578_vm8, %v2576_v1  ;;  %v2458_v47 = vpop.xlane.xlu1 %2457 }
 0x385   : > { %v2448_v48 = vpop.xlane.xlu2 %2447  ;;  %v2577_v4 = vsel %vm2561_vm7, %v2458_v47, %v2560_v51 }
 0x386   : > { %v2572_v40 = vsel %vm2561_vm7, %v2448_v48, %v2555_v8  ;;  %2594 = vst.msk [vmem:[%s5328_s13 + $0x78] sm:$0xff] %vm2578_vm8, %v2577_v4 }
 0x387   : > { %2589 = vst.msk [vmem:[%s5328_s13 + $0x50] sm:$0xff] %vm2578_vm8, %v2572_v40 }
 0x38d   : > { %v2454_v25 = vpop.xlane.xlu2 %2453 }
 0x38e   : > { %v2575_v58 = vsel %vm2561_vm7, %v2454_v25, %v2558_v57 }
 0x38f   : > { %2592 = vst.msk [vmem:[%s5328_s13 + $0x68] sm:$0xff] %vm2578_vm8, %v2575_v58 }
 0x390 PF: > { %s5665_s26 = sld [smem:[#allocation12_spill]]  ;;  %p18_p6 = scmp.ge.s32.totalorder %s3387_s23, 4  }
 0x391   : > { %s5666_s20 = sld [smem:[#allocation13_spill]]  ;;  %s5667_s18 = smov %s3311_s19 }
 0x392   : > { %s5669_s21 = smov %s3387_s23  ;;  %20 = sbr.rel (!%p18_p6) target bundleno = 5 (0x5), region = 115 }
 0x396   : > { %s5668_s19 = smov %s5665_s26 }
 0x397   :  { %2617 = vsyncpa [#allocation3], 1 }
 0x398   :  { %2619 = vsyncpa [#allocation3 + $0x1], 1 }
 0x399   :  { %2620 = vsyncpa [#allocation5], 1 }
 0x39a   :  { %2622 = vsyncpa [#allocation5 + $0x1], 1 }

</bundles_post_ra>
